<compile_context>
chip_gen: v5e
topology: v5e:2x2
jax: 0.10.0
libtpu: 0.0.40
codegen_flags: <defaults>
</compile_context>

<pallas_src>
import functools

import jax
import jax.numpy as jnp
from jax import lax
from jax.experimental import pallas as pl
from jax.experimental.pallas import tpu as pltpu


def _round_up(x, m):
    return ((x + m - 1) // m) * m


# ----------------------------------------------------------------------------
# Fused kernel
# ----------------------------------------------------------------------------
def _make_fused_lstm_kernel(T, B, Bp, Hp, num_layers):
    """Kernel closure.

    Kernel ref order:
      x_flat (T*Bp, Dp),
      [w_ih_l (in_p, 4*Hp), w_hh_l (Hp, 4*Hp), bias_l (1, 4*Hp)] * num_layers,
      fc_w (Hp, C), fc_b (1, C),
      out (B, C),
      scratch: xproj (T*Bp, 4*Hp), hseq (T*Bp, Hp)
    """

    def kernel(*refs):
        x_ref = refs[0]
        layer_refs = refs[1:1 + 3 * num_layers]
        fc_w_ref = refs[1 + 3 * num_layers]
        fc_b_ref = refs[2 + 3 * num_layers]
        out_ref = refs[3 + 3 * num_layers]
        xproj = refs[4 + 3 * num_layers]      # (T*Bp, 4*Hp) VMEM scratch
        hseq = refs[5 + 3 * num_layers]       # (T*Bp, Hp)   VMEM scratch

        h_last = None
        for layer in range(num_layers):       # static, small
            wih_ref = layer_refs[3 * layer + 0]
            whh_ref = layer_refs[3 * layer + 1]
            b_ref = layer_refs[3 * layer + 2]
            src_ref = x_ref if layer == 0 else hseq

            # Hoisted input projection: one large MXU matmul over all time
            # steps (M = T*Bp rows), bias folded in.  Removes half the MXU
            # pushes and the bias add from the serial recurrence.
            xproj[...] = (
                jnp.dot(src_ref[...], wih_ref[...],
                        preferred_element_type=jnp.float32)
                + b_ref[...]
            )

            # Load the recurrent weight once; no per-step ref reads inside the
            # serial loop (keeps vld slots free on the critical path).
            whh = whh_ref[...]
            write_seq = layer != num_layers - 1

            def step(t, carry, whh=whh, write_seq=write_seq):
                h, c = carry
                row = pl.multiple_of(t * Bp, Bp)          # sublane-aligned
                gates = xproj[pl.ds(row, Bp), :] + jnp.dot(
                    h, whh, preferred_element_type=jnp.float32)
                # Each gate sits in its own 128-aligned lane block (Hp lanes):
                # slicing is free (no cross-lane shuffles).
                i_g = jax.nn.sigmoid(gates[:, 0 * Hp:1 * Hp])
                f_g = jax.nn.sigmoid(gates[:, 1 * Hp:2 * Hp])
                g_g = jnp.tanh(gates[:, 2 * Hp:3 * Hp])
                o_g = jax.nn.sigmoid(gates[:, 3 * Hp:4 * Hp])
                c_new = f_g * c + i_g * g_g
                h_new = o_g * jnp.tanh(c_new)
                if write_seq:
                    hseq[pl.ds(row, Bp), :] = h_new
                return h_new, c_new

            init = (jnp.zeros((Bp, Hp), jnp.float32),
                    jnp.zeros((Bp, Hp), jnp.float32))
            h_last, _ = lax.fori_loop(0, T, step, init, unroll=True)

        # Fused FC head on the last time step's hidden state.
        logits = (jnp.dot(h_last, fc_w_ref[...],
                          preferred_element_type=jnp.float32)
                  + fc_b_ref[...])
        out_ref[...] = logits[:B, :].astype(out_ref.dtype)

    return kernel


# ----------------------------------------------------------------------------
# Wrapper
# ----------------------------------------------------------------------------
@functools.partial(jax.jit, static_argnames=("hidden_size", "num_layers"))
def lstm_forward(kparams, x, *, hidden_size, num_layers):
    """x: (batch, seq, input_size) — PyTorch batch_first. Returns (batch, C)."""
    B, T, D = x.shape
    Hp = _round_up(hidden_size, 128)
    Bp = _round_up(B, 8)
    Dp = kparams["layers"][0]["w_ih"].shape[0]
    C = kparams["fc_w"].shape[1]

    # GaussianNoise is identity in eval mode.
    x_t = jnp.transpose(x, (1, 0, 2)).astype(jnp.float32)        # (T, B, D)
    x_t = jnp.pad(x_t, ((0, 0), (0, Bp - B), (0, Dp - D)))       # pad batch/lanes
    x_flat = x_t.reshape(T * Bp, Dp)                             # time-major, flat

    inputs = [x_flat]
    for lp in kparams["layers"]:
        inputs += [lp["w_ih"], lp["w_hh"], lp["bias"]]
    inputs += [kparams["fc_w"], kparams["fc_b"]]

    kernel = _make_fused_lstm_kernel(T, B, Bp, Hp, num_layers)
    return pl.pallas_call(
        kernel,
        out_shape=jax.ShapeDtypeStruct((B, C), jnp.float32),
        in_specs=[pl.BlockSpec(memory_space=pltpu.MemorySpace.VMEM)] * len(inputs),
        out_specs=pl.BlockSpec(memory_space=pltpu.MemorySpace.VMEM),
        scratch_shapes=[
            pltpu.VMEM((T * Bp, 4 * Hp), jnp.float32),   # hoisted input projection
            pltpu.VMEM((T * Bp, Hp), jnp.float32),       # inter-layer hidden sequence
        ],
    )(*inputs)


# ----------------------------------------------------------------------------
# Parameters (PyTorch-layout raw params + padded kernel layout)
# ----------------------------------------------------------------------------
def init_params(key, input_size, hidden_size, num_layers, num_classes):
    """PyTorch-style U(-1/sqrt(H), 1/sqrt(H)) init, PyTorch weight layout."""
    bound = 1.0 / jnp.sqrt(jnp.float32(hidden_size))
    layers = []
    for layer in range(num_layers):
        in_dim = input_size if layer == 0 else hidden_size
        key, k1, k2, k3, k4 = jax.random.split(key, 5)
        layers.append({
            "w_ih": jax.random.uniform(k1, (4 * hidden_size, in_dim),
                                       jnp.float32, -bound, bound),
            "w_hh": jax.random.uniform(k2, (4 * hidden_size, hidden_size),
                                       jnp.float32, -bound, bound),
            "b_ih": jax.random.uniform(k3, (4 * hidden_size,),
                                       jnp.float32, -bound, bound),
            "b_hh": jax.random.uniform(k4, (4 * hidden_size,),
                                       jnp.float32, -bound, bound),
        })
    key, k5, k6 = jax.random.split(key, 3)
    fc_w = jax.random.uniform(k5, (num_classes, hidden_size),
                              jnp.float32, -bound, bound)
    fc_b = jax.random.uniform(k6, (num_classes,), jnp.float32, -bound, bound)
    return {"layers": layers, "fc_w": fc_w, "fc_b": fc_b}


def prepare_kernel_params(raw, hidden_size):
    """Transpose + zero-pad weights so each gate occupies a 128-aligned lane block.

    Padding rows/cols are zero, so padded lanes of h/c stay exactly zero.
    """
    H = hidden_size
    Hp = _round_up(H, 128)
    layers = []
    for lp in raw["layers"]:
        in_dim = lp["w_ih"].shape[1]
        in_p = _round_up(in_dim, 128)
        wih_t = lp["w_ih"].T                     # (in_dim, 4H), gate order i,f,g,o
        whh_t = lp["w_hh"].T                     # (H, 4H)
        bias = lp["b_ih"] + lp["b_hh"]           # (4H,)

        wih_p = jnp.zeros((in_p, 4 * Hp), jnp.float32)
        whh_p = jnp.zeros((Hp, 4 * Hp), jnp.float32)
        b_p = jnp.zeros((1, 4 * Hp), jnp.float32)
        for g in range(4):
            wih_p = wih_p.at[:in_dim, g * Hp:g * Hp + H].set(
                wih_t[:, g * H:(g + 1) * H])
            whh_p = whh_p.at[:H, g * Hp:g * Hp + H].set(
                whh_t[:, g * H:(g + 1) * H])
            b_p = b_p.at[0, g * Hp:g * Hp + H].set(bias[g * H:(g + 1) * H])
        layers.append({"w_ih": wih_p, "w_hh": whh_p, "bias": b_p})

    C = raw["fc_w"].shape[0]
    fc_w = jnp.zeros((Hp, C), jnp.float32).at[:H, :].set(raw["fc_w"].T)
    fc_b = raw["fc_b"][None, :]
    return {"layers": layers, "fc_w": fc_w, "fc_b": fc_b}


# ----------------------------------------------------------------------------
# Pure-JAX reference (same math, no Pallas, unpadded)
# ----------------------------------------------------------------------------
def lstm_forward_ref(raw, x):
    H = raw["layers"][0]["w_hh"].shape[1]
    x_tbd = jnp.transpose(x, (1, 0, 2)).astype(jnp.float32)
    for lp in raw["layers"]:
        w_ih, w_hh = lp["w_ih"].T, lp["w_hh"].T
        b = (lp["b_ih"] + lp["b_hh"])[None, :]
        Bsz = x_tbd.shape[1]

        def step(carry, x_t, w_ih=w_ih, w_hh=w_hh, b=b):
            h, c = carry
            gates = x_t @ w_ih + h @ w_hh + b
            i = jax.nn.sigmoid(gates[:, 0 * H:1 * H])
            f = jax.nn.sigmoid(gates[:, 1 * H:2 * H])
            g = jnp.tanh(gates[:, 2 * H:3 * H])
            o = jax.nn.sigmoid(gates[:, 3 * H:4 * H])
            c = f * c + i * g
            h = o * jnp.tanh(c)
            return (h, c), h

        init = (jnp.zeros((Bsz, H), jnp.float32), jnp.zeros((Bsz, H), jnp.float32))
        _, hs = lax.scan(step, init, x_tbd)
        x_tbd = hs
    return x_tbd[-1] @ raw["fc_w"].T + raw["fc_b"][None, :]


# ----------------------------------------------------------------------------
if __name__ == "__main__":
    batch, seq, input_size = 2, 8, 16
    hidden_size, num_layers, num_classes = 32, 2, 10

    key = jax.random.PRNGKey(0)
    key, xk, pk = jax.random.split(key, 3)
    x = jax.random.normal(xk, (batch, seq, input_size), dtype=jnp.float32)

    raw = init_params(pk, input_size, hidden_size, num_layers, num_classes)
    kparams = prepare_kernel_params(raw, hidden_size)

    out = lstm_forward(kparams, x, hidden_size=hidden_size, num_layers=num_layers)
    out = jax.block_until_ready(out)

    ref = lstm_forward_ref(raw, x)
    assert out.shape == (batch, num_classes), out.shape
    assert jnp.allclose(out, ref, atol=1e-5, rtol=1e-5), "mismatch vs reference"

    print("KERNEL_OK")
</pallas_src>

<mosaic_0001>
module attributes {stable_mosaic.version = 11 : i64} {
  func.func @kernel(%arg0: memref<64x128xf32, #tpu.memory_space<vmem>>, %arg1: memref<128x512xf32, #tpu.memory_space<vmem>>, %arg2: memref<128x512xf32, #tpu.memory_space<vmem>>, %arg3: memref<1x512xf32, #tpu.memory_space<vmem>>, %arg4: memref<128x512xf32, #tpu.memory_space<vmem>>, %arg5: memref<128x512xf32, #tpu.memory_space<vmem>>, %arg6: memref<1x512xf32, #tpu.memory_space<vmem>>, %arg7: memref<128x10xf32, #tpu.memory_space<vmem>>, %arg8: memref<1x10xf32, #tpu.memory_space<vmem>>, %arg9: memref<2x10xf32, #tpu.memory_space<vmem>>, %arg10: memref<64x512xf32, #tpu.memory_space<vmem>>, %arg11: memref<64x128xf32, #tpu.memory_space<vmem>>) attributes {dimension_semantics = [], scalar_prefetch = 0 : i64, scratch_operands = 2 : i64, tpu.core_type = #tpu.core_type<tc>} {
    %c0 = arith.constant 0 : index
    %c0_0 = arith.constant 0 : index
    %0 = vector.load %arg0[%c0, %c0_0] : memref<64x128xf32, #tpu.memory_space<vmem>>, vector<64x128xf32>
    %c0_1 = arith.constant 0 : index
    %c0_2 = arith.constant 0 : index
    %1 = vector.load %arg1[%c0_1, %c0_2] : memref<128x512xf32, #tpu.memory_space<vmem>>, vector<128x512xf32>
    %cst = arith.constant dense<0.000000e+00> : vector<64x512xf32>
    %2 = tpu.matmul %0, %1, %cst {dimension_numbers = #tpu.dot_dimension_numbers<[1], [0], [0], [1], [0, 0, 1, 1], [], []>} : vector<64x128xf32>, vector<128x512xf32>, vector<64x512xf32> -> vector<64x512xf32>
    %c0_3 = arith.constant 0 : index
    %c0_4 = arith.constant 0 : index
    %3 = vector.load %arg3[%c0_3, %c0_4] : memref<1x512xf32, #tpu.memory_space<vmem>>, vector<1x512xf32>
    %4 = vector.broadcast %3 : vector<1x512xf32> to vector<64x512xf32>
    %5 = arith.addf %2, %4 : vector<64x512xf32>
    %c0_5 = arith.constant 0 : index
    %c0_6 = arith.constant 0 : index
    %6 = vector.load %arg10[%c0_5, %c0_6] : memref<64x512xf32, #tpu.memory_space<vmem>>, vector<64x512xf32>
    tpu.vector_store %arg10[%c0_5, %c0_6], %5 {strides = array<i32>} : memref<64x512xf32, #tpu.memory_space<vmem>>, vector<64x512xf32>,
    %c0_7 = arith.constant 0 : index
    %c0_8 = arith.constant 0 : index
    %7 = vector.load %arg2[%c0_7, %c0_8] : memref<128x512xf32, #tpu.memory_space<vmem>>, vector<128x512xf32>
    %cst_9 = arith.constant 0.000000e+00 : f32
    %8 = vector.broadcast %cst_9 : f32 to vector<8x128xf32>
    %cst_10 = arith.constant 0.000000e+00 : f32
    %9 = vector.broadcast %cst_10 : f32 to vector<8x128xf32>
    %c0_i32 = arith.constant 0 : i32
    %c8_i32 = arith.constant 8 : i32
    %10 = arith.muli %c0_i32, %c8_i32 : i32
    %11 = tpu.assume_multiple %10, 8 : i32
    %12 = arith.index_cast %11 : i32 to index
    %c0_11 = arith.constant 0 : index
    %13 = vector.load %arg10[%12, %c0_11] : memref<64x512xf32, #tpu.memory_space<vmem>>, vector<8x512xf32>
    %cst_12 = arith.constant dense<0.000000e+00> : vector<8x512xf32>
    %14 = tpu.matmul %8, %7, %cst_12 {dimension_numbers = #tpu.dot_dimension_numbers<[1], [0], [0], [1], [0, 0, 1, 1], [], []>} : vector<8x128xf32>, vector<128x512xf32>, vector<8x512xf32> -> vector<8x512xf32>
    %15 = arith.addf %13, %14 : vector<8x512xf32>
    %16 = vector.extract_strided_slice %15 {offsets = [0, 0], sizes = [8, 128], strides = [1, 1]} : vector<8x512xf32> to vector<8x128xf32>
    %17 = arith.negf %16 : vector<8x128xf32>
    %18 = math.exp %17 : vector<8x128xf32>
    %cst_13 = arith.constant 1.000000e+00 : f32
    %19 = vector.broadcast %cst_13 : f32 to vector<8x128xf32>
    %20 = arith.addf %19, %18 : vector<8x128xf32>
    %21 = arith.divf %19, %20 : vector<8x128xf32>
    %22 = vector.extract_strided_slice %15 {offsets = [0, 128], sizes = [8, 128], strides = [1, 1]} : vector<8x512xf32> to vector<8x128xf32>
    %23 = arith.negf %22 : vector<8x128xf32>
    %24 = math.exp %23 : vector<8x128xf32>
    %cst_14 = arith.constant 1.000000e+00 : f32
    %25 = vector.broadcast %cst_14 : f32 to vector<8x128xf32>
    %26 = arith.addf %25, %24 : vector<8x128xf32>
    %27 = arith.divf %25, %26 : vector<8x128xf32>
    %28 = vector.extract_strided_slice %15 {offsets = [0, 256], sizes = [8, 128], strides = [1, 1]} : vector<8x512xf32> to vector<8x128xf32>
    %29 = math.tanh %28 : vector<8x128xf32>
    %30 = vector.extract_strided_slice %15 {offsets = [0, 384], sizes = [8, 128], strides = [1, 1]} : vector<8x512xf32> to vector<8x128xf32>
    %31 = arith.negf %30 : vector<8x128xf32>
    %32 = math.exp %31 : vector<8x128xf32>
    %cst_15 = arith.constant 1.000000e+00 : f32
    %33 = vector.broadcast %cst_15 : f32 to vector<8x128xf32>
    %34 = arith.addf %33, %32 : vector<8x128xf32>
    %35 = arith.divf %33, %34 : vector<8x128xf32>
    %36 = arith.mulf %27, %9 : vector<8x128xf32>
    %37 = arith.mulf %21, %29 : vector<8x128xf32>
    %38 = arith.addf %36, %37 : vector<8x128xf32>
    %39 = math.tanh %38 : vector<8x128xf32>
    %40 = arith.mulf %35, %39 : vector<8x128xf32>
    %41 = arith.index_cast %11 : i32 to index
    %c0_16 = arith.constant 0 : index
    %42 = vector.load %arg11[%41, %c0_16] : memref<64x128xf32, #tpu.memory_space<vmem>>, vector<8x128xf32>
    tpu.vector_store %arg11[%41, %c0_16], %40 {strides = array<i32>} : memref<64x128xf32, #tpu.memory_space<vmem>>, vector<8x128xf32>,
    %c1_i32 = arith.constant 1 : i32
    %c8_i32_17 = arith.constant 8 : i32
    %43 = arith.muli %c1_i32, %c8_i32_17 : i32
    %44 = tpu.assume_multiple %43, 8 : i32
    %45 = arith.index_cast %44 : i32 to index
    %c0_18 = arith.constant 0 : index
    %46 = vector.load %arg10[%45, %c0_18] : memref<64x512xf32, #tpu.memory_space<vmem>>, vector<8x512xf32>
    %cst_19 = arith.constant dense<0.000000e+00> : vector<8x512xf32>
    %47 = tpu.matmul %40, %7, %cst_19 {dimension_numbers = #tpu.dot_dimension_numbers<[1], [0], [0], [1], [0, 0, 1, 1], [], []>} : vector<8x128xf32>, vector<128x512xf32>, vector<8x512xf32> -> vector<8x512xf32>
    %48 = arith.addf %46, %47 : vector<8x512xf32>
    %49 = vector.extract_strided_slice %48 {offsets = [0, 0], sizes = [8, 128], strides = [1, 1]} : vector<8x512xf32> to vector<8x128xf32>
    %50 = arith.negf %49 : vector<8x128xf32>
    %51 = math.exp %50 : vector<8x128xf32>
    %cst_20 = arith.constant 1.000000e+00 : f32
    %52 = vector.broadcast %cst_20 : f32 to vector<8x128xf32>
    %53 = arith.addf %52, %51 : vector<8x128xf32>
    %54 = arith.divf %52, %53 : vector<8x128xf32>
    %55 = vector.extract_strided_slice %48 {offsets = [0, 128], sizes = [8, 128], strides = [1, 1]} : vector<8x512xf32> to vector<8x128xf32>
    %56 = arith.negf %55 : vector<8x128xf32>
    %57 = math.exp %56 : vector<8x128xf32>
    %cst_21 = arith.constant 1.000000e+00 : f32
    %58 = vector.broadcast %cst_21 : f32 to vector<8x128xf32>
    %59 = arith.addf %58, %57 : vector<8x128xf32>
    %60 = arith.divf %58, %59 : vector<8x128xf32>
    %61 = vector.extract_strided_slice %48 {offsets = [0, 256], sizes = [8, 128], strides = [1, 1]} : vector<8x512xf32> to vector<8x128xf32>
    %62 = math.tanh %61 : vector<8x128xf32>
    %63 = vector.extract_strided_slice %48 {offsets = [0, 384], sizes = [8, 128], strides = [1, 1]} : vector<8x512xf32> to vector<8x128xf32>
    %64 = arith.negf %63 : vector<8x128xf32>
    %65 = math.exp %64 : vector<8x128xf32>
    %cst_22 = arith.constant 1.000000e+00 : f32
    %66 = vector.broadcast %cst_22 : f32 to vector<8x128xf32>
    %67 = arith.addf %66, %65 : vector<8x128xf32>
    %68 = arith.divf %66, %67 : vector<8x128xf32>
    %69 = arith.mulf %60, %38 : vector<8x128xf32>
    %70 = arith.mulf %54, %62 : vector<8x128xf32>
    %71 = arith.addf %69, %70 : vector<8x128xf32>
    %72 = math.tanh %71 : vector<8x128xf32>
    %73 = arith.mulf %68, %72 : vector<8x128xf32>
    %74 = arith.index_cast %44 : i32 to index
    %c0_23 = arith.constant 0 : index
    %75 = vector.load %arg11[%74, %c0_23] : memref<64x128xf32, #tpu.memory_space<vmem>>, vector<8x128xf32>
    tpu.vector_store %arg11[%74, %c0_23], %73 {strides = array<i32>} : memref<64x128xf32, #tpu.memory_space<vmem>>, vector<8x128xf32>,
    %c2_i32 = arith.constant 2 : i32
    %c8_i32_24 = arith.constant 8 : i32
    %76 = arith.muli %c2_i32, %c8_i32_24 : i32
    %77 = tpu.assume_multiple %76, 8 : i32
    %78 = arith.index_cast %77 : i32 to index
    %c0_25 = arith.constant 0 : index
    %79 = vector.load %arg10[%78, %c0_25] : memref<64x512xf32, #tpu.memory_space<vmem>>, vector<8x512xf32>
    %cst_26 = arith.constant dense<0.000000e+00> : vector<8x512xf32>
    %80 = tpu.matmul %73, %7, %cst_26 {dimension_numbers = #tpu.dot_dimension_numbers<[1], [0], [0], [1], [0, 0, 1, 1], [], []>} : vector<8x128xf32>, vector<128x512xf32>, vector<8x512xf32> -> vector<8x512xf32>
    %81 = arith.addf %79, %80 : vector<8x512xf32>
    %82 = vector.extract_strided_slice %81 {offsets = [0, 0], sizes = [8, 128], strides = [1, 1]} : vector<8x512xf32> to vector<8x128xf32>
    %83 = arith.negf %82 : vector<8x128xf32>
    %84 = math.exp %83 : vector<8x128xf32>
    %cst_27 = arith.constant 1.000000e+00 : f32
    %85 = vector.broadcast %cst_27 : f32 to vector<8x128xf32>
    %86 = arith.addf %85, %84 : vector<8x128xf32>
    %87 = arith.divf %85, %86 : vector<8x128xf32>
    %88 = vector.extract_strided_slice %81 {offsets = [0, 128], sizes = [8, 128], strides = [1, 1]} : vector<8x512xf32> to vector<8x128xf32>
    %89 = arith.negf %88 : vector<8x128xf32>
    %90 = math.exp %89 : vector<8x128xf32>
    %cst_28 = arith.constant 1.000000e+00 : f32
    %91 = vector.broadcast %cst_28 : f32 to vector<8x128xf32>
    %92 = arith.addf %91, %90 : vector<8x128xf32>
    %93 = arith.divf %91, %92 : vector<8x128xf32>
    %94 = vector.extract_strided_slice %81 {offsets = [0, 256], sizes = [8, 128], strides = [1, 1]} : vector<8x512xf32> to vector<8x128xf32>
    %95 = math.tanh %94 : vector<8x128xf32>
    %96 = vector.extract_strided_slice %81 {offsets = [0, 384], sizes = [8, 128], strides = [1, 1]} : vector<8x512xf32> to vector<8x128xf32>
    %97 = arith.negf %96 : vector<8x128xf32>
    %98 = math.exp %97 : vector<8x128xf32>
    %cst_29 = arith.constant 1.000000e+00 : f32
    %99 = vector.broadcast %cst_29 : f32 to vector<8x128xf32>
    %100 = arith.addf %99, %98 : vector<8x128xf32>
    %101 = arith.divf %99, %100 : vector<8x128xf32>
    %102 = arith.mulf %93, %71 : vector<8x128xf32>
    %103 = arith.mulf %87, %95 : vector<8x128xf32>
    %104 = arith.addf %102, %103 : vector<8x128xf32>
    %105 = math.tanh %104 : vector<8x128xf32>
    %106 = arith.mulf %101, %105 : vector<8x128xf32>
    %107 = arith.index_cast %77 : i32 to index
    %c0_30 = arith.constant 0 : index
    %108 = vector.load %arg11[%107, %c0_30] : memref<64x128xf32, #tpu.memory_space<vmem>>, vector<8x128xf32>
    tpu.vector_store %arg11[%107, %c0_30], %106 {strides = array<i32>} : memref<64x128xf32, #tpu.memory_space<vmem>>, vector<8x128xf32>,
    %c3_i32 = arith.constant 3 : i32
    %c8_i32_31 = arith.constant 8 : i32
    %109 = arith.muli %c3_i32, %c8_i32_31 : i32
    %110 = tpu.assume_multiple %109, 8 : i32
    %111 = arith.index_cast %110 : i32 to index
    %c0_32 = arith.constant 0 : index
    %112 = vector.load %arg10[%111, %c0_32] : memref<64x512xf32, #tpu.memory_space<vmem>>, vector<8x512xf32>
    %cst_33 = arith.constant dense<0.000000e+00> : vector<8x512xf32>
    %113 = tpu.matmul %106, %7, %cst_33 {dimension_numbers = #tpu.dot_dimension_numbers<[1], [0], [0], [1], [0, 0, 1, 1], [], []>} : vector<8x128xf32>, vector<128x512xf32>, vector<8x512xf32> -> vector<8x512xf32>
    %114 = arith.addf %112, %113 : vector<8x512xf32>
    %115 = vector.extract_strided_slice %114 {offsets = [0, 0], sizes = [8, 128], strides = [1, 1]} : vector<8x512xf32> to vector<8x128xf32>
    %116 = arith.negf %115 : vector<8x128xf32>
    %117 = math.exp %116 : vector<8x128xf32>
    %cst_34 = arith.constant 1.000000e+00 : f32
    %118 = vector.broadcast %cst_34 : f32 to vector<8x128xf32>
    %119 = arith.addf %118, %117 : vector<8x128xf32>
    %120 = arith.divf %118, %119 : vector<8x128xf32>
    %121 = vector.extract_strided_slice %114 {offsets = [0, 128], sizes = [8, 128], strides = [1, 1]} : vector<8x512xf32> to vector<8x128xf32>
    %122 = arith.negf %121 : vector<8x128xf32>
    %123 = math.exp %122 : vector<8x128xf32>
    %cst_35 = arith.constant 1.000000e+00 : f32
    %124 = vector.broadcast %cst_35 : f32 to vector<8x128xf32>
    %125 = arith.addf %124, %123 : vector<8x128xf32>
    %126 = arith.divf %124, %125 : vector<8x128xf32>
    %127 = vector.extract_strided_slice %114 {offsets = [0, 256], sizes = [8, 128], strides = [1, 1]} : vector<8x512xf32> to vector<8x128xf32>
    %128 = math.tanh %127 : vector<8x128xf32>
    %129 = vector.extract_strided_slice %114 {offsets = [0, 384], sizes = [8, 128], strides = [1, 1]} : vector<8x512xf32> to vector<8x128xf32>
    %130 = arith.negf %129 : vector<8x128xf32>
    %131 = math.exp %130 : vector<8x128xf32>
    %cst_36 = arith.constant 1.000000e+00 : f32
    %132 = vector.broadcast %cst_36 : f32 to vector<8x128xf32>
    %133 = arith.addf %132, %131 : vector<8x128xf32>
    %134 = arith.divf %132, %133 : vector<8x128xf32>
    %135 = arith.mulf %126, %104 : vector<8x128xf32>
    %136 = arith.mulf %120, %128 : vector<8x128xf32>
    %137 = arith.addf %135, %136 : vector<8x128xf32>
    %138 = math.tanh %137 : vector<8x128xf32>
    %139 = arith.mulf %134, %138 : vector<8x128xf32>
    %140 = arith.index_cast %110 : i32 to index
    %c0_37 = arith.constant 0 : index
    %141 = vector.load %arg11[%140, %c0_37] : memref<64x128xf32, #tpu.memory_space<vmem>>, vector<8x128xf32>
    tpu.vector_store %arg11[%140, %c0_37], %139 {strides = array<i32>} : memref<64x128xf32, #tpu.memory_space<vmem>>, vector<8x128xf32>,
    %c4_i32 = arith.constant 4 : i32
    %c8_i32_38 = arith.constant 8 : i32
    %142 = arith.muli %c4_i32, %c8_i32_38 : i32
    %143 = tpu.assume_multiple %142, 8 : i32
    %144 = arith.index_cast %143 : i32 to index
    %c0_39 = arith.constant 0 : index
    %145 = vector.load %arg10[%144, %c0_39] : memref<64x512xf32, #tpu.memory_space<vmem>>, vector<8x512xf32>
    %cst_40 = arith.constant dense<0.000000e+00> : vector<8x512xf32>
    %146 = tpu.matmul %139, %7, %cst_40 {dimension_numbers = #tpu.dot_dimension_numbers<[1], [0], [0], [1], [0, 0, 1, 1], [], []>} : vector<8x128xf32>, vector<128x512xf32>, vector<8x512xf32> -> vector<8x512xf32>
    %147 = arith.addf %145, %146 : vector<8x512xf32>
    %148 = vector.extract_strided_slice %147 {offsets = [0, 0], sizes = [8, 128], strides = [1, 1]} : vector<8x512xf32> to vector<8x128xf32>
    %149 = arith.negf %148 : vector<8x128xf32>
    %150 = math.exp %149 : vector<8x128xf32>
    %cst_41 = arith.constant 1.000000e+00 : f32
    %151 = vector.broadcast %cst_41 : f32 to vector<8x128xf32>
    %152 = arith.addf %151, %150 : vector<8x128xf32>
    %153 = arith.divf %151, %152 : vector<8x128xf32>
    %154 = vector.extract_strided_slice %147 {offsets = [0, 128], sizes = [8, 128], strides = [1, 1]} : vector<8x512xf32> to vector<8x128xf32>
    %155 = arith.negf %154 : vector<8x128xf32>
    %156 = math.exp %155 : vector<8x128xf32>
    %cst_42 = arith.constant 1.000000e+00 : f32
    %157 = vector.broadcast %cst_42 : f32 to vector<8x128xf32>
    %158 = arith.addf %157, %156 : vector<8x128xf32>
    %159 = arith.divf %157, %158 : vector<8x128xf32>
    %160 = vector.extract_strided_slice %147 {offsets = [0, 256], sizes = [8, 128], strides = [1, 1]} : vector<8x512xf32> to vector<8x128xf32>
    %161 = math.tanh %160 : vector<8x128xf32>
    %162 = vector.extract_strided_slice %147 {offsets = [0, 384], sizes = [8, 128], strides = [1, 1]} : vector<8x512xf32> to vector<8x128xf32>
    %163 = arith.negf %162 : vector<8x128xf32>
    %164 = math.exp %163 : vector<8x128xf32>
    %cst_43 = arith.constant 1.000000e+00 : f32
    %165 = vector.broadcast %cst_43 : f32 to vector<8x128xf32>
    %166 = arith.addf %165, %164 : vector<8x128xf32>
    %167 = arith.divf %165, %166 : vector<8x128xf32>
    %168 = arith.mulf %159, %137 : vector<8x128xf32>
    %169 = arith.mulf %153, %161 : vector<8x128xf32>
    %170 = arith.addf %168, %169 : vector<8x128xf32>
    %171 = math.tanh %170 : vector<8x128xf32>
    %172 = arith.mulf %167, %171 : vector<8x128xf32>
    %173 = arith.index_cast %143 : i32 to index
    %c0_44 = arith.constant 0 : index
    %174 = vector.load %arg11[%173, %c0_44] : memref<64x128xf32, #tpu.memory_space<vmem>>, vector<8x128xf32>
    tpu.vector_store %arg11[%173, %c0_44], %172 {strides = array<i32>} : memref<64x128xf32, #tpu.memory_space<vmem>>, vector<8x128xf32>,
    %c5_i32 = arith.constant 5 : i32
    %c8_i32_45 = arith.constant 8 : i32
    %175 = arith.muli %c5_i32, %c8_i32_45 : i32
    %176 = tpu.assume_multiple %175, 8 : i32
    %177 = arith.index_cast %176 : i32 to index
    %c0_46 = arith.constant 0 : index
    %178 = vector.load %arg10[%177, %c0_46] : memref<64x512xf32, #tpu.memory_space<vmem>>, vector<8x512xf32>
    %cst_47 = arith.constant dense<0.000000e+00> : vector<8x512xf32>
    %179 = tpu.matmul %172, %7, %cst_47 {dimension_numbers = #tpu.dot_dimension_numbers<[1], [0], [0], [1], [0, 0, 1, 1], [], []>} : vector<8x128xf32>, vector<128x512xf32>, vector<8x512xf32> -> vector<8x512xf32>
    %180 = arith.addf %178, %179 : vector<8x512xf32>
    %181 = vector.extract_strided_slice %180 {offsets = [0, 0], sizes = [8, 128], strides = [1, 1]} : vector<8x512xf32> to vector<8x128xf32>
    %182 = arith.negf %181 : vector<8x128xf32>
    %183 = math.exp %182 : vector<8x128xf32>
    %cst_48 = arith.constant 1.000000e+00 : f32
    %184 = vector.broadcast %cst_48 : f32 to vector<8x128xf32>
    %185 = arith.addf %184, %183 : vector<8x128xf32>
    %186 = arith.divf %184, %185 : vector<8x128xf32>
    %187 = vector.extract_strided_slice %180 {offsets = [0, 128], sizes = [8, 128], strides = [1, 1]} : vector<8x512xf32> to vector<8x128xf32>
    %188 = arith.negf %187 : vector<8x128xf32>
    %189 = math.exp %188 : vector<8x128xf32>
    %cst_49 = arith.constant 1.000000e+00 : f32
    %190 = vector.broadcast %cst_49 : f32 to vector<8x128xf32>
    %191 = arith.addf %190, %189 : vector<8x128xf32>
    %192 = arith.divf %190, %191 : vector<8x128xf32>
    %193 = vector.extract_strided_slice %180 {offsets = [0, 256], sizes = [8, 128], strides = [1, 1]} : vector<8x512xf32> to vector<8x128xf32>
    %194 = math.tanh %193 : vector<8x128xf32>
    %195 = vector.extract_strided_slice %180 {offsets = [0, 384], sizes = [8, 128], strides = [1, 1]} : vector<8x512xf32> to vector<8x128xf32>
    %196 = arith.negf %195 : vector<8x128xf32>
    %197 = math.exp %196 : vector<8x128xf32>
    %cst_50 = arith.constant 1.000000e+00 : f32
    %198 = vector.broadcast %cst_50 : f32 to vector<8x128xf32>
    %199 = arith.addf %198, %197 : vector<8x128xf32>
    %200 = arith.divf %198, %199 : vector<8x128xf32>
    %201 = arith.mulf %192, %170 : vector<8x128xf32>
    %202 = arith.mulf %186, %194 : vector<8x128xf32>
    %203 = arith.addf %201, %202 : vector<8x128xf32>
    %204 = math.tanh %203 : vector<8x128xf32>
    %205 = arith.mulf %200, %204 : vector<8x128xf32>
    %206 = arith.index_cast %176 : i32 to index
    %c0_51 = arith.constant 0 : index
    %207 = vector.load %arg11[%206, %c0_51] : memref<64x128xf32, #tpu.memory_space<vmem>>, vector<8x128xf32>
    tpu.vector_store %arg11[%206, %c0_51], %205 {strides = array<i32>} : memref<64x128xf32, #tpu.memory_space<vmem>>, vector<8x128xf32>,
    %c6_i32 = arith.constant 6 : i32
    %c8_i32_52 = arith.constant 8 : i32
    %208 = arith.muli %c6_i32, %c8_i32_52 : i32
    %209 = tpu.assume_multiple %208, 8 : i32
    %210 = arith.index_cast %209 : i32 to index
    %c0_53 = arith.constant 0 : index
    %211 = vector.load %arg10[%210, %c0_53] : memref<64x512xf32, #tpu.memory_space<vmem>>, vector<8x512xf32>
    %cst_54 = arith.constant dense<0.000000e+00> : vector<8x512xf32>
    %212 = tpu.matmul %205, %7, %cst_54 {dimension_numbers = #tpu.dot_dimension_numbers<[1], [0], [0], [1], [0, 0, 1, 1], [], []>} : vector<8x128xf32>, vector<128x512xf32>, vector<8x512xf32> -> vector<8x512xf32>
    %213 = arith.addf %211, %212 : vector<8x512xf32>
    %214 = vector.extract_strided_slice %213 {offsets = [0, 0], sizes = [8, 128], strides = [1, 1]} : vector<8x512xf32> to vector<8x128xf32>
    %215 = arith.negf %214 : vector<8x128xf32>
    %216 = math.exp %215 : vector<8x128xf32>
    %cst_55 = arith.constant 1.000000e+00 : f32
    %217 = vector.broadcast %cst_55 : f32 to vector<8x128xf32>
    %218 = arith.addf %217, %216 : vector<8x128xf32>
    %219 = arith.divf %217, %218 : vector<8x128xf32>
    %220 = vector.extract_strided_slice %213 {offsets = [0, 128], sizes = [8, 128], strides = [1, 1]} : vector<8x512xf32> to vector<8x128xf32>
    %221 = arith.negf %220 : vector<8x128xf32>
    %222 = math.exp %221 : vector<8x128xf32>
    %cst_56 = arith.constant 1.000000e+00 : f32
    %223 = vector.broadcast %cst_56 : f32 to vector<8x128xf32>
    %224 = arith.addf %223, %222 : vector<8x128xf32>
    %225 = arith.divf %223, %224 : vector<8x128xf32>
    %226 = vector.extract_strided_slice %213 {offsets = [0, 256], sizes = [8, 128], strides = [1, 1]} : vector<8x512xf32> to vector<8x128xf32>
    %227 = math.tanh %226 : vector<8x128xf32>
    %228 = vector.extract_strided_slice %213 {offsets = [0, 384], sizes = [8, 128], strides = [1, 1]} : vector<8x512xf32> to vector<8x128xf32>
    %229 = arith.negf %228 : vector<8x128xf32>
    %230 = math.exp %229 : vector<8x128xf32>
    %cst_57 = arith.constant 1.000000e+00 : f32
    %231 = vector.broadcast %cst_57 : f32 to vector<8x128xf32>
    %232 = arith.addf %231, %230 : vector<8x128xf32>
    %233 = arith.divf %231, %232 : vector<8x128xf32>
    %234 = arith.mulf %225, %203 : vector<8x128xf32>
    %235 = arith.mulf %219, %227 : vector<8x128xf32>
    %236 = arith.addf %234, %235 : vector<8x128xf32>
    %237 = math.tanh %236 : vector<8x128xf32>
    %238 = arith.mulf %233, %237 : vector<8x128xf32>
    %239 = arith.index_cast %209 : i32 to index
    %c0_58 = arith.constant 0 : index
    %240 = vector.load %arg11[%239, %c0_58] : memref<64x128xf32, #tpu.memory_space<vmem>>, vector<8x128xf32>
    tpu.vector_store %arg11[%239, %c0_58], %238 {strides = array<i32>} : memref<64x128xf32, #tpu.memory_space<vmem>>, vector<8x128xf32>,
    %c7_i32 = arith.constant 7 : i32
    %c8_i32_59 = arith.constant 8 : i32
    %241 = arith.muli %c7_i32, %c8_i32_59 : i32
    %242 = tpu.assume_multiple %241, 8 : i32
    %243 = arith.index_cast %242 : i32 to index
    %c0_60 = arith.constant 0 : index
    %244 = vector.load %arg10[%243, %c0_60] : memref<64x512xf32, #tpu.memory_space<vmem>>, vector<8x512xf32>
    %cst_61 = arith.constant dense<0.000000e+00> : vector<8x512xf32>
    %245 = tpu.matmul %238, %7, %cst_61 {dimension_numbers = #tpu.dot_dimension_numbers<[1], [0], [0], [1], [0, 0, 1, 1], [], []>} : vector<8x128xf32>, vector<128x512xf32>, vector<8x512xf32> -> vector<8x512xf32>
    %246 = arith.addf %244, %245 : vector<8x512xf32>
    %247 = vector.extract_strided_slice %246 {offsets = [0, 0], sizes = [8, 128], strides = [1, 1]} : vector<8x512xf32> to vector<8x128xf32>
    %248 = arith.negf %247 : vector<8x128xf32>
    %249 = math.exp %248 : vector<8x128xf32>
    %cst_62 = arith.constant 1.000000e+00 : f32
    %250 = vector.broadcast %cst_62 : f32 to vector<8x128xf32>
    %251 = arith.addf %250, %249 : vector<8x128xf32>
    %252 = arith.divf %250, %251 : vector<8x128xf32>
    %253 = vector.extract_strided_slice %246 {offsets = [0, 128], sizes = [8, 128], strides = [1, 1]} : vector<8x512xf32> to vector<8x128xf32>
    %254 = arith.negf %253 : vector<8x128xf32>
    %255 = math.exp %254 : vector<8x128xf32>
    %cst_63 = arith.constant 1.000000e+00 : f32
    %256 = vector.broadcast %cst_63 : f32 to vector<8x128xf32>
    %257 = arith.addf %256, %255 : vector<8x128xf32>
    %258 = arith.divf %256, %257 : vector<8x128xf32>
    %259 = vector.extract_strided_slice %246 {offsets = [0, 256], sizes = [8, 128], strides = [1, 1]} : vector<8x512xf32> to vector<8x128xf32>
    %260 = math.tanh %259 : vector<8x128xf32>
    %261 = vector.extract_strided_slice %246 {offsets = [0, 384], sizes = [8, 128], strides = [1, 1]} : vector<8x512xf32> to vector<8x128xf32>
    %262 = arith.negf %261 : vector<8x128xf32>
    %263 = math.exp %262 : vector<8x128xf32>
    %cst_64 = arith.constant 1.000000e+00 : f32
    %264 = vector.broadcast %cst_64 : f32 to vector<8x128xf32>
    %265 = arith.addf %264, %263 : vector<8x128xf32>
    %266 = arith.divf %264, %265 : vector<8x128xf32>
    %267 = arith.mulf %258, %236 : vector<8x128xf32>
    %268 = arith.mulf %252, %260 : vector<8x128xf32>
    %269 = arith.addf %267, %268 : vector<8x128xf32>
    %270 = math.tanh %269 : vector<8x128xf32>
    %271 = arith.mulf %266, %270 : vector<8x128xf32>
    %272 = arith.index_cast %242 : i32 to index
    %c0_65 = arith.constant 0 : index
    %273 = vector.load %arg11[%272, %c0_65] : memref<64x128xf32, #tpu.memory_space<vmem>>, vector<8x128xf32>
    tpu.vector_store %arg11[%272, %c0_65], %271 {strides = array<i32>} : memref<64x128xf32, #tpu.memory_space<vmem>>, vector<8x128xf32>,
    %c8_i32_66 = arith.constant 8 : i32
    %c0_67 = arith.constant 0 : index
    %c0_68 = arith.constant 0 : index
    %274 = vector.load %arg11[%c0_67, %c0_68] : memref<64x128xf32, #tpu.memory_space<vmem>>, vector<64x128xf32>
    %c0_69 = arith.constant 0 : index
    %c0_70 = arith.constant 0 : index
    %275 = vector.load %arg4[%c0_69, %c0_70] : memref<128x512xf32, #tpu.memory_space<vmem>>, vector<128x512xf32>
    %cst_71 = arith.constant dense<0.000000e+00> : vector<64x512xf32>
    %276 = tpu.matmul %274, %275, %cst_71 {dimension_numbers = #tpu.dot_dimension_numbers<[1], [0], [0], [1], [0, 0, 1, 1], [], []>} : vector<64x128xf32>, vector<128x512xf32>, vector<64x512xf32> -> vector<64x512xf32>
    %c0_72 = arith.constant 0 : index
    %c0_73 = arith.constant 0 : index
    %277 = vector.load %arg6[%c0_72, %c0_73] : memref<1x512xf32, #tpu.memory_space<vmem>>, vector<1x512xf32>
    %278 = vector.broadcast %277 : vector<1x512xf32> to vector<64x512xf32>
    %279 = arith.addf %276, %278 : vector<64x512xf32>
    %c0_74 = arith.constant 0 : index
    %c0_75 = arith.constant 0 : index
    %280 = vector.load %arg10[%c0_74, %c0_75] : memref<64x512xf32, #tpu.memory_space<vmem>>, vector<64x512xf32>
    tpu.vector_store %arg10[%c0_74, %c0_75], %279 {strides = array<i32>} : memref<64x512xf32, #tpu.memory_space<vmem>>, vector<64x512xf32>,
    %c0_76 = arith.constant 0 : index
    %c0_77 = arith.constant 0 : index
    %281 = vector.load %arg5[%c0_76, %c0_77] : memref<128x512xf32, #tpu.memory_space<vmem>>, vector<128x512xf32>
    %cst_78 = arith.constant 0.000000e+00 : f32
    %282 = vector.broadcast %cst_78 : f32 to vector<8x128xf32>
    %cst_79 = arith.constant 0.000000e+00 : f32
    %283 = vector.broadcast %cst_79 : f32 to vector<8x128xf32>
    %c0_i32_80 = arith.constant 0 : i32
    %c8_i32_81 = arith.constant 8 : i32
    %284 = arith.muli %c0_i32_80, %c8_i32_81 : i32
    %285 = tpu.assume_multiple %284, 8 : i32
    %286 = arith.index_cast %285 : i32 to index
    %c0_82 = arith.constant 0 : index
    %287 = vector.load %arg10[%286, %c0_82] : memref<64x512xf32, #tpu.memory_space<vmem>>, vector<8x512xf32>
    %cst_83 = arith.constant dense<0.000000e+00> : vector<8x512xf32>
    %288 = tpu.matmul %282, %281, %cst_83 {dimension_numbers = #tpu.dot_dimension_numbers<[1], [0], [0], [1], [0, 0, 1, 1], [], []>} : vector<8x128xf32>, vector<128x512xf32>, vector<8x512xf32> -> vector<8x512xf32>
    %289 = arith.addf %287, %288 : vector<8x512xf32>
    %290 = vector.extract_strided_slice %289 {offsets = [0, 0], sizes = [8, 128], strides = [1, 1]} : vector<8x512xf32> to vector<8x128xf32>
    %291 = arith.negf %290 : vector<8x128xf32>
    %292 = math.exp %291 : vector<8x128xf32>
    %cst_84 = arith.constant 1.000000e+00 : f32
    %293 = vector.broadcast %cst_84 : f32 to vector<8x128xf32>
    %294 = arith.addf %293, %292 : vector<8x128xf32>
    %295 = arith.divf %293, %294 : vector<8x128xf32>
    %296 = vector.extract_strided_slice %289 {offsets = [0, 128], sizes = [8, 128], strides = [1, 1]} : vector<8x512xf32> to vector<8x128xf32>
    %297 = arith.negf %296 : vector<8x128xf32>
    %298 = math.exp %297 : vector<8x128xf32>
    %cst_85 = arith.constant 1.000000e+00 : f32
    %299 = vector.broadcast %cst_85 : f32 to vector<8x128xf32>
    %300 = arith.addf %299, %298 : vector<8x128xf32>
    %301 = arith.divf %299, %300 : vector<8x128xf32>
    %302 = vector.extract_strided_slice %289 {offsets = [0, 256], sizes = [8, 128], strides = [1, 1]} : vector<8x512xf32> to vector<8x128xf32>
    %303 = math.tanh %302 : vector<8x128xf32>
    %304 = vector.extract_strided_slice %289 {offsets = [0, 384], sizes = [8, 128], strides = [1, 1]} : vector<8x512xf32> to vector<8x128xf32>
    %305 = arith.negf %304 : vector<8x128xf32>
    %306 = math.exp %305 : vector<8x128xf32>
    %cst_86 = arith.constant 1.000000e+00 : f32
    %307 = vector.broadcast %cst_86 : f32 to vector<8x128xf32>
    %308 = arith.addf %307, %306 : vector<8x128xf32>
    %309 = arith.divf %307, %308 : vector<8x128xf32>
    %310 = arith.mulf %301, %283 : vector<8x128xf32>
    %311 = arith.mulf %295, %303 : vector<8x128xf32>
    %312 = arith.addf %310, %311 : vector<8x128xf32>
    %313 = math.tanh %312 : vector<8x128xf32>
    %314 = arith.mulf %309, %313 : vector<8x128xf32>
    %c1_i32_87 = arith.constant 1 : i32
    %c8_i32_88 = arith.constant 8 : i32
    %315 = arith.muli %c1_i32_87, %c8_i32_88 : i32
    %316 = tpu.assume_multiple %315, 8 : i32
    %317 = arith.index_cast %316 : i32 to index
    %c0_89 = arith.constant 0 : index
    %318 = vector.load %arg10[%317, %c0_89] : memref<64x512xf32, #tpu.memory_space<vmem>>, vector<8x512xf32>
    %cst_90 = arith.constant dense<0.000000e+00> : vector<8x512xf32>
    %319 = tpu.matmul %314, %281, %cst_90 {dimension_numbers = #tpu.dot_dimension_numbers<[1], [0], [0], [1], [0, 0, 1, 1], [], []>} : vector<8x128xf32>, vector<128x512xf32>, vector<8x512xf32> -> vector<8x512xf32>
    %320 = arith.addf %318, %319 : vector<8x512xf32>
    %321 = vector.extract_strided_slice %320 {offsets = [0, 0], sizes = [8, 128], strides = [1, 1]} : vector<8x512xf32> to vector<8x128xf32>
    %322 = arith.negf %321 : vector<8x128xf32>
    %323 = math.exp %322 : vector<8x128xf32>
    %cst_91 = arith.constant 1.000000e+00 : f32
    %324 = vector.broadcast %cst_91 : f32 to vector<8x128xf32>
    %325 = arith.addf %324, %323 : vector<8x128xf32>
    %326 = arith.divf %324, %325 : vector<8x128xf32>
    %327 = vector.extract_strided_slice %320 {offsets = [0, 128], sizes = [8, 128], strides = [1, 1]} : vector<8x512xf32> to vector<8x128xf32>
    %328 = arith.negf %327 : vector<8x128xf32>
    %329 = math.exp %328 : vector<8x128xf32>
    %cst_92 = arith.constant 1.000000e+00 : f32
    %330 = vector.broadcast %cst_92 : f32 to vector<8x128xf32>
    %331 = arith.addf %330, %329 : vector<8x128xf32>
    %332 = arith.divf %330, %331 : vector<8x128xf32>
    %333 = vector.extract_strided_slice %320 {offsets = [0, 256], sizes = [8, 128], strides = [1, 1]} : vector<8x512xf32> to vector<8x128xf32>
    %334 = math.tanh %333 : vector<8x128xf32>
    %335 = vector.extract_strided_slice %320 {offsets = [0, 384], sizes = [8, 128], strides = [1, 1]} : vector<8x512xf32> to vector<8x128xf32>
    %336 = arith.negf %335 : vector<8x128xf32>
    %337 = math.exp %336 : vector<8x128xf32>
    %cst_93 = arith.constant 1.000000e+00 : f32
    %338 = vector.broadcast %cst_93 : f32 to vector<8x128xf32>
    %339 = arith.addf %338, %337 : vector<8x128xf32>
    %340 = arith.divf %338, %339 : vector<8x128xf32>
    %341 = arith.mulf %332, %312 : vector<8x128xf32>
    %342 = arith.mulf %326, %334 : vector<8x128xf32>
    %343 = arith.addf %341, %342 : vector<8x128xf32>
    %344 = math.tanh %343 : vector<8x128xf32>
    %345 = arith.mulf %340, %344 : vector<8x128xf32>
    %c2_i32_94 = arith.constant 2 : i32
    %c8_i32_95 = arith.constant 8 : i32
    %346 = arith.muli %c2_i32_94, %c8_i32_95 : i32
    %347 = tpu.assume_multiple %346, 8 : i32
    %348 = arith.index_cast %347 : i32 to index
    %c0_96 = arith.constant 0 : index
    %349 = vector.load %arg10[%348, %c0_96] : memref<64x512xf32, #tpu.memory_space<vmem>>, vector<8x512xf32>
    %cst_97 = arith.constant dense<0.000000e+00> : vector<8x512xf32>
    %350 = tpu.matmul %345, %281, %cst_97 {dimension_numbers = #tpu.dot_dimension_numbers<[1], [0], [0], [1], [0, 0, 1, 1], [], []>} : vector<8x128xf32>, vector<128x512xf32>, vector<8x512xf32> -> vector<8x512xf32>
    %351 = arith.addf %349, %350 : vector<8x512xf32>
    %352 = vector.extract_strided_slice %351 {offsets = [0, 0], sizes = [8, 128], strides = [1, 1]} : vector<8x512xf32> to vector<8x128xf32>
    %353 = arith.negf %352 : vector<8x128xf32>
    %354 = math.exp %353 : vector<8x128xf32>
    %cst_98 = arith.constant 1.000000e+00 : f32
    %355 = vector.broadcast %cst_98 : f32 to vector<8x128xf32>
    %356 = arith.addf %355, %354 : vector<8x128xf32>
    %357 = arith.divf %355, %356 : vector<8x128xf32>
    %358 = vector.extract_strided_slice %351 {offsets = [0, 128], sizes = [8, 128], strides = [1, 1]} : vector<8x512xf32> to vector<8x128xf32>
    %359 = arith.negf %358 : vector<8x128xf32>
    %360 = math.exp %359 : vector<8x128xf32>
    %cst_99 = arith.constant 1.000000e+00 : f32
    %361 = vector.broadcast %cst_99 : f32 to vector<8x128xf32>
    %362 = arith.addf %361, %360 : vector<8x128xf32>
    %363 = arith.divf %361, %362 : vector<8x128xf32>
    %364 = vector.extract_strided_slice %351 {offsets = [0, 256], sizes = [8, 128], strides = [1, 1]} : vector<8x512xf32> to vector<8x128xf32>
    %365 = math.tanh %364 : vector<8x128xf32>
    %366 = vector.extract_strided_slice %351 {offsets = [0, 384], sizes = [8, 128], strides = [1, 1]} : vector<8x512xf32> to vector<8x128xf32>
    %367 = arith.negf %366 : vector<8x128xf32>
    %368 = math.exp %367 : vector<8x128xf32>
    %cst_100 = arith.constant 1.000000e+00 : f32
    %369 = vector.broadcast %cst_100 : f32 to vector<8x128xf32>
    %370 = arith.addf %369, %368 : vector<8x128xf32>
    %371 = arith.divf %369, %370 : vector<8x128xf32>
    %372 = arith.mulf %363, %343 : vector<8x128xf32>
    %373 = arith.mulf %357, %365 : vector<8x128xf32>
    %374 = arith.addf %372, %373 : vector<8x128xf32>
    %375 = math.tanh %374 : vector<8x128xf32>
    %376 = arith.mulf %371, %375 : vector<8x128xf32>
    %c3_i32_101 = arith.constant 3 : i32
    %c8_i32_102 = arith.constant 8 : i32
    %377 = arith.muli %c3_i32_101, %c8_i32_102 : i32
    %378 = tpu.assume_multiple %377, 8 : i32
    %379 = arith.index_cast %378 : i32 to index
    %c0_103 = arith.constant 0 : index
    %380 = vector.load %arg10[%379, %c0_103] : memref<64x512xf32, #tpu.memory_space<vmem>>, vector<8x512xf32>
    %cst_104 = arith.constant dense<0.000000e+00> : vector<8x512xf32>
    %381 = tpu.matmul %376, %281, %cst_104 {dimension_numbers = #tpu.dot_dimension_numbers<[1], [0], [0], [1], [0, 0, 1, 1], [], []>} : vector<8x128xf32>, vector<128x512xf32>, vector<8x512xf32> -> vector<8x512xf32>
    %382 = arith.addf %380, %381 : vector<8x512xf32>
    %383 = vector.extract_strided_slice %382 {offsets = [0, 0], sizes = [8, 128], strides = [1, 1]} : vector<8x512xf32> to vector<8x128xf32>
    %384 = arith.negf %383 : vector<8x128xf32>
    %385 = math.exp %384 : vector<8x128xf32>
    %cst_105 = arith.constant 1.000000e+00 : f32
    %386 = vector.broadcast %cst_105 : f32 to vector<8x128xf32>
    %387 = arith.addf %386, %385 : vector<8x128xf32>
    %388 = arith.divf %386, %387 : vector<8x128xf32>
    %389 = vector.extract_strided_slice %382 {offsets = [0, 128], sizes = [8, 128], strides = [1, 1]} : vector<8x512xf32> to vector<8x128xf32>
    %390 = arith.negf %389 : vector<8x128xf32>
    %391 = math.exp %390 : vector<8x128xf32>
    %cst_106 = arith.constant 1.000000e+00 : f32
    %392 = vector.broadcast %cst_106 : f32 to vector<8x128xf32>
    %393 = arith.addf %392, %391 : vector<8x128xf32>
    %394 = arith.divf %392, %393 : vector<8x128xf32>
    %395 = vector.extract_strided_slice %382 {offsets = [0, 256], sizes = [8, 128], strides = [1, 1]} : vector<8x512xf32> to vector<8x128xf32>
    %396 = math.tanh %395 : vector<8x128xf32>
    %397 = vector.extract_strided_slice %382 {offsets = [0, 384], sizes = [8, 128], strides = [1, 1]} : vector<8x512xf32> to vector<8x128xf32>
    %398 = arith.negf %397 : vector<8x128xf32>
    %399 = math.exp %398 : vector<8x128xf32>
    %cst_107 = arith.constant 1.000000e+00 : f32
    %400 = vector.broadcast %cst_107 : f32 to vector<8x128xf32>
    %401 = arith.addf %400, %399 : vector<8x128xf32>
    %402 = arith.divf %400, %401 : vector<8x128xf32>
    %403 = arith.mulf %394, %374 : vector<8x128xf32>
    %404 = arith.mulf %388, %396 : vector<8x128xf32>
    %405 = arith.addf %403, %404 : vector<8x128xf32>
    %406 = math.tanh %405 : vector<8x128xf32>
    %407 = arith.mulf %402, %406 : vector<8x128xf32>
    %c4_i32_108 = arith.constant 4 : i32
    %c8_i32_109 = arith.constant 8 : i32
    %408 = arith.muli %c4_i32_108, %c8_i32_109 : i32
    %409 = tpu.assume_multiple %408, 8 : i32
    %410 = arith.index_cast %409 : i32 to index
    %c0_110 = arith.constant 0 : index
    %411 = vector.load %arg10[%410, %c0_110] : memref<64x512xf32, #tpu.memory_space<vmem>>, vector<8x512xf32>
    %cst_111 = arith.constant dense<0.000000e+00> : vector<8x512xf32>
    %412 = tpu.matmul %407, %281, %cst_111 {dimension_numbers = #tpu.dot_dimension_numbers<[1], [0], [0], [1], [0, 0, 1, 1], [], []>} : vector<8x128xf32>, vector<128x512xf32>, vector<8x512xf32> -> vector<8x512xf32>
    %413 = arith.addf %411, %412 : vector<8x512xf32>
    %414 = vector.extract_strided_slice %413 {offsets = [0, 0], sizes = [8, 128], strides = [1, 1]} : vector<8x512xf32> to vector<8x128xf32>
    %415 = arith.negf %414 : vector<8x128xf32>
    %416 = math.exp %415 : vector<8x128xf32>
    %cst_112 = arith.constant 1.000000e+00 : f32
    %417 = vector.broadcast %cst_112 : f32 to vector<8x128xf32>
    %418 = arith.addf %417, %416 : vector<8x128xf32>
    %419 = arith.divf %417, %418 : vector<8x128xf32>
    %420 = vector.extract_strided_slice %413 {offsets = [0, 128], sizes = [8, 128], strides = [1, 1]} : vector<8x512xf32> to vector<8x128xf32>
    %421 = arith.negf %420 : vector<8x128xf32>
    %422 = math.exp %421 : vector<8x128xf32>
    %cst_113 = arith.constant 1.000000e+00 : f32
    %423 = vector.broadcast %cst_113 : f32 to vector<8x128xf32>
    %424 = arith.addf %423, %422 : vector<8x128xf32>
    %425 = arith.divf %423, %424 : vector<8x128xf32>
    %426 = vector.extract_strided_slice %413 {offsets = [0, 256], sizes = [8, 128], strides = [1, 1]} : vector<8x512xf32> to vector<8x128xf32>
    %427 = math.tanh %426 : vector<8x128xf32>
    %428 = vector.extract_strided_slice %413 {offsets = [0, 384], sizes = [8, 128], strides = [1, 1]} : vector<8x512xf32> to vector<8x128xf32>
    %429 = arith.negf %428 : vector<8x128xf32>
    %430 = math.exp %429 : vector<8x128xf32>
    %cst_114 = arith.constant 1.000000e+00 : f32
    %431 = vector.broadcast %cst_114 : f32 to vector<8x128xf32>
    %432 = arith.addf %431, %430 : vector<8x128xf32>
    %433 = arith.divf %431, %432 : vector<8x128xf32>
    %434 = arith.mulf %425, %405 : vector<8x128xf32>
    %435 = arith.mulf %419, %427 : vector<8x128xf32>
    %436 = arith.addf %434, %435 : vector<8x128xf32>
    %437 = math.tanh %436 : vector<8x128xf32>
    %438 = arith.mulf %433, %437 : vector<8x128xf32>
    %c5_i32_115 = arith.constant 5 : i32
    %c8_i32_116 = arith.constant 8 : i32
    %439 = arith.muli %c5_i32_115, %c8_i32_116 : i32
    %440 = tpu.assume_multiple %439, 8 : i32
    %441 = arith.index_cast %440 : i32 to index
    %c0_117 = arith.constant 0 : index
    %442 = vector.load %arg10[%441, %c0_117] : memref<64x512xf32, #tpu.memory_space<vmem>>, vector<8x512xf32>
    %cst_118 = arith.constant dense<0.000000e+00> : vector<8x512xf32>
    %443 = tpu.matmul %438, %281, %cst_118 {dimension_numbers = #tpu.dot_dimension_numbers<[1], [0], [0], [1], [0, 0, 1, 1], [], []>} : vector<8x128xf32>, vector<128x512xf32>, vector<8x512xf32> -> vector<8x512xf32>
    %444 = arith.addf %442, %443 : vector<8x512xf32>
    %445 = vector.extract_strided_slice %444 {offsets = [0, 0], sizes = [8, 128], strides = [1, 1]} : vector<8x512xf32> to vector<8x128xf32>
    %446 = arith.negf %445 : vector<8x128xf32>
    %447 = math.exp %446 : vector<8x128xf32>
    %cst_119 = arith.constant 1.000000e+00 : f32
    %448 = vector.broadcast %cst_119 : f32 to vector<8x128xf32>
    %449 = arith.addf %448, %447 : vector<8x128xf32>
    %450 = arith.divf %448, %449 : vector<8x128xf32>
    %451 = vector.extract_strided_slice %444 {offsets = [0, 128], sizes = [8, 128], strides = [1, 1]} : vector<8x512xf32> to vector<8x128xf32>
    %452 = arith.negf %451 : vector<8x128xf32>
    %453 = math.exp %452 : vector<8x128xf32>
    %cst_120 = arith.constant 1.000000e+00 : f32
    %454 = vector.broadcast %cst_120 : f32 to vector<8x128xf32>
    %455 = arith.addf %454, %453 : vector<8x128xf32>
    %456 = arith.divf %454, %455 : vector<8x128xf32>
    %457 = vector.extract_strided_slice %444 {offsets = [0, 256], sizes = [8, 128], strides = [1, 1]} : vector<8x512xf32> to vector<8x128xf32>
    %458 = math.tanh %457 : vector<8x128xf32>
    %459 = vector.extract_strided_slice %444 {offsets = [0, 384], sizes = [8, 128], strides = [1, 1]} : vector<8x512xf32> to vector<8x128xf32>
    %460 = arith.negf %459 : vector<8x128xf32>
    %461 = math.exp %460 : vector<8x128xf32>
    %cst_121 = arith.constant 1.000000e+00 : f32
    %462 = vector.broadcast %cst_121 : f32 to vector<8x128xf32>
    %463 = arith.addf %462, %461 : vector<8x128xf32>
    %464 = arith.divf %462, %463 : vector<8x128xf32>
    %465 = arith.mulf %456, %436 : vector<8x128xf32>
    %466 = arith.mulf %450, %458 : vector<8x128xf32>
    %467 = arith.addf %465, %466 : vector<8x128xf32>
    %468 = math.tanh %467 : vector<8x128xf32>
    %469 = arith.mulf %464, %468 : vector<8x128xf32>
    %c6_i32_122 = arith.constant 6 : i32
    %c8_i32_123 = arith.constant 8 : i32
    %470 = arith.muli %c6_i32_122, %c8_i32_123 : i32
    %471 = tpu.assume_multiple %470, 8 : i32
    %472 = arith.index_cast %471 : i32 to index
    %c0_124 = arith.constant 0 : index
    %473 = vector.load %arg10[%472, %c0_124] : memref<64x512xf32, #tpu.memory_space<vmem>>, vector<8x512xf32>
    %cst_125 = arith.constant dense<0.000000e+00> : vector<8x512xf32>
    %474 = tpu.matmul %469, %281, %cst_125 {dimension_numbers = #tpu.dot_dimension_numbers<[1], [0], [0], [1], [0, 0, 1, 1], [], []>} : vector<8x128xf32>, vector<128x512xf32>, vector<8x512xf32> -> vector<8x512xf32>
    %475 = arith.addf %473, %474 : vector<8x512xf32>
    %476 = vector.extract_strided_slice %475 {offsets = [0, 0], sizes = [8, 128], strides = [1, 1]} : vector<8x512xf32> to vector<8x128xf32>
    %477 = arith.negf %476 : vector<8x128xf32>
    %478 = math.exp %477 : vector<8x128xf32>
    %cst_126 = arith.constant 1.000000e+00 : f32
    %479 = vector.broadcast %cst_126 : f32 to vector<8x128xf32>
    %480 = arith.addf %479, %478 : vector<8x128xf32>
    %481 = arith.divf %479, %480 : vector<8x128xf32>
    %482 = vector.extract_strided_slice %475 {offsets = [0, 128], sizes = [8, 128], strides = [1, 1]} : vector<8x512xf32> to vector<8x128xf32>
    %483 = arith.negf %482 : vector<8x128xf32>
    %484 = math.exp %483 : vector<8x128xf32>
    %cst_127 = arith.constant 1.000000e+00 : f32
    %485 = vector.broadcast %cst_127 : f32 to vector<8x128xf32>
    %486 = arith.addf %485, %484 : vector<8x128xf32>
    %487 = arith.divf %485, %486 : vector<8x128xf32>
    %488 = vector.extract_strided_slice %475 {offsets = [0, 256], sizes = [8, 128], strides = [1, 1]} : vector<8x512xf32> to vector<8x128xf32>
    %489 = math.tanh %488 : vector<8x128xf32>
    %490 = vector.extract_strided_slice %475 {offsets = [0, 384], sizes = [8, 128], strides = [1, 1]} : vector<8x512xf32> to vector<8x128xf32>
    %491 = arith.negf %490 : vector<8x128xf32>
    %492 = math.exp %491 : vector<8x128xf32>
    %cst_128 = arith.constant 1.000000e+00 : f32
    %493 = vector.broadcast %cst_128 : f32 to vector<8x128xf32>
    %494 = arith.addf %493, %492 : vector<8x128xf32>
    %495 = arith.divf %493, %494 : vector<8x128xf32>
    %496 = arith.mulf %487, %467 : vector<8x128xf32>
    %497 = arith.mulf %481, %489 : vector<8x128xf32>
    %498 = arith.addf %496, %497 : vector<8x128xf32>
    %499 = math.tanh %498 : vector<8x128xf32>
    %500 = arith.mulf %495, %499 : vector<8x128xf32>
    %c7_i32_129 = arith.constant 7 : i32
    %c8_i32_130 = arith.constant 8 : i32
    %501 = arith.muli %c7_i32_129, %c8_i32_130 : i32
    %502 = tpu.assume_multiple %501, 8 : i32
    %503 = arith.index_cast %502 : i32 to index
    %c0_131 = arith.constant 0 : index
    %504 = vector.load %arg10[%503, %c0_131] : memref<64x512xf32, #tpu.memory_space<vmem>>, vector<8x512xf32>
    %cst_132 = arith.constant dense<0.000000e+00> : vector<8x512xf32>
    %505 = tpu.matmul %500, %281, %cst_132 {dimension_numbers = #tpu.dot_dimension_numbers<[1], [0], [0], [1], [0, 0, 1, 1], [], []>} : vector<8x128xf32>, vector<128x512xf32>, vector<8x512xf32> -> vector<8x512xf32>
    %506 = arith.addf %504, %505 : vector<8x512xf32>
    %507 = vector.extract_strided_slice %506 {offsets = [0, 0], sizes = [8, 128], strides = [1, 1]} : vector<8x512xf32> to vector<8x128xf32>
    %508 = arith.negf %507 : vector<8x128xf32>
    %509 = math.exp %508 : vector<8x128xf32>
    %cst_133 = arith.constant 1.000000e+00 : f32
    %510 = vector.broadcast %cst_133 : f32 to vector<8x128xf32>
    %511 = arith.addf %510, %509 : vector<8x128xf32>
    %512 = arith.divf %510, %511 : vector<8x128xf32>
    %513 = vector.extract_strided_slice %506 {offsets = [0, 128], sizes = [8, 128], strides = [1, 1]} : vector<8x512xf32> to vector<8x128xf32>
    %514 = arith.negf %513 : vector<8x128xf32>
    %515 = math.exp %514 : vector<8x128xf32>
    %cst_134 = arith.constant 1.000000e+00 : f32
    %516 = vector.broadcast %cst_134 : f32 to vector<8x128xf32>
    %517 = arith.addf %516, %515 : vector<8x128xf32>
    %518 = arith.divf %516, %517 : vector<8x128xf32>
    %519 = vector.extract_strided_slice %506 {offsets = [0, 256], sizes = [8, 128], strides = [1, 1]} : vector<8x512xf32> to vector<8x128xf32>
    %520 = math.tanh %519 : vector<8x128xf32>
    %521 = vector.extract_strided_slice %506 {offsets = [0, 384], sizes = [8, 128], strides = [1, 1]} : vector<8x512xf32> to vector<8x128xf32>
    %522 = arith.negf %521 : vector<8x128xf32>
    %523 = math.exp %522 : vector<8x128xf32>
    %cst_135 = arith.constant 1.000000e+00 : f32
    %524 = vector.broadcast %cst_135 : f32 to vector<8x128xf32>
    %525 = arith.addf %524, %523 : vector<8x128xf32>
    %526 = arith.divf %524, %525 : vector<8x128xf32>
    %527 = arith.mulf %518, %498 : vector<8x128xf32>
    %528 = arith.mulf %512, %520 : vector<8x128xf32>
    %529 = arith.addf %527, %528 : vector<8x128xf32>
    %530 = math.tanh %529 : vector<8x128xf32>
    %531 = arith.mulf %526, %530 : vector<8x128xf32>
    %c8_i32_136 = arith.constant 8 : i32
    %c0_137 = arith.constant 0 : index
    %c0_138 = arith.constant 0 : index
    %532 = vector.load %arg7[%c0_137, %c0_138] : memref<128x10xf32, #tpu.memory_space<vmem>>, vector<128x10xf32>
    %cst_139 = arith.constant dense<0.000000e+00> : vector<8x10xf32>
    %533 = tpu.matmul %531, %532, %cst_139 {dimension_numbers = #tpu.dot_dimension_numbers<[1], [0], [0], [1], [0, 0, 1, 1], [], []>} : vector<8x128xf32>, vector<128x10xf32>, vector<8x10xf32> -> vector<8x10xf32>
    %c0_140 = arith.constant 0 : index
    %c0_141 = arith.constant 0 : index
    %534 = vector.load %arg8[%c0_140, %c0_141] : memref<1x10xf32, #tpu.memory_space<vmem>>, vector<1x10xf32>
    %535 = vector.broadcast %534 : vector<1x10xf32> to vector<8x10xf32>
    %536 = arith.addf %533, %535 : vector<8x10xf32>
    %537 = vector.extract_strided_slice %536 {offsets = [0, 0], sizes = [2, 10], strides = [1, 1]} : vector<8x10xf32> to vector<2x10xf32>
    %c0_142 = arith.constant 0 : index
    %c0_143 = arith.constant 0 : index
    %538 = vector.load %arg9[%c0_142, %c0_143] : memref<2x10xf32, #tpu.memory_space<vmem>>, vector<2x10xf32>
    tpu.vector_store %arg9[%c0_142, %c0_143], %537 {strides = array<i32>} : memref<2x10xf32, #tpu.memory_space<vmem>>, vector<2x10xf32>,
    return
  }
}

</mosaic_0001>

<bundles_post_ra>
// kernel: lstm_forward.1
= control target key start
LH: loop header
LB: loop body
LE: loop exit
PB: predicated region body
PF: predicated region fallthrough
CT: control target
= control target key end

     0   :  { %14 = vsyncpa [#allocation5], 0  ;;  %s5978_s0 = inlined_call_operand.vmem [shape: f32[64,128], index: 0, kind: input, shape index: {}]   ;;  %s5979_s1 = inlined_call_operand.hbm [shape: f32[128,512], index: 1, kind: input, shape index: {}]   ;;  %s5980_s2 = inlined_call_operand.hbm [shape: f32[128,512], index: 2, kind: input, shape index: {}]   ;;  %s5981_s3 = inlined_call_operand.vmem [shape: f32[1,512], index: 3, kind: input, shape index: {}]   ;;  %s5982_s4 = inlined_call_operand.hbm [shape: f32[128,512], index: 4, kind: input, shape index: {}]   ;;  %s5983_s5 = inlined_call_operand.hbm [shape: f32[128,512], index: 5, kind: input, shape index: {}]   ;;  %s5984_s6 = inlined_call_operand.vmem [shape: f32[1,512], index: 6, kind: input, shape index: {}]   ;;  %s5985_s7 = inlined_call_operand.vmem [shape: f32[128,10], index: 7, kind: input, shape index: {}]   ;;  %s5986_s8 = inlined_call_operand.vmem [shape: f32[1,10], index: 8, kind: input, shape index: {}]   ;;  %s5987_s9 = inlined_call_operand.hbm [shape: f32[2,10], index: 9, kind: output, shape index: {}]  }
   0x1   :  { %15 = vsyncpa [#allocation8], 0 }
   0x2   :  { %16 = vsyncpa [#allocation11], 0 }
   0x3   :  { %17 = vsyncpa [#allocation6], 0  ;;  %s37_s11 = sshll.u32 %s5980_s2, 4  ;;  %s3872_s12 = smov [#allocation7]   ;;  %s38_s11 = int_to_ptr.hbm [resolvable:$true] %s37_s11 }
   0x4   :  { %s39_s13 = sshll.u32 %s3872_s12, 4  ;;  %s24_s16 = sshll.u32 %s5979_s1, 4  ;;  %s40_s13 = int_to_ptr.vmem [resolvable:$true] %s39_s13  ;;  %s25_s16 = int_to_ptr.hbm [resolvable:$true] %s24_s16 }
   0x5   :  { %s3873_s17 = smov 512   ;;  %s3874_s18 = smov 32  }
   0x6   :  { %45 = dma.hbm_to_vmem [thread:$0]  %s38_s11, 8192, %s40_s13, [#allocation8], %s3873_s17, %s3873_s17, %s3874_s18  }
   0x7   :  { %s3875_s19 = smov [#allocation4]   ;;  %s52_s23 = sshll.u32 %s5982_s4, 4  ;;  %s53_s23 = int_to_ptr.hbm [resolvable:$true] %s52_s23 }
   0x8   :  { %s26_s20 = sshll.u32 %s3875_s19, 4  ;;  %s65_s25 = sshll.u32 %s5983_s5, 4  ;;  %s27_s20 = int_to_ptr.vmem [resolvable:$true] %s26_s20  ;;  %s66_s25 = int_to_ptr.hbm [resolvable:$true] %s65_s25 }
   0x9   :  { %32 = dma.hbm_to_vmem [thread:$0]  %s25_s16, 8192, %s27_s20, [#allocation5], %s3873_s17, %s3873_s17, %s3874_s18  }
   0xa   :  { %s3876_s26 = smov [#allocation9]   ;;  %s3877_s1 = smov [#allocation10]  }
   0xb   :  { %s54_s27 = sshll.u32 %s3876_s26, 4  ;;  %s67_s28 = sshll.u32 %s3877_s1, 4  ;;  %s55_s27 = int_to_ptr.vmem [resolvable:$true] %s54_s27  ;;  %s68_s28 = int_to_ptr.vmem [resolvable:$true] %s67_s28 }
   0xc   :  { %60 = dma.hbm_to_vmem [thread:$0]  %s53_s23, 8192, %s55_s27, [#allocation8], %s3873_s17, %s3873_s17, %s3874_s18  }
   0xd   :  { %73 = dma.hbm_to_vmem [thread:$0]  %s66_s25, 8192, %s68_s28, [#allocation11], %s3873_s17, %s3873_s17, %s3874_s18  }
   0xe   :  { %3864 = dma.done.wait [#allocation5], 8192  }
   0xf   :  { %3865 = vsyncadd [#allocation5], 4294959104 }
  0x10   :  { %3866 = dma.done.wait [#allocation8], 16384  }
  0x11   :  { %3867 = vsyncadd [#allocation8], 4294950912 }
  0x12   :  { %3868 = dma.done.wait [#allocation11], 8192  }
  0x13   :  { %3869 = vsyncadd [#allocation11], 4294959104  ;;  %v164_v0 = vld [vmem:[#allocation4 + $0x1e0] sm:$0xff]  ;;  %v165_v1 = vld [vmem:[#allocation4 + $0x1e8] sm:$0xff]  ;;  %s3879_s27 = smov [#allocation12]   ;;  %s3284_s5 = sshll.u32 %s5987_s9, 4  ;;  %s3285_s5 = int_to_ptr.hbm [resolvable:$true] %s3284_s5 }
  0x14   :  { %v166_v2 = vld [vmem:[#allocation4 + $0x1f0] sm:$0xff]  ;;  %178 = vmatpush.msra.mxu0 %v164_v0  ;;  %219 = vmatpush.msra.mxu1 %v165_v1  ;;  %v167_v3 = vld [vmem:[#allocation4 + $0x1f8] sm:$0xff]  ;;  %v160_v4 = vld [vmem:[#allocation4 + $0x1c0] sm:$0xff]  ;;  %s3282_s1 = sshll.u32 %s3879_s27, 4  ;;  %s3283_s1 = int_to_ptr.vmem [resolvable:$true] %s3282_s1 }
  0x15   :  { %v161_v5 = vld [vmem:[#allocation4 + $0x1c8] sm:$0xff]  ;;  %260 = vmatpush.msra.mxu2 %v166_v2  ;;  %301 = vmatpush.msra.mxu3 %v167_v3  ;;  %v162_v6 = vld [vmem:[#allocation4 + $0x1d0] sm:$0xff]  ;;  %v163_v7 = vld [vmem:[#allocation4 + $0x1d8] sm:$0xff] }
  0x16   :  { %v156_v8 = vld [vmem:[#allocation4 + $0x1a0] sm:$0xff]  ;;  %179 = vmatpush.msra.mxu0 %v160_v4  ;;  %220 = vmatpush.msra.mxu1 %v161_v5  ;;  %v157_v9 = vld [vmem:[#allocation4 + $0x1a8] sm:$0xff]  ;;  %v158_v10 = vld [vmem:[#allocation4 + $0x1b0] sm:$0xff] }
  0x17   :  { %v159_v11 = vld [vmem:[#allocation4 + $0x1b8] sm:$0xff]  ;;  %261 = vmatpush.msra.mxu2 %v162_v6  ;;  %302 = vmatpush.msra.mxu3 %v163_v7  ;;  %v152_v12 = vld [vmem:[#allocation4 + $0x180] sm:$0xff]  ;;  %v153_v13 = vld [vmem:[#allocation4 + $0x188] sm:$0xff] }
  0x18   :  { %180 = vmatpush.msra.mxu0 %v156_v8  ;;  %221 = vmatpush.msra.mxu1 %v157_v9  ;;  %v154_v14 = vld [vmem:[#allocation4 + $0x190] sm:$0xff]  ;;  %v155_v15 = vld [vmem:[#allocation4 + $0x198] sm:$0xff]  ;;  %v148_v16 = vld [vmem:[#allocation4 + $0x160] sm:$0xff] }
  0x19   :  { %262 = vmatpush.msra.mxu2 %v158_v10  ;;  %303 = vmatpush.msra.mxu3 %v159_v11  ;;  %v149_v17 = vld [vmem:[#allocation4 + $0x168] sm:$0xff]  ;;  %v150_v18 = vld [vmem:[#allocation4 + $0x170] sm:$0xff]  ;;  %v151_v19 = vld [vmem:[#allocation4 + $0x178] sm:$0xff] }
  0x1a   :  { %181 = vmatpush.msra.mxu0 %v152_v12  ;;  %222 = vmatpush.msra.mxu1 %v153_v13  ;;  %v144_v20 = vld [vmem:[#allocation4 + $0x140] sm:$0xff]  ;;  %v145_v21 = vld [vmem:[#allocation4 + $0x148] sm:$0xff]  ;;  %v146_v22 = vld [vmem:[#allocation4 + $0x150] sm:$0xff] }
  0x1b   :  { %263 = vmatpush.msra.mxu2 %v154_v14  ;;  %304 = vmatpush.msra.mxu3 %v155_v15  ;;  %v147_v23 = vld [vmem:[#allocation4 + $0x158] sm:$0xff]  ;;  %v140_v24 = vld [vmem:[#allocation4 + $0x120] sm:$0xff]  ;;  %v141_v25 = vld [vmem:[#allocation4 + $0x128] sm:$0xff] }
  0x1c   :  { %182 = vmatpush.msra.mxu0 %v148_v16  ;;  %223 = vmatpush.msra.mxu1 %v149_v17  ;;  %v142_v26 = vld [vmem:[#allocation4 + $0x130] sm:$0xff]  ;;  %v143_v27 = vld [vmem:[#allocation4 + $0x138] sm:$0xff]  ;;  %v136_v28 = vld [vmem:[#allocation4 + $0x100] sm:$0xff] }
  0x1d   :  { %264 = vmatpush.msra.mxu2 %v150_v18  ;;  %305 = vmatpush.msra.mxu3 %v151_v19  ;;  %v137_v29 = vld [vmem:[#allocation4 + $0x108] sm:$0xff]  ;;  %v138_v30 = vld [vmem:[#allocation4 + $0x110] sm:$0xff]  ;;  %v139_v31 = vld [vmem:[#allocation4 + $0x118] sm:$0xff] }
  0x1e   :  { %183 = vmatpush.msra.mxu0 %v144_v20  ;;  %224 = vmatpush.msra.mxu1 %v145_v21  ;;  %v132_v32 = vld [vmem:[#allocation4 + $0xe0] sm:$0xff]  ;;  %v133_v33 = vld [vmem:[#allocation4 + $0xe8] sm:$0xff]  ;;  %v134_v34 = vld [vmem:[#allocation4 + $0xf0] sm:$0xff] }
  0x1f   :  { %265 = vmatpush.msra.mxu2 %v146_v22  ;;  %306 = vmatpush.msra.mxu3 %v147_v23  ;;  %v135_v35 = vld [vmem:[#allocation4 + $0xf8] sm:$0xff]  ;;  %v128_v36 = vld [vmem:[#allocation4 + $0xc0] sm:$0xff]  ;;  %v129_v37 = vld [vmem:[#allocation4 + $0xc8] sm:$0xff] }
  0x20   :  { %184 = vmatpush.msra.mxu0 %v140_v24  ;;  %225 = vmatpush.msra.mxu1 %v141_v25  ;;  %v130_v38 = vld [vmem:[#allocation4 + $0xd0] sm:$0xff]  ;;  %v131_v39 = vld [vmem:[#allocation4 + $0xd8] sm:$0xff]  ;;  %v124_v40 = vld [vmem:[#allocation4 + $0xa0] sm:$0xff] }
  0x21   :  { %266 = vmatpush.msra.mxu2 %v142_v26  ;;  %307 = vmatpush.msra.mxu3 %v143_v27  ;;  %v125_v41 = vld [vmem:[#allocation4 + $0xa8] sm:$0xff]  ;;  %v126_v42 = vld [vmem:[#allocation4 + $0xb0] sm:$0xff]  ;;  %v127_v43 = vld [vmem:[#allocation4 + $0xb8] sm:$0xff] }
  0x22   :  { %185 = vmatpush.msra.mxu0 %v136_v28  ;;  %226 = vmatpush.msra.mxu1 %v137_v29  ;;  %v120_v44 = vld [vmem:[#allocation4 + $0x80] sm:$0xff]  ;;  %v121_v45 = vld [vmem:[#allocation4 + $0x88] sm:$0xff]  ;;  %v122_v46 = vld [vmem:[#allocation4 + $0x90] sm:$0xff] }
  0x23   :  { %267 = vmatpush.msra.mxu2 %v138_v30  ;;  %308 = vmatpush.msra.mxu3 %v139_v31  ;;  %v123_v47 = vld [vmem:[#allocation4 + $0x98] sm:$0xff]  ;;  %v116_v48 = vld [vmem:[#allocation4 + $0x60] sm:$0xff]  ;;  %v117_v49 = vld [vmem:[#allocation4 + $0x68] sm:$0xff] }
  0x24   :  { %186 = vmatpush.msra.mxu0 %v132_v32  ;;  %227 = vmatpush.msra.mxu1 %v133_v33  ;;  %v118_v50 = vld [vmem:[#allocation4 + $0x70] sm:$0xff]  ;;  %v119_v51 = vld [vmem:[#allocation4 + $0x78] sm:$0xff]  ;;  %v112_v52 = vld [vmem:[#allocation4 + $0x40] sm:$0xff] }
  0x25   :  { %268 = vmatpush.msra.mxu2 %v134_v34  ;;  %309 = vmatpush.msra.mxu3 %v135_v35  ;;  %v113_v53 = vld [vmem:[#allocation4 + $0x48] sm:$0xff]  ;;  %v114_v54 = vld [vmem:[#allocation4 + $0x50] sm:$0xff]  ;;  %v115_v55 = vld [vmem:[#allocation4 + $0x58] sm:$0xff] }
  0x26   :  { %187 = vmatpush.msra.mxu0 %v128_v36  ;;  %228 = vmatpush.msra.mxu1 %v129_v37  ;;  %v108_v56 = vld [vmem:[#allocation4 + $0x20] sm:$0xff]  ;;  %v109_v57 = vld [vmem:[#allocation4 + $0x28] sm:$0xff]  ;;  %v110_v58 = vld [vmem:[#allocation4 + $0x30] sm:$0xff] }
  0x27   :  { %269 = vmatpush.msra.mxu2 %v130_v38  ;;  %310 = vmatpush.msra.mxu3 %v131_v39  ;;  %v111_v59 = vld [vmem:[#allocation4 + $0x38] sm:$0xff]  ;;  %v104_v60 = vld [vmem:[#allocation4] sm:$0xff]  ;;  %v105_v61 = vld [vmem:[#allocation4 + $0x8] sm:$0xff] }
  0x28   :  { %188 = vmatpush.msra.mxu0 %v124_v40  ;;  %229 = vmatpush.msra.mxu1 %v125_v41  ;;  %v106_v62 = vld [vmem:[#allocation4 + $0x10] sm:$0xff]  ;;  %v107_v63 = vld [vmem:[#allocation4 + $0x18] sm:$0xff]  ;;  %v96_v0 = vld [vmem:[%s5978_s0] sm:$0xff] }
  0x29   :  { %270 = vmatpush.msra.mxu2 %v126_v42  ;;  %311 = vmatpush.msra.mxu3 %v127_v43  ;;  %v3945_v1 = vld [vmem:[#allocation7 + $0x1e0] sm:$0xff]  ;;  %v3947_v2 = vld [vmem:[#allocation7 + $0x1e8] sm:$0xff]  ;;  %v3949_v3 = vld [vmem:[#allocation7 + $0x1f8] sm:$0xff] }
  0x2a   :  { %189 = vmatpush.msra.mxu0 %v120_v44  ;;  %230 = vmatpush.msra.mxu1 %v121_v45  ;;  %v3951_v4 = vld [vmem:[#allocation7 + $0x1f0] sm:$0xff]  ;;  %v3953_v5 = vld [vmem:[#allocation7 + $0x1c0] sm:$0xff]  ;;  %v3955_v6 = vld [vmem:[#allocation7 + $0x1c8] sm:$0xff] }
  0x2b   :  { %271 = vmatpush.msra.mxu2 %v122_v46  ;;  %312 = vmatpush.msra.mxu3 %v123_v47  ;;  %v3959_v7 = vld [vmem:[#allocation7 + $0x1d8] sm:$0xff]  ;;  %v3961_v8 = vld [vmem:[#allocation7 + $0x1d0] sm:$0xff]  ;;  %v3964_v9 = vld [vmem:[#allocation7 + $0x1a0] sm:$0xff] }
  0x2c   :  { %190 = vmatpush.msra.mxu0 %v116_v48  ;;  %231 = vmatpush.msra.mxu1 %v117_v49  ;;  %v3966_v10 = vld [vmem:[#allocation7 + $0x1a8] sm:$0xff]  ;;  %v3971_v11 = vld [vmem:[#allocation7 + $0x1b8] sm:$0xff]  ;;  %v3973_v12 = vld [vmem:[#allocation7 + $0x1b0] sm:$0xff] }
  0x2d   :  { %272 = vmatpush.msra.mxu2 %v118_v50  ;;  %313 = vmatpush.msra.mxu3 %v119_v51  ;;  %v97_v13 = vld [vmem:[%s5978_s0 + $0x8] sm:$0xff]  ;;  %v3982_v14 = vld [vmem:[#allocation7 + $0x180] sm:$0xff]  ;;  %v3988_v16 = vld [vmem:[#allocation7 + $0x198] sm:$0xff] }
  0x2e   :  { %191 = vmatpush.msra.mxu0 %v112_v52  ;;  %232 = vmatpush.msra.mxu1 %v113_v53  ;;  %v3984_v15 = vld [vmem:[#allocation7 + $0x188] sm:$0xff]  ;;  %v3990_v17 = vld [vmem:[#allocation7 + $0x190] sm:$0xff]  ;;  %v3992_v18 = vld [vmem:[#allocation7 + $0x160] sm:$0xff] }
  0x2f   :  { %273 = vmatpush.msra.mxu2 %v114_v54  ;;  %314 = vmatpush.msra.mxu3 %v115_v55  ;;  %v3994_v19 = vld [vmem:[#allocation7 + $0x168] sm:$0xff]  ;;  %v3998_v20 = vld [vmem:[#allocation7 + $0x178] sm:$0xff]  ;;  %v4000_v21 = vld [vmem:[#allocation7 + $0x170] sm:$0xff] }
  0x30   :  { %192 = vmatpush.msra.mxu0 %v108_v56  ;;  %233 = vmatpush.msra.mxu1 %v109_v57  ;;  %v4003_v22 = vld [vmem:[#allocation7 + $0x140] sm:$0xff]  ;;  %v4005_v23 = vld [vmem:[#allocation7 + $0x148] sm:$0xff]  ;;  %v4010_v24 = vld [vmem:[#allocation7 + $0x158] sm:$0xff] }
  0x31   :  { %274 = vmatpush.msra.mxu2 %v110_v58  ;;  %315 = vmatpush.msra.mxu3 %v111_v59  ;;  %v4012_v25 = vld [vmem:[#allocation7 + $0x150] sm:$0xff]  ;;  %v4021_v27 = vld [vmem:[#allocation7 + $0x120] sm:$0xff]  ;;  %v4023_v28 = vld [vmem:[#allocation7 + $0x128] sm:$0xff] }
  0x32   :  { %193 = vmatpush.msra.mxu0 %v104_v60  ;;  %234 = vmatpush.msra.mxu1 %v105_v61  ;;  %v98_v26 = vld [vmem:[%s5978_s0 + $0x10] sm:$0xff]  ;;  %v4027_v29 = vld [vmem:[#allocation7 + $0x138] sm:$0xff]  ;;  %v4031_v31 = vld [vmem:[#allocation7 + $0x100] sm:$0xff] }
  0x33   :  { %275 = vmatpush.msra.mxu2 %v106_v62  ;;  %316 = vmatpush.msra.mxu3 %v107_v63  ;;  %v4029_v30 = vld [vmem:[#allocation7 + $0x130] sm:$0xff]  ;;  %v4033_v32 = vld [vmem:[#allocation7 + $0x108] sm:$0xff]  ;;  %v4037_v33 = vld [vmem:[#allocation7 + $0x118] sm:$0xff] }
  0x34   :  { %194 = vmatmul.f32.vlgmr.msra.gmra.mxu0 %v96_v0  ;;  %235 = vmatmul.f32.vlgmr.msra.gmra.mxu1 %v96_v0  ;;  %v4039_v34 = vld [vmem:[#allocation7 + $0x110] sm:$0xff]  ;;  %v4042_v35 = vld [vmem:[#allocation7 + $0xe0] sm:$0xff]  ;;  %v4044_v36 = vld [vmem:[#allocation7 + $0xe8] sm:$0xff] }
  0x35   :  { %276 = vmatmul.f32.vlgmr.msra.gmra.mxu2 %v96_v0  ;;  %317 = vmatmul.f32.vlgmr.msra.gmra.mxu3 %v96_v0  ;;  %v4049_v37 = vld [vmem:[#allocation7 + $0xf8] sm:$0xff]  ;;  %v4051_v38 = vld [vmem:[#allocation7 + $0xf0] sm:$0xff]  ;;  %v4060_v40 = vld [vmem:[#allocation7 + $0xc0] sm:$0xff] }
  0x36   :  { %445 = vmatpush.msrb.mxu0 %v3945_v1  ;;  %465 = vmatpush.msrb.mxu1 %v3947_v2  ;;  %v99_v39 = vld [vmem:[%s5978_s0 + $0x18] sm:$0xff]  ;;  %v4062_v41 = vld [vmem:[#allocation7 + $0xc8] sm:$0xff]  ;;  %v4068_v43 = vld [vmem:[#allocation7 + $0xd0] sm:$0xff] }
  0x37   :  { %505 = vmatpush.msrb.mxu3 %v3949_v3  ;;  %485 = vmatpush.msrb.mxu2 %v3951_v4  ;;  %v4066_v42 = vld [vmem:[#allocation7 + $0xd8] sm:$0xff]  ;;  %6258 = vst [vmem:[#allocation18_spill] sm:$0xff] %v4068_v43  ;;  %v4070_v44 = vld [vmem:[#allocation7 + $0xa0] sm:$0xff]  ;;  %v4072_v45 = vld [vmem:[#allocation7 + $0xa8] sm:$0xff] }
  0x38   :  { %446 = vmatpush.msrb.mxu0 %v3953_v5  ;;  %466 = vmatpush.msrb.mxu1 %v3955_v6  ;;  %6257 = vst [vmem:[#allocation17_spill] sm:$0xff] %v4066_v42  ;;  %v4076_v46 = vld [vmem:[#allocation7 + $0xb8] sm:$0xff]  ;;  %v4078_v47 = vld [vmem:[#allocation7 + $0xb0] sm:$0xff]  ;;  %v4081_v48 = vld [vmem:[#allocation7 + $0x80] sm:$0xff] }
  0x39   :  { %506 = vmatpush.msrb.mxu3 %v3959_v7  ;;  %486 = vmatpush.msrb.mxu2 %v3961_v8  ;;  %6259 = vst [vmem:[#allocation19_spill] sm:$0xff] %v4070_v44  ;;  %v4083_v49 = vld [vmem:[#allocation7 + $0x88] sm:$0xff]  ;;  %v4088_v50 = vld [vmem:[#allocation7 + $0x98] sm:$0xff]  ;;  %v4090_v51 = vld [vmem:[#allocation7 + $0x90] sm:$0xff] }
  0x3a   :  { %447 = vmatpush.msrb.mxu0 %v3964_v9  ;;  %467 = vmatpush.msrb.mxu1 %v3966_v10  ;;  %6260 = vst [vmem:[#allocation20_spill] sm:$0xff] %v4072_v45  ;;  %v100_v52 = vld [vmem:[%s5978_s0 + $0x20] sm:$0xff]  ;;  %v4101_v54 = vld [vmem:[#allocation7 + $0x68] sm:$0xff]  ;;  %v4105_v55 = vld [vmem:[#allocation7 + $0x78] sm:$0xff] }
  0x3b   :  { %507 = vmatpush.msrb.mxu3 %v3971_v11  ;;  %487 = vmatpush.msrb.mxu2 %v3973_v12  ;;  %6261 = vst [vmem:[#allocation21_spill] sm:$0xff] %v4076_v46  ;;  %v4099_v53 = vld [vmem:[#allocation7 + $0x60] sm:$0xff]  ;;  %v4107_v56 = vld [vmem:[#allocation7 + $0x70] sm:$0xff]  ;;  %v4111_v58 = vld [vmem:[#allocation7 + $0x48] sm:$0xff] }
  0x3c   :  { %197 = vmatmul.f32.gmra.mxu0 %v97_v13  ;;  %238 = vmatmul.f32.gmra.mxu1 %v97_v13  ;;  %6262 = vst [vmem:[#allocation22_spill] sm:$0xff] %v4078_v47  ;;  %v4109_v57 = vld [vmem:[#allocation7 + $0x40] sm:$0xff]  ;;  %v4115_v59 = vld [vmem:[#allocation7 + $0x58] sm:$0xff]  ;;  %v4117_v60 = vld [vmem:[#allocation7 + $0x50] sm:$0xff] }
  0x3d   :  { %279 = vmatmul.f32.gmra.mxu2 %v97_v13  ;;  %320 = vmatmul.f32.gmra.mxu3 %v97_v13  ;;  %6263 = vst [vmem:[#allocation23_spill] sm:$0xff] %v4081_v48  ;;  %v4120_v61 = vld [vmem:[#allocation7 + $0x20] sm:$0xff]  ;;  %v4122_v62 = vld [vmem:[#allocation7 + $0x28] sm:$0xff]  ;;  %v4127_v63 = vld [vmem:[#allocation7 + $0x30] sm:$0xff] }
  0x3e   :  { %448 = vmatpush.msrb.mxu0 %v3982_v14  ;;  %468 = vmatpush.msrb.mxu1 %v3984_v15  ;;  %6264 = vst [vmem:[#allocation24_spill] sm:$0xff] %v4083_v49  ;;  %v4129_v0 = vld [vmem:[#allocation7 + $0x38] sm:$0xff]  ;;  %v101_v13 = vld [vmem:[%s5978_s0 + $0x28] sm:$0xff] }
  0x3f   :  { %508 = vmatpush.msrb.mxu3 %v3988_v16  ;;  %488 = vmatpush.msrb.mxu2 %v3990_v17  ;;  %6265 = vst [vmem:[#allocation25_spill] sm:$0xff] %v4088_v50 }
  0x40   :  { %449 = vmatpush.msrb.mxu0 %v3992_v18  ;;  %469 = vmatpush.msrb.mxu1 %v3994_v19  ;;  %6266 = vst [vmem:[#allocation26_spill] sm:$0xff] %v4090_v51 }
  0x41   :  { %509 = vmatpush.msrb.mxu3 %v3998_v20  ;;  %489 = vmatpush.msrb.mxu2 %v4000_v21  ;;  %6267 = vst [vmem:[#allocation27_spill] sm:$0xff] %v4099_v53 }
  0x42   :  { %450 = vmatpush.msrb.mxu0 %v4003_v22  ;;  %470 = vmatpush.msrb.mxu1 %v4005_v23  ;;  %6268 = vst [vmem:[#allocation28_spill] sm:$0xff] %v4101_v54 }
  0x43   :  { %510 = vmatpush.msrb.mxu3 %v4010_v24  ;;  %490 = vmatpush.msrb.mxu2 %v4012_v25  ;;  %6269 = vst [vmem:[#allocation29_spill] sm:$0xff] %v4105_v55 }
  0x44   :  { %200 = vmatmul.f32.gmra.mxu0 %v98_v26  ;;  %241 = vmatmul.f32.gmra.mxu1 %v98_v26  ;;  %6270 = vst [vmem:[#allocation30_spill] sm:$0xff] %v4107_v56 }
  0x45   :  { %282 = vmatmul.f32.gmra.mxu2 %v98_v26  ;;  %323 = vmatmul.f32.gmra.mxu3 %v98_v26  ;;  %6271 = vst [vmem:[#allocation31_spill] sm:$0xff] %v4109_v57  ;;  %v4138_v26 = vld [vmem:[#allocation7] sm:$0xff] }
  0x46   :  { %451 = vmatpush.msrb.mxu0 %v4021_v27  ;;  %471 = vmatpush.msrb.mxu1 %v4023_v28  ;;  %6272 = vst [vmem:[#allocation32_spill] sm:$0xff] %v4111_v58 }
  0x47   :  { %511 = vmatpush.msrb.mxu3 %v4027_v29  ;;  %491 = vmatpush.msrb.mxu2 %v4029_v30  ;;  %6273 = vst [vmem:[#allocation33_spill] sm:$0xff] %v4115_v59 }
  0x48   :  { %452 = vmatpush.msrb.mxu0 %v4031_v31  ;;  %472 = vmatpush.msrb.mxu1 %v4033_v32  ;;  %6274 = vst [vmem:[#allocation34_spill] sm:$0xff] %v4117_v60 }
  0x49   :  { %512 = vmatpush.msrb.mxu3 %v4037_v33  ;;  %492 = vmatpush.msrb.mxu2 %v4039_v34  ;;  %6275 = vst [vmem:[#allocation35_spill] sm:$0xff] %v4120_v61 }
  0x4a   :  { %453 = vmatpush.msrb.mxu0 %v4042_v35  ;;  %473 = vmatpush.msrb.mxu1 %v4044_v36  ;;  %6276 = vst [vmem:[#allocation36_spill] sm:$0xff] %v4122_v62 }
  0x4b   :  { %513 = vmatpush.msrb.mxu3 %v4049_v37  ;;  %493 = vmatpush.msrb.mxu2 %v4051_v38  ;;  %6277 = vst [vmem:[#allocation37_spill] sm:$0xff] %v4127_v63 }
  0x4c   :  { %203 = vmatmul.f32.gmra.mxu0 %v99_v39  ;;  %244 = vmatmul.f32.gmra.mxu1 %v99_v39  ;;  %6278 = vst [vmem:[#allocation38_spill] sm:$0xff] %v4129_v0 }
  0x4d   :  { %285 = vmatmul.f32.gmra.mxu2 %v99_v39  ;;  %326 = vmatmul.f32.gmra.mxu3 %v99_v39  ;;  %6279 = vst [vmem:[#allocation39_spill] sm:$0xff] %v4138_v26  ;;  %v4140_v39 = vld [vmem:[#allocation7 + $0x8] sm:$0xff] }
  0x4e   :  { %454 = vmatpush.msrb.mxu0 %v4060_v40  ;;  %474 = vmatpush.msrb.mxu1 %v4062_v41  ;;  %6280 = vst [vmem:[#allocation40_spill] sm:$0xff] %v4140_v39 }
  0x4f   :  { %514 = vmatpush.msrb.mxu3 %v4066_v42  ;;  %494 = vmatpush.msrb.mxu2 %v4068_v43 }
  0x50   :  { %455 = vmatpush.msrb.mxu0 %v4070_v44  ;;  %475 = vmatpush.msrb.mxu1 %v4072_v45 }
  0x51   :  { %515 = vmatpush.msrb.mxu3 %v4076_v46  ;;  %495 = vmatpush.msrb.mxu2 %v4078_v47 }
  0x52   :  { %456 = vmatpush.msrb.mxu0 %v4081_v48  ;;  %476 = vmatpush.msrb.mxu1 %v4083_v49 }
  0x53   :  { %516 = vmatpush.msrb.mxu3 %v4088_v50  ;;  %496 = vmatpush.msrb.mxu2 %v4090_v51 }
  0x54   :  { %206 = vmatmul.f32.gmra.mxu0 %v100_v52  ;;  %247 = vmatmul.f32.gmra.mxu1 %v100_v52 }
  0x55   :  { %288 = vmatmul.f32.gmra.mxu2 %v100_v52  ;;  %329 = vmatmul.f32.gmra.mxu3 %v100_v52  ;;  %v4144_v52 = vld [vmem:[#allocation7 + $0x10] sm:$0xff] }
  0x56   :  { %457 = vmatpush.msrb.mxu0 %v4099_v53  ;;  %477 = vmatpush.msrb.mxu1 %v4101_v54  ;;  %6281 = vst [vmem:[#allocation41_spill] sm:$0xff] %v4144_v52 }
  0x57   :  { %517 = vmatpush.msrb.mxu3 %v4105_v55  ;;  %497 = vmatpush.msrb.mxu2 %v4107_v56 }
  0x58   :  { %458 = vmatpush.msrb.mxu0 %v4109_v57  ;;  %478 = vmatpush.msrb.mxu1 %v4111_v58  ;;  %v4146_v58 = vld [vmem:[#allocation7 + $0x18] sm:$0xff] }
  0x59   :  { %518 = vmatpush.msrb.mxu3 %v4115_v59  ;;  %498 = vmatpush.msrb.mxu2 %v4117_v60  ;;  %6282 = vst [vmem:[#allocation42_spill] sm:$0xff] %v4146_v58 }
  0x5a   :  { %459 = vmatpush.msrb.mxu0 %v4120_v61  ;;  %479 = vmatpush.msrb.mxu1 %v4122_v62 }
  0x5b   :  { %499 = vmatpush.msrb.mxu2 %v4127_v63  ;;  %519 = vmatpush.msrb.mxu3 %v4129_v0  ;;  %v102_v0 = vld [vmem:[%s5978_s0 + $0x30] sm:$0xff] }
  0x5c   :  { %209 = vmatmul.f32.gmra.mxu0 %v101_v13  ;;  %250 = vmatmul.f32.gmra.mxu1 %v101_v13 }
  0x5d   :  { %291 = vmatmul.f32.gmra.mxu2 %v101_v13  ;;  %332 = vmatmul.f32.gmra.mxu3 %v101_v13  ;;  %v103_v13 = vld [vmem:[%s5978_s0 + $0x38] sm:$0xff] }
  0x5e   :  { %460 = vmatpush.msrb.mxu0 %v4138_v26  ;;  %480 = vmatpush.msrb.mxu1 %v4140_v39 }
  0x5f   :  { %500 = vmatpush.msrb.mxu2 %v4144_v52  ;;  %520 = vmatpush.msrb.mxu3 %v4146_v58 }
  0x60   :  { %600 = vmatpush.msra.mxu0 %v3945_v1  ;;  %620 = vmatpush.msra.mxu1 %v3947_v2 }
  0x61   :  { %640 = vmatpush.msra.mxu2 %v3951_v4  ;;  %660 = vmatpush.msra.mxu3 %v3949_v3 }
  0x62   :  { %601 = vmatpush.msra.mxu0 %v3953_v5  ;;  %621 = vmatpush.msra.mxu1 %v3955_v6 }
  0x63   :  { %641 = vmatpush.msra.mxu2 %v3961_v8  ;;  %661 = vmatpush.msra.mxu3 %v3959_v7 }
  0x64   :  { %212 = vmatmul.f32.gmra.mxu0 %v102_v0  ;;  %253 = vmatmul.f32.gmra.mxu1 %v102_v0 }
  0x65   :  { %294 = vmatmul.f32.gmra.mxu2 %v102_v0  ;;  %335 = vmatmul.f32.gmra.mxu3 %v102_v0  ;;  %v5992_v0 = vmov 0.0  }
  0x66   :  { %602 = vmatpush.msra.mxu0 %v3964_v9  ;;  %622 = vmatpush.msra.mxu1 %v3966_v10 }
  0x67   :  { %642 = vmatpush.msra.mxu2 %v3973_v12  ;;  %662 = vmatpush.msra.mxu3 %v3971_v11 }
  0x68   :  { %603 = vmatpush.msra.mxu0 %v3982_v14  ;;  %623 = vmatpush.msra.mxu1 %v3984_v15 }
  0x69   :  { %643 = vmatpush.msra.mxu2 %v3990_v17  ;;  %663 = vmatpush.msra.mxu3 %v3988_v16 }
  0x6a   :  { %604 = vmatpush.msra.mxu0 %v3992_v18  ;;  %624 = vmatpush.msra.mxu1 %v3994_v19 }
  0x6b   :  { %644 = vmatpush.msra.mxu2 %v4000_v21  ;;  %664 = vmatpush.msra.mxu3 %v3998_v20 }
  0x6c   :  { %215 = vmatmul.f32.gmra.mxu0 %v103_v13  ;;  %256 = vmatmul.f32.gmra.mxu1 %v103_v13 }
  0x6d   :  { %297 = vmatmul.f32.gmra.mxu2 %v103_v13  ;;  %338 = vmatmul.f32.gmra.mxu3 %v103_v13  ;;  %v6283_v13 = vld [vmem:[#allocation32_spill] sm:$0xff] }
  0x6e   :  { %605 = vmatpush.msra.mxu0 %v4003_v22  ;;  %625 = vmatpush.msra.mxu1 %v4005_v23 }
  0x6f   :  { %645 = vmatpush.msra.mxu2 %v4012_v25  ;;  %665 = vmatpush.msra.mxu3 %v4010_v24 }
  0x70   :  { %606 = vmatpush.msra.mxu0 %v4021_v27  ;;  %626 = vmatpush.msra.mxu1 %v4023_v28 }
  0x71   :  { %646 = vmatpush.msra.mxu2 %v4029_v30  ;;  %666 = vmatpush.msra.mxu3 %v4027_v29 }
  0x72   :  { %607 = vmatpush.msra.mxu0 %v4031_v31  ;;  %627 = vmatpush.msra.mxu1 %v4033_v32 }
  0x73   :  { %647 = vmatpush.msra.mxu2 %v4039_v34  ;;  %667 = vmatpush.msra.mxu3 %v4037_v33 }
  0x74   :  { %461 = vmatmul.f32.vlgmr.msrb.gmra.mxu0 %v5992_v0  ;;  %481 = vmatmul.f32.vlgmr.msrb.gmra.mxu1 %v5992_v0 }
  0x75   :  { %501 = vmatmul.f32.vlgmr.msrb.gmra.mxu2 %v5992_v0  ;;  %521 = vmatmul.f32.vlgmr.msrb.gmra.mxu3 %v5992_v0  ;;  %v6284_v0 = vld [vmem:[#allocation38_spill] sm:$0xff] }
  0x76   :  { %608 = vmatpush.msra.mxu0 %v4042_v35  ;;  %628 = vmatpush.msra.mxu1 %v4044_v36 }
  0x77   :  { %648 = vmatpush.msra.mxu2 %v4051_v38  ;;  %668 = vmatpush.msra.mxu3 %v4049_v37 }
  0x78   :  { %609 = vmatpush.msra.mxu0 %v4060_v40  ;;  %629 = vmatpush.msra.mxu1 %v4062_v41 }
  0x79   :  { %649 = vmatpush.msra.mxu2 %v4068_v43  ;;  %669 = vmatpush.msra.mxu3 %v4066_v42 }
  0x7a   :  { %610 = vmatpush.msra.mxu0 %v4070_v44  ;;  %630 = vmatpush.msra.mxu1 %v4072_v45 }
  0x7b   :  { %650 = vmatpush.msra.mxu2 %v4078_v47  ;;  %670 = vmatpush.msra.mxu3 %v4076_v46 }
  0x7c   :  { %611 = vmatpush.msra.mxu0 %v4081_v48  ;;  %631 = vmatpush.msra.mxu1 %v4083_v49 }
  0x7d   :  { %651 = vmatpush.msra.mxu2 %v4090_v51  ;;  %671 = vmatpush.msra.mxu3 %v4088_v50 }
  0x7e   :  { %612 = vmatpush.msra.mxu0 %v4099_v53  ;;  %632 = vmatpush.msra.mxu1 %v4101_v54 }
  0x7f   :  { %652 = vmatpush.msra.mxu2 %v4107_v56  ;;  %672 = vmatpush.msra.mxu3 %v4105_v55 }
  0x80   :  { %613 = vmatpush.msra.mxu0 %v4109_v57  ;;  %633 = vmatpush.msra.mxu1 %v6283_v13 }
  0x81   :  { %653 = vmatpush.msra.mxu2 %v4117_v60  ;;  %673 = vmatpush.msra.mxu3 %v4115_v59 }
  0x82   :  { %614 = vmatpush.msra.mxu0 %v4120_v61  ;;  %634 = vmatpush.msra.mxu1 %v4122_v62 }
  0x83   :  { %654 = vmatpush.msra.mxu2 %v4127_v63  ;;  %674 = vmatpush.msra.mxu3 %v6284_v0 }
  0x84   :  { %615 = vmatpush.msra.mxu0 %v4138_v26  ;;  %635 = vmatpush.msra.mxu1 %v4140_v39 }
  0x85   :  { %655 = vmatpush.msra.mxu2 %v4144_v52  ;;  %675 = vmatpush.msra.mxu3 %v4146_v58 }
  0x86   :  { %756 = vmatpush.msrb.mxu0 %v3945_v1  ;;  %776 = vmatpush.msrb.mxu1 %v3947_v2 }
  0x87   :  { %796 = vmatpush.msrb.mxu2 %v3951_v4  ;;  %816 = vmatpush.msrb.mxu3 %v3949_v3 }
  0x88   :  { %757 = vmatpush.msrb.mxu0 %v3953_v5  ;;  %777 = vmatpush.msrb.mxu1 %v3955_v6 }
  0x89   :  { %797 = vmatpush.msrb.mxu2 %v3961_v8  ;;  %817 = vmatpush.msrb.mxu3 %v3959_v7 }
  0x8a   :  { %758 = vmatpush.msrb.mxu0 %v3964_v9  ;;  %778 = vmatpush.msrb.mxu1 %v3966_v10 }
  0x8b   :  { %798 = vmatpush.msrb.mxu2 %v3973_v12  ;;  %818 = vmatpush.msrb.mxu3 %v3971_v11 }
  0x8c   :  { %759 = vmatpush.msrb.mxu0 %v3982_v14  ;;  %779 = vmatpush.msrb.mxu1 %v3984_v15 }
  0x8d   :  { %799 = vmatpush.msrb.mxu2 %v3990_v17  ;;  %819 = vmatpush.msrb.mxu3 %v3988_v16 }
  0x8e   :  { %760 = vmatpush.msrb.mxu0 %v3992_v18  ;;  %780 = vmatpush.msrb.mxu1 %v3994_v19 }
  0x8f   :  { %800 = vmatpush.msrb.mxu2 %v4000_v21  ;;  %820 = vmatpush.msrb.mxu3 %v3998_v20 }
  0x90   :  { %761 = vmatpush.msrb.mxu0 %v4003_v22  ;;  %781 = vmatpush.msrb.mxu1 %v4005_v23 }
  0x91   :  { %801 = vmatpush.msrb.mxu2 %v4012_v25  ;;  %821 = vmatpush.msrb.mxu3 %v4010_v24 }
  0x92   :  { %762 = vmatpush.msrb.mxu0 %v4021_v27  ;;  %782 = vmatpush.msrb.mxu1 %v4023_v28 }
  0x93   :  { %802 = vmatpush.msrb.mxu2 %v4029_v30  ;;  %822 = vmatpush.msrb.mxu3 %v4027_v29 }
  0x94   :  { %763 = vmatpush.msrb.mxu0 %v4031_v31  ;;  %783 = vmatpush.msrb.mxu1 %v4033_v32 }
  0x95   :  { %803 = vmatpush.msrb.mxu2 %v4039_v34  ;;  %823 = vmatpush.msrb.mxu3 %v4037_v33 }
  0x96   :  { %764 = vmatpush.msrb.mxu0 %v4042_v35  ;;  %784 = vmatpush.msrb.mxu1 %v4044_v36 }
  0x97   :  { %804 = vmatpush.msrb.mxu2 %v4051_v38  ;;  %824 = vmatpush.msrb.mxu3 %v4049_v37 }
  0x98   :  { %765 = vmatpush.msrb.mxu0 %v4060_v40  ;;  %785 = vmatpush.msrb.mxu1 %v4062_v41 }
  0x99   :  { %805 = vmatpush.msrb.mxu2 %v4068_v43  ;;  %825 = vmatpush.msrb.mxu3 %v4066_v42 }
  0x9a   :  { %766 = vmatpush.msrb.mxu0 %v4070_v44  ;;  %786 = vmatpush.msrb.mxu1 %v4072_v45 }
  0x9b   :  { %806 = vmatpush.msrb.mxu2 %v4078_v47  ;;  %826 = vmatpush.msrb.mxu3 %v4076_v46 }
  0x9c   :  { %767 = vmatpush.msrb.mxu0 %v4081_v48  ;;  %787 = vmatpush.msrb.mxu1 %v4083_v49 }
  0x9d   :  { %807 = vmatpush.msrb.mxu2 %v4090_v51  ;;  %827 = vmatpush.msrb.mxu3 %v4088_v50 }
  0x9e   :  { %768 = vmatpush.msrb.mxu0 %v4099_v53  ;;  %788 = vmatpush.msrb.mxu1 %v4101_v54 }
  0x9f   :  { %808 = vmatpush.msrb.mxu2 %v4107_v56  ;;  %828 = vmatpush.msrb.mxu3 %v4105_v55 }
  0xa0   :  { %769 = vmatpush.msrb.mxu0 %v4109_v57  ;;  %789 = vmatpush.msrb.mxu1 %v6283_v13 }
  0xa1   :  { %809 = vmatpush.msrb.mxu2 %v4117_v60  ;;  %829 = vmatpush.msrb.mxu3 %v4115_v59 }
  0xa2   :  { %770 = vmatpush.msrb.mxu0 %v4120_v61  ;;  %790 = vmatpush.msrb.mxu1 %v4122_v62 }
  0xa3   :  { %810 = vmatpush.msrb.mxu2 %v4127_v63  ;;  %830 = vmatpush.msrb.mxu3 %v6284_v0 }
  0xa4   :  { %771 = vmatpush.msrb.mxu0 %v4138_v26  ;;  %791 = vmatpush.msrb.mxu1 %v4140_v39 }
  0xa5   :  { %811 = vmatpush.msrb.mxu2 %v4144_v52  ;;  %831 = vmatpush.msrb.mxu3 %v4146_v58 }
  0xb1   :  { %v195_v13 = vpop.f32.mrf.mxu0  ;;  %v236_v60 = vpop.f32.mrf.mxu1 }
  0xb8   :  { %v277_v57 = vpop.f32.mrf.mxu2  ;;  %v318_v59 = vpop.f32.mrf.mxu3 }
  0xb9   :  { %v4290_v55 = vpop.f32.mrf.mxu0  ;;  %v4292_v61 = vpop.f32.mrf.mxu1 }
  0xba   :  { %6285 = vst [vmem:[#allocation43_spill] sm:$0xff] %v4290_v55 }
  0xbb   :  { %6286 = vst [vmem:[#allocation44_spill] sm:$0xff] %v4292_v61 }
  0xc0   :  { %v4294_v62 = vpop.f32.mrf.mxu2  ;;  %v4296_v63 = vpop.f32.mrf.mxu3 }
  0xc1   :  { %6287 = vst [vmem:[#allocation45_spill] sm:$0xff] %v4294_v62  ;;  %v4298_v0 = vpop.f32.mrf.mxu0  ;;  %v4300_v26 = vpop.f32.mrf.mxu1 }
  0xc2   :  { %6288 = vst [vmem:[#allocation46_spill] sm:$0xff] %v4296_v63 }
  0xc3   :  { %6289 = vst [vmem:[#allocation47_spill] sm:$0xff] %v4298_v0 }
  0xc4   :  { %6290 = vst [vmem:[#allocation48_spill] sm:$0xff] %v4300_v26 }
  0xc8   :  { %v4302_v39 = vpop.f32.mrf.mxu2  ;;  %v4304_v52 = vpop.f32.mrf.mxu3 }
  0xc9   :  { %6291 = vst [vmem:[#allocation49_spill] sm:$0xff] %v4302_v39  ;;  %v4306_v58 = vpop.f32.mrf.mxu0  ;;  %v4308_v56 = vpop.f32.mrf.mxu1 }
  0xca   :  { %6292 = vst [vmem:[#allocation50_spill] sm:$0xff] %v4304_v52 }
  0xcb   :  { %6293 = vst [vmem:[#allocation51_spill] sm:$0xff] %v4306_v58 }
  0xcc   :  { %6294 = vst [vmem:[#allocation52_spill] sm:$0xff] %v4308_v56 }
  0xd0   :  { %v4310_v54 = vpop.f32.mrf.mxu2  ;;  %v4312_v55 = vpop.f32.mrf.mxu3 }
  0xd1   :  { %6295 = vst [vmem:[#allocation53_spill] sm:$0xff] %v4310_v54  ;;  %v4314_v61 = vpop.f32.mrf.mxu0  ;;  %v4316_v62 = vpop.f32.mrf.mxu1 }
  0xd2   :  { %6296 = vst [vmem:[#allocation54_spill] sm:$0xff] %v4312_v55 }
  0xd3   :  { %6297 = vst [vmem:[#allocation55_spill] sm:$0xff] %v4314_v61 }
  0xd4   :  { %6298 = vst [vmem:[#allocation56_spill] sm:$0xff] %v4316_v62 }
  0xd8   :  { %v4318_v63 = vpop.f32.mrf.mxu3  ;;  %v4324_v39 = vpop.f32.mrf.mxu2 }
  0xd9   :  { %6299 = vst [vmem:[#allocation57_spill] sm:$0xff] %v4318_v63  ;;  %v4320_v0 = vpop.f32.mrf.mxu0  ;;  %v4322_v26 = vpop.f32.mrf.mxu1  ;;  %v168_v63 = vld [vmem:[%s5981_s3] sm:$0xf] }
  0xda   :  { %6300 = vst [vmem:[#allocation58_spill] sm:$0xff] %v4320_v0  ;;  %v4353_v51 = vperm.slane %v168_v63, 3 }
  0xdb   :  { %6301 = vst [vmem:[#allocation59_spill] sm:$0xff] %v4322_v26  ;;  %v4343_v26 = vperm.slane %v168_v63, 0 }
  0xdc   :  { %6302 = vst [vmem:[#allocation60_spill] sm:$0xff] %v4324_v39  ;;  %v4345_v39 = vperm.slane %v168_v63, 1  ;;  %v319_v49 = vadd.f32 %v318_v59, %v4353_v51 }
  0xdd   :  { %6310 = vst [vmem:[#allocation68_spill] sm:$0xff] %v4343_v26 }
  0xde   :  { %6311 = vst [vmem:[#allocation69_spill] sm:$0xff] %v4345_v39 }
  0xdf   :  { %6314 = vst [vmem:[#allocation72_spill] sm:$0xff] %v4353_v51 }
  0xe0   :  { %v4326_v52 = vpop.f32.mrf.mxu3  ;;  %v4332_v54 = vpop.f32.mrf.mxu2 }
  0xe1   :  { %6303 = vst [vmem:[#allocation61_spill] sm:$0xff] %v4326_v52  ;;  %v4328_v58 = vpop.f32.mrf.mxu0  ;;  %v4330_v56 = vpop.f32.mrf.mxu1 }
  0xe2   :  { %6304 = vst [vmem:[#allocation62_spill] sm:$0xff] %v4328_v58  ;;  %v237_v58 = vadd.f32 %v236_v60, %v4345_v39 }
  0xe3   :  { %6305 = vst [vmem:[#allocation63_spill] sm:$0xff] %v4330_v56  ;;  %v196_v56 = vadd.f32 %v195_v13, %v4343_v26 }
  0xe4   :  { %6306 = vst [vmem:[#allocation64_spill] sm:$0xff] %v4332_v54 }
  0xe8   :  { %v4334_v55 = vpop.f32.mrf.mxu3  ;;  %v4347_v52 = vpop.f32.mrf.mxu2 }
  0xe9   :  { %6307 = vst [vmem:[#allocation65_spill] sm:$0xff] %v4334_v55  ;;  %v4339_v62 = vpop.f32.mrf.mxu0  ;;  %v4341_v0 = vpop.f32.mrf.mxu1 }
  0xea   :  { %6308 = vst [vmem:[#allocation66_spill] sm:$0xff] %v4339_v62 }
  0xeb   :  { %6309 = vst [vmem:[#allocation67_spill] sm:$0xff] %v4341_v0 }
  0xec   :  { %6312 = vst [vmem:[#allocation70_spill] sm:$0xff] %v4347_v52 }
  0xf0   :  { %v4351_v54 = vpop.f32.mrf.mxu3  ;;  %v4356_v48 = vpop.f32.mrf.mxu2 }
  0xf1   :  { %6313 = vst [vmem:[#allocation71_spill] sm:$0xff] %v4351_v54  ;;  %v462_v55 = vpop.f32.mrf.mxu0  ;;  %v482_v61 = vpop.f32.mrf.mxu1 }
  0xf2   :  { %v525_v53 = vadd.f32 %v462_v55, %v196_v56  ;;  %v526_v50 = vadd.f32 %v482_v61, %v237_v58  ;;  %6315 = vst [vmem:[#allocation73_spill] sm:$0xff] %v4356_v48  ;;  %v4358_v55 = vperm.slane %v168_v63, 2 }
  0xf4   :  { %v3303_v62 = vmul.f32 -1.442695, %v525_v53  ;;  %v3304_v0 = vmul.f32 -1.442695, %v526_v50  ;;  %6316 = vst [vmem:[#allocation74_spill] sm:$0xff] %v4358_v55  ;;  %v278_v56 = vadd.f32 %v277_v57, %v4358_v55 }
  0xf6   :  { %3360 = vpow2.f32 %v3303_v62 }
  0xf7   :  { %3362 = vpow2.f32 %v3304_v0 }
  0xf8   :  { %v522_v52 = vpop.f32.mrf.mxu3  ;;  %v502_v53 = vpop.f32.mrf.mxu2 }
  0xf9   :  { %v528_v13 = vadd.f32 %v522_v52, %v319_v49  ;;  %v527_v61 = vadd.f32 %v502_v53, %v278_v56 }
  0xfb   :  { %v3305_v26 = vmul.f32 -1.442695, %v528_v13 }
  0xfc   :  { %v3361_v60 = vpop.eup %3360 }
  0xfd   :  { %v3363_v39 = vpop.eup %3362  ;;  %v532_v54 = vadd.f32 1.0, %v3361_v60  ;;  %3364 = vpow2.f32 %v3305_v26 }
  0xfe   :  { %v551_v46 = vadd.f32 1.0, %v3363_v39 }
  0xff   :  { %3366 = vrcp.f32 %v532_v54  ;;  %v544_v60 = vand.u32 2147483648, %v532_v54  ;;  %v542_v39 = vand.u32 2147483647, %v532_v54  ;;  %vm538_vm2 = vweird.f32 %v532_v54 }
 0x100   :  { %3368 = vrcp.f32 %v551_v46  ;;  %v563_v26 = vand.u32 2147483648, %v551_v46  ;;  %v561_v51 = vand.u32 2147483647, %v551_v46  ;;  %vm557_vm3 = vweird.f32 %v551_v46 }
 0x101   :  { %v545_v53 = vor.u32 1.1754944e-38, %v544_v60  ;;  %vm543_vm5 = vcmp.eq.f32.partialorder %v542_v39, 8.507059e+37 }
 0x102   :  { %v564_v55 = vor.u32 1.1754944e-38, %v563_v26  ;;  %vm562_vm7 = vcmp.eq.f32.partialorder %v561_v51, 8.507059e+37 }
 0x103   :  { %v3365_v50 = vpop.eup %3364 }
 0x104   :  { %v571_v58 = vadd.f32 1.0, %v3365_v50 }
 0x105   :  { %v3367_v59 = vpop.eup %3366 }
 0x106   :  { %v3369_v62 = vpop.eup %3368  ;;  %v534_v0 = vmul.f32 %v3367_v59, %v532_v54  ;;  %3370 = vrcp.f32 %v571_v58  ;;  %vm539_vm0 = vweird.f32 %v3367_v59  ;;  %vm577_vm9 = vweird.f32 %v571_v58 }
 0x107   :  { %v553_v49 = vmul.f32 %v3369_v62, %v551_v46  ;;  %3372 = vtanh.f32 %v527_v61  ;;  %vm558_vm1 = vweird.f32 %v3369_v62  ;;  %vm540_vm4 = vmor %vm538_vm2, %vm539_vm0  ;;  %v581_v54 = vand.u32 2147483647, %v571_v58 }
 0x108   :  { %v535_v52 = vsub.f32 1.0, %v534_v0  ;;  %vm559_vm6 = vmor %vm557_vm3, %vm558_vm1 }
 0x109   :  { %v554_v13 = vsub.f32 1.0, %v553_v49  ;;  %vm582_vm11 = vcmp.eq.f32.partialorder %v581_v54, 8.507059e+37 }
 0x10a   :  { %v536_v63 = vmul.f32 %v3367_v59, %v535_v52 }
 0x10b   :  { %v555_v48 = vmul.f32 %v3369_v62, %v554_v13 }
 0x10c   :  { %v3371_v47 = vpop.eup %3370  ;;  %v537_v57 = vadd.f32 %v3367_v59, %v536_v63 }
 0x10d   :  { %v556_v50 = vadd.f32 %v3369_v62, %v555_v48  ;;  %v573_v56 = vmul.f32 %v3371_v47, %v571_v58  ;;  %v3373_v61 = vpop.eup %3372  ;;  %vm578_vm8 = vweird.f32 %v3371_v47  ;;  %v583_v48 = vand.u32 2147483648, %v571_v58 }
 0x10e   :  { %v541_v0 = vsel %vm540_vm4, %v3367_v59, %v537_v57  ;;  %vm579_vm10 = vmor %vm577_vm9, %vm578_vm8 }
 0x10f   :  { %v546_v49 = vsel %vm543_vm5, %v545_v53, %v541_v0  ;;  %v560_v52 = vsel %vm559_vm6, %v3369_v62, %v556_v50  ;;  %v574_v45 = vsub.f32 1.0, %v573_v56  ;;  %v584_v60 = vor.u32 1.1754944e-38, %v583_v48  ;;  %v6350_v0 = vld [vmem:[#allocation74_spill] sm:$0xff] }
 0x110   :  { %v565_v13 = vsel %vm562_vm7, %v564_v55, %v560_v52  ;;  %v588_v44 = vmul.f32 %v3373_v61, %v546_v49  ;;  %v6351_v61 = vld [vmem:[#allocation45_spill] sm:$0xff] }
 0x111   :  { %v587_v42 = vmul.f32 0.0, %v565_v13  ;;  %v575_v43 = vmul.f32 %v3371_v47, %v574_v45  ;;  %v281_v49 = vadd.f32 %v6351_v61, %v6350_v0 }
 0x113   :  { %v4361_v63 = vadd.f32 %v588_v44, %v587_v42  ;;  %v576_v46 = vadd.f32 %v3371_v47, %v575_v43  ;;  %v6348_v42 = vld [vmem:[#allocation72_spill] sm:$0xff]  ;;  %v6349_v43 = vld [vmem:[#allocation46_spill] sm:$0xff] }
 0x114   :  { %v322_v44 = vadd.f32 %v6349_v43, %v6348_v42 }
 0x115   :  { %3374 = vtanh.f32 %v4361_v63  ;;  %v580_v59 = vsel %vm579_vm10, %v3371_v47, %v576_v46 }
 0x116   :  { %v585_v51 = vsel %vm582_vm11, %v584_v60, %v580_v59 }
 0x11b   :  { %v3375_v62 = vpop.eup %3374 }
 0x11c   :  { %v4364_v26 = vmul.f32 %v3375_v62, %v585_v51 }
 0x11e   :  { %6317 = vst [vmem:[#allocation75_spill] sm:$0xff] %v4364_v26  ;;  %616 = vmatmul.f32.vlgmr.msra.gmra.mxu0 %v4364_v26  ;;  %636 = vmatmul.f32.vlgmr.msra.gmra.mxu1 %v4364_v26 }
 0x11f   :  { %656 = vmatmul.f32.vlgmr.msra.gmra.mxu2 %v4364_v26  ;;  %676 = vmatmul.f32.vlgmr.msra.gmra.mxu3 %v4364_v26  ;;  %v4548_v26 = vld [vmem:[#allocation7 + $0xe0] sm:$0xff] }
 0x120   :  { %912 = vmatpush.msra.mxu0 %v3945_v1  ;;  %932 = vmatpush.msra.mxu1 %v3947_v2  ;;  %v6318_v1 = vld [vmem:[#allocation18_spill] sm:$0xff]  ;;  %v6319_v2 = vld [vmem:[#allocation17_spill] sm:$0xff] }
 0x121   :  { %952 = vmatpush.msra.mxu2 %v3951_v4  ;;  %972 = vmatpush.msra.mxu3 %v3949_v3  ;;  %v6320_v3 = vld [vmem:[#allocation19_spill] sm:$0xff]  ;;  %v6321_v4 = vld [vmem:[#allocation20_spill] sm:$0xff] }
 0x122   :  { %913 = vmatpush.msra.mxu0 %v3953_v5  ;;  %933 = vmatpush.msra.mxu1 %v3955_v6  ;;  %v6322_v5 = vld [vmem:[#allocation22_spill] sm:$0xff]  ;;  %v6323_v6 = vld [vmem:[#allocation21_spill] sm:$0xff] }
 0x123   :  { %953 = vmatpush.msra.mxu2 %v3961_v8  ;;  %973 = vmatpush.msra.mxu3 %v3959_v7  ;;  %v6324_v7 = vld [vmem:[#allocation23_spill] sm:$0xff]  ;;  %v6325_v8 = vld [vmem:[#allocation24_spill] sm:$0xff] }
 0x124   :  { %914 = vmatpush.msra.mxu0 %v3964_v9  ;;  %934 = vmatpush.msra.mxu1 %v3966_v10  ;;  %v6326_v9 = vld [vmem:[#allocation26_spill] sm:$0xff]  ;;  %v6327_v10 = vld [vmem:[#allocation25_spill] sm:$0xff] }
 0x125   :  { %954 = vmatpush.msra.mxu2 %v3973_v12  ;;  %974 = vmatpush.msra.mxu3 %v3971_v11  ;;  %v6328_v11 = vld [vmem:[#allocation27_spill] sm:$0xff]  ;;  %v6329_v12 = vld [vmem:[#allocation28_spill] sm:$0xff] }
 0x126   :  { %915 = vmatpush.msra.mxu0 %v3982_v14  ;;  %935 = vmatpush.msra.mxu1 %v3984_v15  ;;  %v6330_v14 = vld [vmem:[#allocation30_spill] sm:$0xff]  ;;  %v6331_v15 = vld [vmem:[#allocation29_spill] sm:$0xff] }
 0x127   :  { %955 = vmatpush.msra.mxu2 %v3990_v17  ;;  %975 = vmatpush.msra.mxu3 %v3988_v16  ;;  %v6332_v16 = vld [vmem:[#allocation31_spill] sm:$0xff]  ;;  %v6333_v17 = vld [vmem:[#allocation32_spill] sm:$0xff] }
 0x128   :  { %916 = vmatpush.msra.mxu0 %v3992_v18  ;;  %936 = vmatpush.msra.mxu1 %v3994_v19  ;;  %v6334_v18 = vld [vmem:[#allocation34_spill] sm:$0xff]  ;;  %v6335_v19 = vld [vmem:[#allocation33_spill] sm:$0xff] }
 0x129   :  { %956 = vmatpush.msra.mxu2 %v4000_v21  ;;  %976 = vmatpush.msra.mxu3 %v3998_v20  ;;  %v6336_v20 = vld [vmem:[#allocation35_spill] sm:$0xff]  ;;  %v6337_v21 = vld [vmem:[#allocation36_spill] sm:$0xff] }
 0x12a   :  { %917 = vmatpush.msra.mxu0 %v4003_v22  ;;  %937 = vmatpush.msra.mxu1 %v4005_v23  ;;  %v6338_v22 = vld [vmem:[#allocation37_spill] sm:$0xff]  ;;  %v6339_v23 = vld [vmem:[#allocation38_spill] sm:$0xff] }
 0x12b   :  { %957 = vmatpush.msra.mxu2 %v4012_v25  ;;  %977 = vmatpush.msra.mxu3 %v4010_v24  ;;  %v6340_v24 = vld [vmem:[#allocation39_spill] sm:$0xff]  ;;  %v6341_v25 = vld [vmem:[#allocation40_spill] sm:$0xff] }
 0x12c   :  { %918 = vmatpush.msra.mxu0 %v4021_v27  ;;  %938 = vmatpush.msra.mxu1 %v4023_v28  ;;  %v6342_v27 = vld [vmem:[#allocation41_spill] sm:$0xff]  ;;  %v6343_v28 = vld [vmem:[#allocation42_spill] sm:$0xff] }
 0x12d   :  { %958 = vmatpush.msra.mxu2 %v4029_v30  ;;  %978 = vmatpush.msra.mxu3 %v4027_v29  ;;  %v6344_v29 = vld [vmem:[#allocation68_spill] sm:$0xff]  ;;  %v6345_v30 = vld [vmem:[#allocation43_spill] sm:$0xff] }
 0x12e   :  { %919 = vmatpush.msra.mxu0 %v4031_v31  ;;  %939 = vmatpush.msra.mxu1 %v4033_v32  ;;  %v199_v31 = vadd.f32 %v6345_v30, %v6344_v29  ;;  %v6346_v32 = vld [vmem:[#allocation69_spill] sm:$0xff] }
 0x12f   :  { %959 = vmatpush.msra.mxu2 %v4039_v34  ;;  %979 = vmatpush.msra.mxu3 %v4037_v33  ;;  %v6347_v33 = vld [vmem:[#allocation44_spill] sm:$0xff] }
 0x130   :  { %920 = vmatpush.msra.mxu0 %v4042_v35  ;;  %940 = vmatpush.msra.mxu1 %v4044_v36  ;;  %v240_v34 = vadd.f32 %v6347_v33, %v6346_v32 }
 0x131   :  { %960 = vmatpush.msra.mxu2 %v4051_v38  ;;  %980 = vmatpush.msra.mxu3 %v4049_v37 }
 0x132   :  { %921 = vmatpush.msra.mxu0 %v4060_v40  ;;  %941 = vmatpush.msra.mxu1 %v4062_v41 }
 0x133   :  { %961 = vmatpush.msra.mxu2 %v6318_v1  ;;  %981 = vmatpush.msra.mxu3 %v6319_v2 }
 0x134   :  { %922 = vmatpush.msra.mxu0 %v6320_v3  ;;  %942 = vmatpush.msra.mxu1 %v6321_v4 }
 0x135   :  { %962 = vmatpush.msra.mxu2 %v6322_v5  ;;  %982 = vmatpush.msra.mxu3 %v6323_v6 }
 0x136   :  { %923 = vmatpush.msra.mxu0 %v6324_v7  ;;  %943 = vmatpush.msra.mxu1 %v6325_v8 }
 0x137   :  { %963 = vmatpush.msra.mxu2 %v6326_v9  ;;  %983 = vmatpush.msra.mxu3 %v6327_v10 }
 0x138   :  { %924 = vmatpush.msra.mxu0 %v6328_v11  ;;  %944 = vmatpush.msra.mxu1 %v6329_v12 }
 0x139   :  { %964 = vmatpush.msra.mxu2 %v6330_v14  ;;  %984 = vmatpush.msra.mxu3 %v6331_v15 }
 0x13a   :  { %925 = vmatpush.msra.mxu0 %v6332_v16  ;;  %945 = vmatpush.msra.mxu1 %v6333_v17 }
 0x13b   :  { %965 = vmatpush.msra.mxu2 %v6334_v18  ;;  %985 = vmatpush.msra.mxu3 %v6335_v19 }
 0x13c   :  { %926 = vmatpush.msra.mxu0 %v6336_v20  ;;  %946 = vmatpush.msra.mxu1 %v6337_v21 }
 0x13d   :  { %966 = vmatpush.msra.mxu2 %v6338_v22  ;;  %986 = vmatpush.msra.mxu3 %v6339_v23 }
 0x13e   :  { %927 = vmatpush.msra.mxu0 %v6340_v24  ;;  %947 = vmatpush.msra.mxu1 %v6341_v25 }
 0x13f   :  { %967 = vmatpush.msra.mxu2 %v6342_v27  ;;  %987 = vmatpush.msra.mxu3 %v6343_v28 }
 0x19b   :  { %v617_v35 = vpop.f32.mrf.mxu0  ;;  %v637_v36 = vpop.f32.mrf.mxu1 }
 0x19c   :  { %v680_v37 = vadd.f32 %v617_v35, %v199_v31  ;;  %v681_v38 = vadd.f32 %v637_v36, %v240_v34 }
 0x19e   :  { %v3306_v40 = vmul.f32 -1.442695, %v680_v37  ;;  %v3307_v41 = vmul.f32 -1.442695, %v681_v38 }
 0x1a0   :  { %3376 = vpow2.f32 %v3306_v40 }
 0x1a1   :  { %3378 = vpow2.f32 %v3307_v41 }
 0x1a2   :  { %v677_v45 = vpop.f32.mrf.mxu3  ;;  %v657_v50 = vpop.f32.mrf.mxu2 }
 0x1a3   :  { %v683_v47 = vadd.f32 %v677_v45, %v322_v44  ;;  %v682_v46 = vadd.f32 %v657_v50, %v281_v49 }
 0x1a5   :  { %v3308_v55 = vmul.f32 -1.442695, %v683_v47 }
 0x1a6   :  { %v3377_v58 = vpop.eup %3376 }
 0x1a7   :  { %v3379_v39 = vpop.eup %3378  ;;  %v687_v57 = vadd.f32 1.0, %v3377_v58  ;;  %3380 = vpow2.f32 %v3308_v55 }
 0x1a8   :  { %v706_v53 = vadd.f32 1.0, %v3379_v39 }
 0x1a9   :  { %3382 = vrcp.f32 %v687_v57  ;;  %v699_v51 = vand.u32 2147483648, %v687_v57  ;;  %v697_v33 = vand.u32 2147483647, %v687_v57  ;;  %vm693_vm14 = vweird.f32 %v687_v57 }
 0x1aa   :  { %3384 = vrcp.f32 %v706_v53  ;;  %v718_v30 = vand.u32 2147483648, %v706_v53  ;;  %v716_v35 = vand.u32 2147483647, %v706_v53  ;;  %vm712_vm15 = vweird.f32 %v706_v53 }
 0x1ab   :  { %v700_v38 = vor.u32 1.1754944e-38, %v699_v51  ;;  %vm698_vm2 = vcmp.eq.f32.partialorder %v697_v33, 8.507059e+37  ;;  %v4461_v51 = vld [vmem:[#allocation7 + $0x1f8] sm:$0xff]  ;;  %v4470_v33 = vld [vmem:[#allocation7 + $0x1d0] sm:$0xff] }
 0x1ac   :  { %v719_v43 = vor.u32 1.1754944e-38, %v718_v30  ;;  %vm717_vm3 = vcmp.eq.f32.partialorder %v716_v35, 8.507059e+37  ;;  %v4464_v30 = vld [vmem:[#allocation7 + $0x1c0] sm:$0xff] }
 0x1ad   :  { %v3381_v56 = vpop.eup %3380  ;;  %v4476_v35 = vld [vmem:[#allocation7 + $0x1a0] sm:$0xff] }
 0x1ae   :  { %v726_v52 = vadd.f32 1.0, %v3381_v56 }
 0x1af   :  { %v3383_v13 = vpop.eup %3382 }
 0x1b0   :  { %v3385_v48 = vpop.eup %3384  ;;  %v689_v54 = vmul.f32 %v3383_v13, %v687_v57  ;;  %3386 = vrcp.f32 %v726_v52  ;;  %vm694_vm12 = vweird.f32 %v3383_v13  ;;  %v738_v49 = vand.u32 2147483648, %v726_v52 }
 0x1b1   :  { %v708_v59 = vmul.f32 %v3385_v48, %v706_v53  ;;  %3388 = vtanh.f32 %v682_v46  ;;  %vm713_vm13 = vweird.f32 %v3385_v48  ;;  %vm695_vm0 = vmor %vm693_vm14, %vm694_vm12  ;;  %vm732_vm5 = vweird.f32 %v726_v52 }
 0x1b2   :  { %v690_v60 = vsub.f32 1.0, %v689_v54  ;;  %vm714_vm1 = vmor %vm712_vm15, %vm713_vm13  ;;  %v739_v54 = vor.u32 1.1754944e-38, %v738_v49  ;;  %v4527_v49 = vld [vmem:[#allocation7 + $0x128] sm:$0xff] }
 0x1b3   :  { %v709_v62 = vsub.f32 1.0, %v708_v59 }
 0x1b4   :  { %v691_v31 = vmul.f32 %v3383_v13, %v690_v60 }
 0x1b5   :  { %v710_v34 = vmul.f32 %v3385_v48, %v709_v62  ;;  %v4458_v62 = vld [vmem:[#allocation7 + $0x1f0] sm:$0xff] }
 0x1b6   :  { %v3387_v36 = vpop.eup %3386  ;;  %v692_v37 = vadd.f32 %v3383_v13, %v691_v31  ;;  %v4467_v31 = vld [vmem:[#allocation7 + $0x1c8] sm:$0xff] }
 0x1b7   :  { %v711_v40 = vadd.f32 %v3385_v48, %v710_v34  ;;  %v728_v41 = vmul.f32 %v3387_v36, %v726_v52  ;;  %v3389_v45 = vpop.eup %3388  ;;  %vm733_vm4 = vweird.f32 %v3387_v36  ;;  %v4473_v34 = vld [vmem:[#allocation7 + $0x1d8] sm:$0xff] }
 0x1b8   :  { %v696_v44 = vsel %vm695_vm0, %v3383_v13, %v692_v37  ;;  %v736_v13 = vand.u32 2147483647, %v726_v52  ;;  %vm734_vm6 = vmor %vm732_vm5, %vm733_vm4  ;;  %v4455_v52 = vld [vmem:[#allocation7 + $0x1e8] sm:$0xff]  ;;  %v4482_v37 = vld [vmem:[#allocation7 + $0x1b0] sm:$0xff] }
 0x1b9   :  { %v701_v47 = vsel %vm698_vm2, %v700_v38, %v696_v44  ;;  %v715_v55 = vsel %vm714_vm1, %v3385_v48, %v711_v40  ;;  %v729_v58 = vsub.f32 1.0, %v728_v41  ;;  %v4485_v38 = vld [vmem:[#allocation7 + $0x1b8] sm:$0xff]  ;;  %v4488_v40 = vld [vmem:[#allocation7 + $0x180] sm:$0xff]  ;;  %v4491_v41 = vld [vmem:[#allocation7 + $0x188] sm:$0xff] }
 0x1ba   :  { %v720_v39 = vsel %vm717_vm3, %v719_v43, %v715_v55  ;;  %v743_v50 = vmul.f32 %v3389_v45, %v701_v47  ;;  %vm737_vm7 = vcmp.eq.f32.partialorder %v736_v13, 8.507059e+37  ;;  %v4494_v43 = vld [vmem:[#allocation7 + $0x190] sm:$0xff]  ;;  %v4497_v44 = vld [vmem:[#allocation7 + $0x198] sm:$0xff]  ;;  %v4500_v45 = vld [vmem:[#allocation7 + $0x160] sm:$0xff] }
 0x1bb   :  { %v742_v56 = vmul.f32 %v720_v39, %v4361_v63  ;;  %v730_v61 = vmul.f32 %v3387_v36, %v729_v58  ;;  %v4452_v63 = vld [vmem:[#allocation7 + $0x1e0] sm:$0xff]  ;;  %v4503_v47 = vld [vmem:[#allocation7 + $0x168] sm:$0xff]  ;;  %v4506_v55 = vld [vmem:[#allocation7 + $0x170] sm:$0xff] }
 0x1bc   :  { %v4509_v58 = vld [vmem:[#allocation7 + $0x178] sm:$0xff]  ;;  %v4512_v39 = vld [vmem:[#allocation7 + $0x140] sm:$0xff]  ;;  %v4530_v13 = vld [vmem:[#allocation7 + $0x130] sm:$0xff] }
 0x1bd   :  { %v4443_v57 = vadd.f32 %v743_v50, %v742_v56  ;;  %v731_v53 = vadd.f32 %v3387_v36, %v730_v61  ;;  %v4515_v50 = vld [vmem:[#allocation7 + $0x148] sm:$0xff]  ;;  %v4518_v56 = vld [vmem:[#allocation7 + $0x150] sm:$0xff]  ;;  %v4521_v61 = vld [vmem:[#allocation7 + $0x158] sm:$0xff] }
 0x1bf   :  { %3390 = vtanh.f32 %v4443_v57  ;;  %v735_v46 = vsel %vm734_vm6, %v3387_v36, %v731_v53  ;;  %v4479_v36 = vld [vmem:[#allocation7 + $0x1a8] sm:$0xff]  ;;  %v4524_v53 = vld [vmem:[#allocation7 + $0x120] sm:$0xff] }
 0x1c0   :  { %v740_v59 = vsel %vm737_vm7, %v739_v54, %v735_v46  ;;  %v4533_v46 = vld [vmem:[#allocation7 + $0x138] sm:$0xff]  ;;  %v4536_v54 = vld [vmem:[#allocation7 + $0x100] sm:$0xff] }
 0x1c1   :  { %6353 = vst [vmem:[#allocation17_spill] sm:$0xff] %v4533_v46 }
 0x1c2   :  { %6354 = vst [vmem:[#allocation19_spill] sm:$0xff] %v4536_v54 }
 0x1c5   :  { %v3391_v48 = vpop.eup %3390 }
 0x1c6   :  { %v4446_v60 = vmul.f32 %v3391_v48, %v740_v59  ;;  %v4539_v48 = vld [vmem:[#allocation7 + $0x108] sm:$0xff]  ;;  %v4542_v59 = vld [vmem:[#allocation7 + $0x110] sm:$0xff] }
 0x1c7   :  { %6355 = vst [vmem:[#allocation20_spill] sm:$0xff] %v4539_v48 }
 0x1c8   :  { %6352 = vst [vmem:[#allocation18_spill] sm:$0xff] %v4446_v60  ;;  %772 = vmatmul.f32.vlgmr.msrb.gmra.mxu0 %v4446_v60  ;;  %792 = vmatmul.f32.vlgmr.msrb.gmra.mxu1 %v4446_v60 }
 0x1c9   :  { %812 = vmatmul.f32.vlgmr.msrb.gmra.mxu2 %v4446_v60  ;;  %832 = vmatmul.f32.vlgmr.msrb.gmra.mxu3 %v4446_v60  ;;  %6356 = vst [vmem:[#allocation22_spill] sm:$0xff] %v4542_v59  ;;  %v4545_v60 = vld [vmem:[#allocation7 + $0x118] sm:$0xff] }
 0x1ca   :  { %1068 = vmatpush.msrb.mxu0 %v4452_v63  ;;  %1088 = vmatpush.msrb.mxu1 %v4455_v52  ;;  %6357 = vst [vmem:[#allocation21_spill] sm:$0xff] %v4545_v60 }
 0x1cb   :  { %1108 = vmatpush.msrb.mxu2 %v4458_v62  ;;  %1128 = vmatpush.msrb.mxu3 %v4461_v51 }
 0x1cc   :  { %1069 = vmatpush.msrb.mxu0 %v4464_v30  ;;  %1089 = vmatpush.msrb.mxu1 %v4467_v31 }
 0x1cd   :  { %1109 = vmatpush.msrb.mxu2 %v4470_v33  ;;  %1129 = vmatpush.msrb.mxu3 %v4473_v34 }
 0x1ce   :  { %1070 = vmatpush.msrb.mxu0 %v4476_v35  ;;  %1090 = vmatpush.msrb.mxu1 %v4479_v36 }
 0x1cf   :  { %1110 = vmatpush.msrb.mxu2 %v4482_v37  ;;  %1130 = vmatpush.msrb.mxu3 %v4485_v38 }
 0x1d0   :  { %1071 = vmatpush.msrb.mxu0 %v4488_v40  ;;  %1091 = vmatpush.msrb.mxu1 %v4491_v41 }
 0x1d1   :  { %1111 = vmatpush.msrb.mxu2 %v4494_v43  ;;  %1131 = vmatpush.msrb.mxu3 %v4497_v44 }
 0x1d2   :  { %1072 = vmatpush.msrb.mxu0 %v4500_v45  ;;  %1092 = vmatpush.msrb.mxu1 %v4503_v47 }
 0x1d3   :  { %1112 = vmatpush.msrb.mxu2 %v4506_v55  ;;  %1132 = vmatpush.msrb.mxu3 %v4509_v58 }
 0x1d4   :  { %1073 = vmatpush.msrb.mxu0 %v4512_v39  ;;  %1093 = vmatpush.msrb.mxu1 %v4515_v50 }
 0x1d5   :  { %1113 = vmatpush.msrb.mxu2 %v4518_v56  ;;  %1133 = vmatpush.msrb.mxu3 %v4521_v61 }
 0x1d6   :  { %1074 = vmatpush.msrb.mxu0 %v4524_v53  ;;  %1094 = vmatpush.msrb.mxu1 %v4527_v49 }
 0x1d7   :  { %1114 = vmatpush.msrb.mxu2 %v4530_v13  ;;  %1134 = vmatpush.msrb.mxu3 %v4533_v46  ;;  %v4551_v46 = vld [vmem:[#allocation7 + $0xe8] sm:$0xff] }
 0x1d8   :  { %1075 = vmatpush.msrb.mxu0 %v4536_v54  ;;  %1095 = vmatpush.msrb.mxu1 %v4539_v48  ;;  %v4554_v54 = vld [vmem:[#allocation7 + $0xf0] sm:$0xff]  ;;  %v4557_v48 = vld [vmem:[#allocation7 + $0xf8] sm:$0xff] }
 0x1d9   :  { %1115 = vmatpush.msrb.mxu2 %v4542_v59  ;;  %1135 = vmatpush.msrb.mxu3 %v4545_v60  ;;  %v4560_v59 = vld [vmem:[#allocation7 + $0xc0] sm:$0xff]  ;;  %v4563_v60 = vld [vmem:[#allocation7 + $0xc8] sm:$0xff] }
 0x1da   :  { %1076 = vmatpush.msrb.mxu0 %v4548_v26  ;;  %1096 = vmatpush.msrb.mxu1 %v4551_v46 }
 0x1db   :  { %1116 = vmatpush.msrb.mxu2 %v4554_v54  ;;  %1136 = vmatpush.msrb.mxu3 %v4557_v48 }
 0x1dc   :  { %1077 = vmatpush.msrb.mxu0 %v4560_v59  ;;  %1097 = vmatpush.msrb.mxu1 %v4563_v60 }
 0x1dd   :  { %1117 = vmatpush.msrb.mxu2 %v6318_v1  ;;  %1137 = vmatpush.msrb.mxu3 %v6319_v2  ;;  %v6358_v1 = vld [vmem:[#allocation47_spill] sm:$0xff] }
 0x1de   :  { %1078 = vmatpush.msrb.mxu0 %v6320_v3  ;;  %1098 = vmatpush.msrb.mxu1 %v6321_v4  ;;  %v202_v2 = vadd.f32 %v6358_v1, %v6344_v29  ;;  %v6359_v3 = vld [vmem:[#allocation48_spill] sm:$0xff] }
 0x1df   :  { %1118 = vmatpush.msrb.mxu2 %v6322_v5  ;;  %1138 = vmatpush.msrb.mxu3 %v6323_v6  ;;  %v243_v4 = vadd.f32 %v6359_v3, %v6346_v32 }
 0x1e0   :  { %1079 = vmatpush.msrb.mxu0 %v6324_v7  ;;  %1099 = vmatpush.msrb.mxu1 %v6325_v8 }
 0x1e1   :  { %1119 = vmatpush.msrb.mxu2 %v6326_v9  ;;  %1139 = vmatpush.msrb.mxu3 %v6327_v10 }
 0x1e2   :  { %1080 = vmatpush.msrb.mxu0 %v6328_v11  ;;  %1100 = vmatpush.msrb.mxu1 %v6329_v12  ;;  %v6360_v11 = vld [vmem:[#allocation50_spill] sm:$0xff] }
 0x1e3   :  { %1120 = vmatpush.msrb.mxu2 %v6330_v14  ;;  %1140 = vmatpush.msrb.mxu3 %v6331_v15  ;;  %v325_v12 = vadd.f32 %v6360_v11, %v6348_v42 }
 0x1e4   :  { %1081 = vmatpush.msrb.mxu0 %v6332_v16  ;;  %1101 = vmatpush.msrb.mxu1 %v6333_v17 }
 0x1e5   :  { %1121 = vmatpush.msrb.mxu2 %v6334_v18  ;;  %1141 = vmatpush.msrb.mxu3 %v6335_v19 }
 0x1e6   :  { %1082 = vmatpush.msrb.mxu0 %v6336_v20  ;;  %1102 = vmatpush.msrb.mxu1 %v6337_v21 }
 0x1e7   :  { %1122 = vmatpush.msrb.mxu2 %v6338_v22  ;;  %1142 = vmatpush.msrb.mxu3 %v6339_v23  ;;  %v6361_v23 = vld [vmem:[#allocation49_spill] sm:$0xff] }
 0x1e8   :  { %1083 = vmatpush.msrb.mxu0 %v6340_v24  ;;  %1103 = vmatpush.msrb.mxu1 %v6341_v25  ;;  %v284_v24 = vadd.f32 %v6361_v23, %v6350_v0 }
 0x1e9   :  { %1123 = vmatpush.msrb.mxu2 %v6342_v27  ;;  %1143 = vmatpush.msrb.mxu3 %v6343_v28 }
 0x245   :  { %v773_v5 = vpop.f32.mrf.mxu0  ;;  %v793_v6 = vpop.f32.mrf.mxu1 }
 0x246   :  { %v836_v7 = vadd.f32 %v773_v5, %v202_v2  ;;  %v837_v8 = vadd.f32 %v793_v6, %v243_v4 }
 0x248   :  { %v3309_v9 = vmul.f32 -1.442695, %v836_v7  ;;  %v3310_v10 = vmul.f32 -1.442695, %v837_v8 }
 0x24a   :  { %3392 = vpow2.f32 %v3309_v9 }
 0x24b   :  { %3394 = vpow2.f32 %v3310_v10 }
 0x24c   :  { %v833_v14 = vpop.f32.mrf.mxu3  ;;  %v813_v21 = vpop.f32.mrf.mxu2 }
 0x24d   :  { %v839_v15 = vadd.f32 %v833_v14, %v325_v12  ;;  %v838_v28 = vadd.f32 %v813_v21, %v284_v24 }
 0x24f   :  { %v3311_v16 = vmul.f32 -1.442695, %v839_v15 }
 0x250   :  { %v3393_v17 = vpop.eup %3392 }
 0x251   :  { %v3395_v18 = vpop.eup %3394  ;;  %v843_v19 = vadd.f32 1.0, %v3393_v17  ;;  %3396 = vpow2.f32 %v3311_v16 }
 0x252   :  { %v862_v20 = vadd.f32 1.0, %v3395_v18 }
 0x253   :  { %3398 = vrcp.f32 %v843_v19  ;;  %v855_v6 = vand.u32 2147483648, %v843_v19  ;;  %v853_v9 = vand.u32 2147483647, %v843_v19  ;;  %vm849_vm10 = vweird.f32 %v843_v19 }
 0x254   :  { %3400 = vrcp.f32 %v862_v20  ;;  %v874_v7 = vand.u32 2147483648, %v862_v20  ;;  %v872_v11 = vand.u32 2147483647, %v862_v20  ;;  %vm868_vm11 = vweird.f32 %v862_v20 }
 0x255   :  { %v856_v15 = vor.u32 1.1754944e-38, %v855_v6  ;;  %vm854_vm14 = vcmp.eq.f32.partialorder %v853_v9, 8.507059e+37 }
 0x256   :  { %v875_v18 = vor.u32 1.1754944e-38, %v874_v7  ;;  %vm873_vm15 = vcmp.eq.f32.partialorder %v872_v11, 8.507059e+37  ;;  %v6365_v11 = vld [vmem:[#allocation20_spill] sm:$0xff] }
 0x257   :  { %v3397_v22 = vpop.eup %3396 }
 0x258   :  { %v882_v25 = vadd.f32 1.0, %v3397_v22 }
 0x259   :  { %v3399_v27 = vpop.eup %3398 }
 0x25a   :  { %v3401_v1 = vpop.eup %3400  ;;  %v845_v2 = vmul.f32 %v3399_v27, %v843_v19  ;;  %3402 = vrcp.f32 %v882_v25  ;;  %vm850_vm8 = vweird.f32 %v3399_v27  ;;  %v894_v6 = vand.u32 2147483648, %v882_v25 }
 0x25b   :  { %v864_v3 = vmul.f32 %v3401_v1, %v862_v20  ;;  %3404 = vtanh.f32 %v838_v28  ;;  %vm869_vm9 = vweird.f32 %v3401_v1  ;;  %vm851_vm12 = vmor %vm849_vm10, %vm850_vm8  ;;  %vm888_vm1 = vweird.f32 %v882_v25 }
 0x25c   :  { %v846_v4 = vsub.f32 1.0, %v845_v2  ;;  %vm870_vm13 = vmor %vm868_vm11, %vm869_vm9 }
 0x25d   :  { %v865_v5 = vsub.f32 1.0, %v864_v3 }
 0x25e   :  { %v847_v8 = vmul.f32 %v3399_v27, %v846_v4 }
 0x25f   :  { %v866_v10 = vmul.f32 %v3401_v1, %v865_v5 }
 0x260   :  { %v3403_v12 = vpop.eup %3402  ;;  %v848_v14 = vadd.f32 %v3399_v27, %v847_v8  ;;  %v895_v8 = vor.u32 1.1754944e-38, %v894_v6  ;;  %v4690_v6 = vld [vmem:[#allocation7 + $0x40] sm:$0xff] }
 0x261   :  { %v867_v16 = vadd.f32 %v3401_v1, %v866_v10  ;;  %v884_v17 = vmul.f32 %v3403_v12, %v882_v25  ;;  %v3405_v22 = vpop.eup %3404  ;;  %vm889_vm0 = vweird.f32 %v3403_v12  ;;  %6382 = vst [vmem:[#allocation38_spill] sm:$0xff] %v4690_v6 }
 0x262   :  { %v852_v21 = vsel %vm851_vm12, %v3399_v27, %v848_v14  ;;  %v892_v27 = vand.u32 2147483647, %v882_v25  ;;  %vm890_vm2 = vmor %vm888_vm1, %vm889_vm0  ;;  %v6364_v25 = vld [vmem:[#allocation19_spill] sm:$0xff]  ;;  %v6367_v14 = vld [vmem:[#allocation21_spill] sm:$0xff] }
 0x263   :  { %v857_v23 = vsel %vm854_vm14, %v856_v15, %v852_v21  ;;  %v871_v24 = vsel %vm870_vm13, %v3401_v1, %v867_v16  ;;  %v885_v28 = vsub.f32 1.0, %v884_v17  ;;  %v4648_v15 = vld [vmem:[#allocation7 + $0xd0] sm:$0xff]  ;;  %v4651_v16 = vld [vmem:[#allocation7 + $0xd8] sm:$0xff]  ;;  %v4654_v17 = vld [vmem:[#allocation7 + $0xa0] sm:$0xff] }
 0x264   :  { %v876_v2 = vsel %vm873_vm15, %v875_v18, %v871_v24  ;;  %v899_v3 = vmul.f32 %v3405_v22, %v857_v23  ;;  %vm893_vm3 = vcmp.eq.f32.partialorder %v892_v27, 8.507059e+37  ;;  %6368 = vst [vmem:[#allocation24_spill] sm:$0xff] %v4648_v15  ;;  %v4657_v18 = vld [vmem:[#allocation7 + $0xa8] sm:$0xff]  ;;  %v4660_v21 = vld [vmem:[#allocation7 + $0xb0] sm:$0xff]  ;;  %v4663_v22 = vld [vmem:[#allocation7 + $0xb8] sm:$0xff] }
 0x265   :  { %v898_v4 = vmul.f32 %v876_v2, %v4443_v57  ;;  %v886_v5 = vmul.f32 %v3403_v12, %v885_v28  ;;  %v6363_v57 = vld [vmem:[#allocation17_spill] sm:$0xff]  ;;  %6369 = vst [vmem:[#allocation26_spill] sm:$0xff] %v4651_v16  ;;  %v4672_v28 = vld [vmem:[#allocation7 + $0x90] sm:$0xff]  ;;  %v4675_v2 = vld [vmem:[#allocation7 + $0x98] sm:$0xff] }
 0x266   :  { %6370 = vst [vmem:[#allocation25_spill] sm:$0xff] %v4654_v17  ;;  %v4666_v23 = vld [vmem:[#allocation7 + $0x80] sm:$0xff]  ;;  %v4669_v24 = vld [vmem:[#allocation7 + $0x88] sm:$0xff] }
 0x267   :  { %v4601_v19 = vadd.f32 %v899_v3, %v898_v4  ;;  %v887_v20 = vadd.f32 %v3403_v12, %v886_v5  ;;  %6371 = vst [vmem:[#allocation27_spill] sm:$0xff] %v4657_v18  ;;  %v4678_v3 = vld [vmem:[#allocation7 + $0x60] sm:$0xff]  ;;  %v4681_v4 = vld [vmem:[#allocation7 + $0x68] sm:$0xff]  ;;  %v4684_v5 = vld [vmem:[#allocation7 + $0x70] sm:$0xff] }
 0x268   :  { %6372 = vst [vmem:[#allocation28_spill] sm:$0xff] %v4660_v21  ;;  %v4693_v27 = vld [vmem:[#allocation7 + $0x48] sm:$0xff] }
 0x269   :  { %3406 = vtanh.f32 %v4601_v19  ;;  %v891_v7 = vsel %vm890_vm2, %v3403_v12, %v887_v20  ;;  %v6366_v12 = vld [vmem:[#allocation22_spill] sm:$0xff]  ;;  %6373 = vst [vmem:[#allocation30_spill] sm:$0xff] %v4663_v22  ;;  %v4687_v20 = vld [vmem:[#allocation7 + $0x78] sm:$0xff] }
 0x26a   :  { %v896_v9 = vsel %vm893_vm3, %v895_v8, %v891_v7  ;;  %6374 = vst [vmem:[#allocation29_spill] sm:$0xff] %v4666_v23  ;;  %v4696_v7 = vld [vmem:[#allocation7 + $0x50] sm:$0xff]  ;;  %v4699_v8 = vld [vmem:[#allocation7 + $0x58] sm:$0xff] }
 0x26b   :  { %6375 = vst [vmem:[#allocation31_spill] sm:$0xff] %v4669_v24 }
 0x26c   :  { %6376 = vst [vmem:[#allocation32_spill] sm:$0xff] %v4672_v28 }
 0x26d   :  { %6377 = vst [vmem:[#allocation34_spill] sm:$0xff] %v4675_v2 }
 0x26e   :  { %6378 = vst [vmem:[#allocation33_spill] sm:$0xff] %v4678_v3 }
 0x26f   :  { %v3407_v1 = vpop.eup %3406  ;;  %6379 = vst [vmem:[#allocation35_spill] sm:$0xff] %v4681_v4 }
 0x270   :  { %v4604_v10 = vmul.f32 %v3407_v1, %v896_v9  ;;  %6380 = vst [vmem:[#allocation36_spill] sm:$0xff] %v4684_v5  ;;  %v4702_v1 = vld [vmem:[#allocation7 + $0x20] sm:$0xff]  ;;  %v4705_v9 = vld [vmem:[#allocation7 + $0x28] sm:$0xff] }
 0x271   :  { %6381 = vst [vmem:[#allocation37_spill] sm:$0xff] %v4687_v20 }
 0x272   :  { %6362 = vst [vmem:[#allocation23_spill] sm:$0xff] %v4604_v10  ;;  %928 = vmatmul.f32.vlgmr.msra.gmra.mxu0 %v4604_v10  ;;  %948 = vmatmul.f32.vlgmr.msra.gmra.mxu1 %v4604_v10 }
 0x273   :  { %968 = vmatmul.f32.vlgmr.msra.gmra.mxu2 %v4604_v10  ;;  %988 = vmatmul.f32.vlgmr.msra.gmra.mxu3 %v4604_v10  ;;  %6383 = vst [vmem:[#allocation39_spill] sm:$0xff] %v4693_v27  ;;  %v4708_v10 = vld [vmem:[#allocation7 + $0x30] sm:$0xff] }
 0x274   :  { %1224 = vmatpush.msra.mxu0 %v4452_v63  ;;  %1244 = vmatpush.msra.mxu1 %v4455_v52  ;;  %6384 = vst [vmem:[#allocation40_spill] sm:$0xff] %v4696_v7 }
 0x275   :  { %1264 = vmatpush.msra.mxu2 %v4458_v62  ;;  %1284 = vmatpush.msra.mxu3 %v4461_v51  ;;  %6385 = vst [vmem:[#allocation41_spill] sm:$0xff] %v4699_v8 }
 0x276   :  { %1225 = vmatpush.msra.mxu0 %v4464_v30  ;;  %1245 = vmatpush.msra.mxu1 %v4467_v31  ;;  %6386 = vst [vmem:[#allocation42_spill] sm:$0xff] %v4702_v1 }
 0x277   :  { %1265 = vmatpush.msra.mxu2 %v4470_v33  ;;  %1285 = vmatpush.msra.mxu3 %v4473_v34  ;;  %6387 = vst [vmem:[#allocation43_spill] sm:$0xff] %v4705_v9 }
 0x278   :  { %1226 = vmatpush.msra.mxu0 %v4476_v35  ;;  %1246 = vmatpush.msra.mxu1 %v4479_v36  ;;  %6388 = vst [vmem:[#allocation44_spill] sm:$0xff] %v4708_v10 }
 0x279   :  { %1266 = vmatpush.msra.mxu2 %v4482_v37  ;;  %1286 = vmatpush.msra.mxu3 %v4485_v38 }
 0x27a   :  { %1227 = vmatpush.msra.mxu0 %v4488_v40  ;;  %1247 = vmatpush.msra.mxu1 %v4491_v41 }
 0x27b   :  { %1267 = vmatpush.msra.mxu2 %v4494_v43  ;;  %1287 = vmatpush.msra.mxu3 %v4497_v44 }
 0x27c   :  { %1228 = vmatpush.msra.mxu0 %v4500_v45  ;;  %1248 = vmatpush.msra.mxu1 %v4503_v47 }
 0x27d   :  { %1268 = vmatpush.msra.mxu2 %v4506_v55  ;;  %1288 = vmatpush.msra.mxu3 %v4509_v58 }
 0x27e   :  { %1229 = vmatpush.msra.mxu0 %v4512_v39  ;;  %1249 = vmatpush.msra.mxu1 %v4515_v50 }
 0x27f   :  { %1269 = vmatpush.msra.mxu2 %v4518_v56  ;;  %1289 = vmatpush.msra.mxu3 %v4521_v61 }
 0x280   :  { %1230 = vmatpush.msra.mxu0 %v4524_v53  ;;  %1250 = vmatpush.msra.mxu1 %v4527_v49 }
 0x281   :  { %1270 = vmatpush.msra.mxu2 %v4530_v13  ;;  %1290 = vmatpush.msra.mxu3 %v6363_v57 }
 0x282   :  { %1231 = vmatpush.msra.mxu0 %v6364_v25  ;;  %1251 = vmatpush.msra.mxu1 %v6365_v11 }
 0x283   :  { %1271 = vmatpush.msra.mxu2 %v6366_v12  ;;  %1291 = vmatpush.msra.mxu3 %v6367_v14 }
 0x284   :  { %1232 = vmatpush.msra.mxu0 %v4548_v26  ;;  %1252 = vmatpush.msra.mxu1 %v4551_v46 }
 0x285   :  { %1272 = vmatpush.msra.mxu2 %v4554_v54  ;;  %1292 = vmatpush.msra.mxu3 %v4557_v48 }
 0x286   :  { %1233 = vmatpush.msra.mxu0 %v4560_v59  ;;  %1253 = vmatpush.msra.mxu1 %v4563_v60 }
 0x287   :  { %1273 = vmatpush.msra.mxu2 %v4648_v15  ;;  %1293 = vmatpush.msra.mxu3 %v4651_v16 }
 0x288   :  { %1234 = vmatpush.msra.mxu0 %v4654_v17  ;;  %1254 = vmatpush.msra.mxu1 %v4657_v18 }
 0x289   :  { %1274 = vmatpush.msra.mxu2 %v4660_v21  ;;  %1294 = vmatpush.msra.mxu3 %v4663_v22 }
 0x28a   :  { %1235 = vmatpush.msra.mxu0 %v4666_v23  ;;  %1255 = vmatpush.msra.mxu1 %v4669_v24 }
 0x28b   :  { %1275 = vmatpush.msra.mxu2 %v4672_v28  ;;  %1295 = vmatpush.msra.mxu3 %v4675_v2  ;;  %v6396_v28 = vld [vmem:[#allocation54_spill] sm:$0xff] }
 0x28c   :  { %1236 = vmatpush.msra.mxu0 %v4678_v3  ;;  %1256 = vmatpush.msra.mxu1 %v4681_v4 }
 0x28d   :  { %1276 = vmatpush.msra.mxu2 %v4684_v5  ;;  %1296 = vmatpush.msra.mxu3 %v4687_v20 }
 0x28e   :  { %1237 = vmatpush.msra.mxu0 %v4690_v6  ;;  %1257 = vmatpush.msra.mxu1 %v4693_v27  ;;  %v4711_v27 = vld [vmem:[#allocation7 + $0x38] sm:$0xff] }
 0x28f   :  { %1277 = vmatpush.msra.mxu2 %v4696_v7  ;;  %1297 = vmatpush.msra.mxu3 %v4699_v8  ;;  %6389 = vst [vmem:[#allocation46_spill] sm:$0xff] %v4711_v27  ;;  %v4714_v7 = vld [vmem:[#allocation7] sm:$0xff]  ;;  %v4717_v8 = vld [vmem:[#allocation7 + $0x8] sm:$0xff] }
 0x290   :  { %1238 = vmatpush.msra.mxu0 %v4702_v1  ;;  %1258 = vmatpush.msra.mxu1 %v4705_v9  ;;  %6390 = vst [vmem:[#allocation45_spill] sm:$0xff] %v4714_v7  ;;  %v4720_v1 = vld [vmem:[#allocation7 + $0x10] sm:$0xff]  ;;  %v4723_v9 = vld [vmem:[#allocation7 + $0x18] sm:$0xff] }
 0x291   :  { %1278 = vmatpush.msra.mxu2 %v4708_v10  ;;  %1298 = vmatpush.msra.mxu3 %v4711_v27  ;;  %6391 = vst [vmem:[#allocation47_spill] sm:$0xff] %v4717_v8  ;;  %v6394_v10 = vld [vmem:[#allocation51_spill] sm:$0xff]  ;;  %v6395_v27 = vld [vmem:[#allocation52_spill] sm:$0xff] }
 0x292   :  { %1239 = vmatpush.msra.mxu0 %v4714_v7  ;;  %1259 = vmatpush.msra.mxu1 %v4717_v8  ;;  %6392 = vst [vmem:[#allocation48_spill] sm:$0xff] %v4720_v1  ;;  %v205_v6 = vadd.f32 %v6394_v10, %v6344_v29  ;;  %v246_v20 = vadd.f32 %v6395_v27, %v6346_v32 }
 0x293   :  { %1279 = vmatpush.msra.mxu2 %v4720_v1  ;;  %6393 = vst [vmem:[#allocation50_spill] sm:$0xff] %v4723_v9  ;;  %1299 = vmatpush.msra.mxu3 %v4723_v9  ;;  %v328_v1 = vadd.f32 %v6396_v28, %v6348_v42 }
 0x2ef   :  { %v929_v5 = vpop.f32.mrf.mxu0  ;;  %v949_v7 = vpop.f32.mrf.mxu1 }
 0x2f0   :  { %v992_v4 = vadd.f32 %v929_v5, %v205_v6  ;;  %v993_v3 = vadd.f32 %v949_v7, %v246_v20 }
 0x2f2   :  { %v3312_v2 = vmul.f32 -1.442695, %v992_v4  ;;  %v3313_v8 = vmul.f32 -1.442695, %v993_v3  ;;  %v6397_v4 = vld [vmem:[#allocation53_spill] sm:$0xff] }
 0x2f3   :  { %v287_v3 = vadd.f32 %v6397_v4, %v6350_v0 }
 0x2f4   :  { %3408 = vpow2.f32 %v3312_v2 }
 0x2f5   :  { %3410 = vpow2.f32 %v3313_v8 }
 0x2f6   :  { %v989_v24 = vpop.f32.mrf.mxu3  ;;  %v969_v27 = vpop.f32.mrf.mxu2 }
 0x2f7   :  { %v995_v23 = vadd.f32 %v989_v24, %v328_v1  ;;  %v994_v6 = vadd.f32 %v969_v27, %v287_v3 }
 0x2f9   :  { %v3314_v9 = vmul.f32 -1.442695, %v995_v23 }
 0x2fa   :  { %v3409_v22 = vpop.eup %3408 }
 0x2fb   :  { %v3411_v21 = vpop.eup %3410  ;;  %v999_v10 = vadd.f32 1.0, %v3409_v22  ;;  %3412 = vpow2.f32 %v3314_v9 }
 0x2fc   :  { %v1018_v29 = vadd.f32 1.0, %v3411_v21 }
 0x2fd   :  { %3414 = vrcp.f32 %v999_v10  ;;  %v1011_v1 = vand.u32 2147483648, %v999_v10  ;;  %v1009_v9 = vand.u32 2147483647, %v999_v10  ;;  %vm1005_vm6 = vweird.f32 %v999_v10 }
 0x2fe   :  { %3416 = vrcp.f32 %v1018_v29  ;;  %v1030_v22 = vand.u32 2147483648, %v1018_v29  ;;  %v1028_v32 = vand.u32 2147483647, %v1018_v29  ;;  %vm1024_vm7 = vweird.f32 %v1018_v29 }
 0x2ff   :  { %v1012_v27 = vor.u32 1.1754944e-38, %v1011_v1  ;;  %vm1010_vm10 = vcmp.eq.f32.partialorder %v1009_v9, 8.507059e+37 }
 0x300   :  { %vm1029_vm11 = vcmp.eq.f32.partialorder %v1028_v32, 8.507059e+37 }
 0x301   :  { %v3413_v5 = vpop.eup %3412 }
 0x302   :  { %v1038_v2 = vadd.f32 1.0, %v3413_v5 }
 0x303   :  { %v3415_v20 = vpop.eup %3414 }
 0x304   :  { %v3417_v28 = vpop.eup %3416  ;;  %v1001_v7 = vmul.f32 %v3415_v20, %v999_v10  ;;  %3418 = vrcp.f32 %v1038_v2  ;;  %vm1006_vm4 = vweird.f32 %v3415_v20  ;;  %vm1044_vm13 = vweird.f32 %v1038_v2 }
 0x305   :  { %v1020_v24 = vmul.f32 %v3417_v28, %v1018_v29  ;;  %3420 = vtanh.f32 %v994_v6  ;;  %vm1025_vm5 = vweird.f32 %v3417_v28  ;;  %vm1007_vm8 = vmor %vm1005_vm6, %vm1006_vm4 }
 0x306   :  { %v1002_v23 = vsub.f32 1.0, %v1001_v7  ;;  %vm1026_vm9 = vmor %vm1024_vm7, %vm1025_vm5  ;;  %v1031_v7 = vor.u32 1.1754944e-38, %v1030_v22 }
 0x307   :  { %v1021_v8 = vsub.f32 1.0, %v1020_v24 }
 0x308   :  { %v1003_v21 = vmul.f32 %v3415_v20, %v1002_v23 }
 0x309   :  { %v1022_v42 = vmul.f32 %v3417_v28, %v1021_v8 }
 0x30a   :  { %v3419_v18 = vpop.eup %3418  ;;  %v1004_v4 = vadd.f32 %v3415_v20, %v1003_v21 }
 0x30b   :  { %v1023_v5 = vadd.f32 %v3417_v28, %v1022_v42  ;;  %v1040_v3 = vmul.f32 %v3419_v18, %v1038_v2  ;;  %v3421_v6 = vpop.eup %3420  ;;  %vm1045_vm12 = vweird.f32 %v3419_v18  ;;  %v1050_v42 = vand.u32 2147483648, %v1038_v2 }
 0x30c   :  { %v1008_v24 = vsel %vm1007_vm8, %v3415_v20, %v1004_v4  ;;  %v1048_v20 = vand.u32 2147483647, %v1038_v2  ;;  %vm1046_vm14 = vmor %vm1044_vm13, %vm1045_vm12  ;;  %v6405_v2 = vld [vmem:[#allocation29_spill] sm:$0xff]  ;;  %v6406_v4 = vld [vmem:[#allocation31_spill] sm:$0xff] }
 0x30d   :  { %v1013_v0 = vsel %vm1010_vm10, %v1012_v27, %v1008_v24  ;;  %v1027_v23 = vsel %vm1026_vm9, %v3417_v28, %v1023_v5  ;;  %v1041_v17 = vsub.f32 1.0, %v1040_v3  ;;  %v1051_v22 = vor.u32 1.1754944e-38, %v1050_v42  ;;  %v6407_v27 = vld [vmem:[#allocation32_spill] sm:$0xff]  ;;  %v6408_v5 = vld [vmem:[#allocation34_spill] sm:$0xff]  ;;  %v6409_v3 = vld [vmem:[#allocation33_spill] sm:$0xff] }
 0x30e   :  { %v1032_v8 = vsel %vm1029_vm11, %v1031_v7, %v1027_v23  ;;  %v1055_v16 = vmul.f32 %v3421_v6, %v1013_v0  ;;  %vm1049_vm15 = vcmp.eq.f32.partialorder %v1048_v20, 8.507059e+37  ;;  %v6399_v0 = vld [vmem:[#allocation24_spill] sm:$0xff]  ;;  %v6410_v7 = vld [vmem:[#allocation35_spill] sm:$0xff]  ;;  %v6412_v6 = vld [vmem:[#allocation37_spill] sm:$0xff] }
 0x30f   :  { %v1054_v15 = vmul.f32 %v1032_v8, %v4601_v19  ;;  %v1042_v21 = vmul.f32 %v3419_v18, %v1041_v17  ;;  %v6400_v19 = vld [vmem:[#allocation26_spill] sm:$0xff]  ;;  %v6403_v17 = vld [vmem:[#allocation28_spill] sm:$0xff]  ;;  %v6414_v8 = vld [vmem:[#allocation39_spill] sm:$0xff] }
 0x310   :  { %v6411_v24 = vld [vmem:[#allocation36_spill] sm:$0xff]  ;;  %v6413_v23 = vld [vmem:[#allocation38_spill] sm:$0xff]  ;;  %v6418_v20 = vld [vmem:[#allocation43_spill] sm:$0xff] }
 0x311   :  { %v4735_v10 = vadd.f32 %v1055_v16, %v1054_v15  ;;  %v1043_v29 = vadd.f32 %v3419_v18, %v1042_v21  ;;  %v6401_v15 = vld [vmem:[#allocation25_spill] sm:$0xff]  ;;  %v6402_v16 = vld [vmem:[#allocation27_spill] sm:$0xff]  ;;  %v6415_v21 = vld [vmem:[#allocation40_spill] sm:$0xff] }
 0x312   :  { %v6417_v42 = vld [vmem:[#allocation42_spill] sm:$0xff] }
 0x313   :  { %3422 = vtanh.f32 %v4735_v10  ;;  %v1047_v1 = vsel %vm1046_vm14, %v3419_v18, %v1043_v29  ;;  %v6404_v18 = vld [vmem:[#allocation30_spill] sm:$0xff]  ;;  %v6416_v29 = vld [vmem:[#allocation41_spill] sm:$0xff] }
 0x314   :  { %v1052_v28 = vsel %vm1049_vm15, %v1051_v22, %v1047_v1  ;;  %v6419_v1 = vld [vmem:[#allocation44_spill] sm:$0xff]  ;;  %v6420_v22 = vld [vmem:[#allocation46_spill] sm:$0xff] }
 0x319   :  { %v3423_v32 = vpop.eup %3422 }
 0x31a   :  { %v4738_v9 = vmul.f32 %v3423_v32, %v1052_v28  ;;  %v6421_v32 = vld [vmem:[#allocation45_spill] sm:$0xff]  ;;  %v6422_v28 = vld [vmem:[#allocation47_spill] sm:$0xff] }
 0x31c   :  { %6398 = vst [vmem:[#allocation49_spill] sm:$0xff] %v4738_v9  ;;  %1084 = vmatmul.f32.vlgmr.msrb.gmra.mxu0 %v4738_v9  ;;  %1104 = vmatmul.f32.vlgmr.msrb.gmra.mxu1 %v4738_v9 }
 0x31d   :  { %1124 = vmatmul.f32.vlgmr.msrb.gmra.mxu2 %v4738_v9  ;;  %1144 = vmatmul.f32.vlgmr.msrb.gmra.mxu3 %v4738_v9  ;;  %v6423_v9 = vld [vmem:[#allocation48_spill] sm:$0xff] }
 0x31e   :  { %1380 = vmatpush.msrb.mxu0 %v4452_v63  ;;  %1400 = vmatpush.msrb.mxu1 %v4455_v52 }
 0x31f   :  { %1420 = vmatpush.msrb.mxu2 %v4458_v62  ;;  %1440 = vmatpush.msrb.mxu3 %v4461_v51 }
 0x320   :  { %1381 = vmatpush.msrb.mxu0 %v4464_v30  ;;  %1401 = vmatpush.msrb.mxu1 %v4467_v31 }
 0x321   :  { %1421 = vmatpush.msrb.mxu2 %v4470_v33  ;;  %1441 = vmatpush.msrb.mxu3 %v4473_v34 }
 0x322   :  { %1382 = vmatpush.msrb.mxu0 %v4476_v35  ;;  %1402 = vmatpush.msrb.mxu1 %v4479_v36 }
 0x323   :  { %1422 = vmatpush.msrb.mxu2 %v4482_v37  ;;  %1442 = vmatpush.msrb.mxu3 %v4485_v38 }
 0x324   :  { %1383 = vmatpush.msrb.mxu0 %v4488_v40  ;;  %1403 = vmatpush.msrb.mxu1 %v4491_v41 }
 0x325   :  { %1423 = vmatpush.msrb.mxu2 %v4494_v43  ;;  %1443 = vmatpush.msrb.mxu3 %v4497_v44 }
 0x326   :  { %1384 = vmatpush.msrb.mxu0 %v4500_v45  ;;  %1404 = vmatpush.msrb.mxu1 %v4503_v47 }
 0x327   :  { %1424 = vmatpush.msrb.mxu2 %v4506_v55  ;;  %1444 = vmatpush.msrb.mxu3 %v4509_v58 }
 0x328   :  { %1385 = vmatpush.msrb.mxu0 %v4512_v39  ;;  %1405 = vmatpush.msrb.mxu1 %v4515_v50 }
 0x329   :  { %1425 = vmatpush.msrb.mxu2 %v4518_v56  ;;  %1445 = vmatpush.msrb.mxu3 %v4521_v61 }
 0x32a   :  { %1386 = vmatpush.msrb.mxu0 %v4524_v53  ;;  %1406 = vmatpush.msrb.mxu1 %v4527_v49 }
 0x32b   :  { %1426 = vmatpush.msrb.mxu2 %v4530_v13  ;;  %1446 = vmatpush.msrb.mxu3 %v6363_v57 }
 0x32c   :  { %1387 = vmatpush.msrb.mxu0 %v6364_v25  ;;  %1407 = vmatpush.msrb.mxu1 %v6365_v11 }
 0x32d   :  { %1427 = vmatpush.msrb.mxu2 %v6366_v12  ;;  %1447 = vmatpush.msrb.mxu3 %v6367_v14 }
 0x32e   :  { %1388 = vmatpush.msrb.mxu0 %v4548_v26  ;;  %1408 = vmatpush.msrb.mxu1 %v4551_v46 }
 0x32f   :  { %1428 = vmatpush.msrb.mxu2 %v4554_v54  ;;  %1448 = vmatpush.msrb.mxu3 %v4557_v48 }
 0x330   :  { %1389 = vmatpush.msrb.mxu0 %v4560_v59  ;;  %1409 = vmatpush.msrb.mxu1 %v4563_v60 }
 0x331   :  { %1429 = vmatpush.msrb.mxu2 %v6399_v0  ;;  %1449 = vmatpush.msrb.mxu3 %v6400_v19 }
 0x332   :  { %1390 = vmatpush.msrb.mxu0 %v6401_v15  ;;  %1410 = vmatpush.msrb.mxu1 %v6402_v16 }
 0x333   :  { %1430 = vmatpush.msrb.mxu2 %v6403_v17  ;;  %1450 = vmatpush.msrb.mxu3 %v6404_v18 }
 0x334   :  { %1391 = vmatpush.msrb.mxu0 %v6405_v2  ;;  %1411 = vmatpush.msrb.mxu1 %v6406_v4 }
 0x335   :  { %1431 = vmatpush.msrb.mxu2 %v6407_v27  ;;  %1451 = vmatpush.msrb.mxu3 %v6408_v5  ;;  %v6430_v27 = vld [vmem:[#allocation57_spill] sm:$0xff] }
 0x336   :  { %1392 = vmatpush.msrb.mxu0 %v6409_v3  ;;  %1412 = vmatpush.msrb.mxu1 %v6410_v7 }
 0x337   :  { %1432 = vmatpush.msrb.mxu2 %v6411_v24  ;;  %1452 = vmatpush.msrb.mxu3 %v6412_v6  ;;  %v6428_v24 = vld [vmem:[#allocation56_spill] sm:$0xff] }
 0x338   :  { %1393 = vmatpush.msrb.mxu0 %v6413_v23  ;;  %1413 = vmatpush.msrb.mxu1 %v6414_v8  ;;  %v6424_v23 = vld [vmem:[#allocation50_spill] sm:$0xff]  ;;  %v6425_v8 = vld [vmem:[#allocation68_spill] sm:$0xff] }
 0x339   :  { %1433 = vmatpush.msrb.mxu2 %v6415_v21  ;;  %1453 = vmatpush.msrb.mxu3 %v6416_v29  ;;  %v6426_v21 = vld [vmem:[#allocation55_spill] sm:$0xff]  ;;  %v6427_v29 = vld [vmem:[#allocation69_spill] sm:$0xff] }
 0x33a   :  { %1394 = vmatpush.msrb.mxu0 %v6417_v42  ;;  %1414 = vmatpush.msrb.mxu1 %v6418_v20  ;;  %v208_v6 = vadd.f32 %v6426_v21, %v6425_v8  ;;  %v249_v42 = vadd.f32 %v6428_v24, %v6427_v29 }
 0x33b   :  { %1434 = vmatpush.msrb.mxu2 %v6419_v1  ;;  %1454 = vmatpush.msrb.mxu3 %v6420_v22 }
 0x33c   :  { %1395 = vmatpush.msrb.mxu0 %v6421_v32  ;;  %1415 = vmatpush.msrb.mxu1 %v6422_v28  ;;  %v6429_v32 = vld [vmem:[#allocation72_spill] sm:$0xff] }
 0x33d   :  { %1435 = vmatpush.msrb.mxu2 %v6423_v9  ;;  %1455 = vmatpush.msrb.mxu3 %v6424_v23  ;;  %v331_v28 = vadd.f32 %v6430_v27, %v6429_v32 }
 0x399   :  { %v1085_v7 = vpop.f32.mrf.mxu0  ;;  %v1105_v20 = vpop.f32.mrf.mxu1 }
 0x39a   :  { %v1148_v3 = vadd.f32 %v1085_v7, %v208_v6  ;;  %v1149_v1 = vadd.f32 %v1105_v20, %v249_v42  ;;  %v6431_v6 = vld [vmem:[#allocation74_spill] sm:$0xff] }
 0x39c   :  { %v3315_v5 = vmul.f32 -1.442695, %v1148_v3  ;;  %v3316_v22 = vmul.f32 -1.442695, %v1149_v1  ;;  %v6432_v3 = vld [vmem:[#allocation60_spill] sm:$0xff] }
 0x39d   :  { %v290_v42 = vadd.f32 %v6432_v3, %v6431_v6 }
 0x39e   :  { %3424 = vpow2.f32 %v3315_v5 }
 0x39f   :  { %3426 = vpow2.f32 %v3316_v22 }
 0x3a0   :  { %v1145_v9 = vpop.f32.mrf.mxu3  ;;  %v1125_v24 = vpop.f32.mrf.mxu2 }
 0x3a1   :  { %v1151_v4 = vadd.f32 %v1145_v9, %v331_v28  ;;  %v1150_v1 = vadd.f32 %v1125_v24, %v290_v42 }
 0x3a3   :  { %v3317_v23 = vmul.f32 -1.442695, %v1151_v4 }
 0x3a4   :  { %v3425_v2 = vpop.eup %3424 }
 0x3a5   :  { %v3427_v18 = vpop.eup %3426  ;;  %v1155_v21 = vadd.f32 1.0, %v3425_v2  ;;  %3428 = vpow2.f32 %v3317_v23 }
 0x3a6   :  { %v1174_v8 = vadd.f32 1.0, %v3427_v18 }
 0x3a7   :  { %3430 = vrcp.f32 %v1155_v21  ;;  %v1167_v32 = vand.u32 2147483648, %v1155_v21  ;;  %v1165_v23 = vand.u32 2147483647, %v1155_v21  ;;  %vm1161_vm2 = vweird.f32 %v1155_v21 }
 0x3a8   :  { %3432 = vrcp.f32 %v1174_v8  ;;  %v1186_v2 = vand.u32 2147483648, %v1174_v8  ;;  %v1184_v17 = vand.u32 2147483647, %v1174_v8  ;;  %vm1180_vm3 = vweird.f32 %v1174_v8 }
 0x3a9   :  { %v1168_v24 = vor.u32 1.1754944e-38, %v1167_v32  ;;  %vm1166_vm6 = vcmp.eq.f32.partialorder %v1165_v23, 8.507059e+37 }
 0x3aa   :  { %vm1185_vm7 = vcmp.eq.f32.partialorder %v1184_v17, 8.507059e+37 }
 0x3ab   :  { %v3429_v7 = vpop.eup %3428 }
 0x3ac   :  { %v1194_v5 = vadd.f32 1.0, %v3429_v7 }
 0x3ad   :  { %v3431_v20 = vpop.eup %3430 }
 0x3ae   :  { %v3433_v27 = vpop.eup %3432  ;;  %v1157_v22 = vmul.f32 %v3431_v20, %v1155_v21  ;;  %3434 = vrcp.f32 %v1194_v5  ;;  %vm1162_vm0 = vweird.f32 %v3431_v20  ;;  %vm1200_vm9 = vweird.f32 %v1194_v5 }
 0x3af   :  { %v1176_v9 = vmul.f32 %v3433_v27, %v1174_v8  ;;  %3436 = vtanh.f32 %v1150_v1  ;;  %vm1181_vm1 = vweird.f32 %v3433_v27  ;;  %vm1163_vm4 = vmor %vm1161_vm2, %vm1162_vm0  ;;  %v1204_v32 = vand.u32 2147483647, %v1194_v5 }
 0x3b0   :  { %v1158_v4 = vsub.f32 1.0, %v1157_v22  ;;  %vm1182_vm5 = vmor %vm1180_vm3, %vm1181_vm1  ;;  %v1187_v22 = vor.u32 1.1754944e-38, %v1186_v2 }
 0x3b1   :  { %v1177_v28 = vsub.f32 1.0, %v1176_v9  ;;  %vm1205_vm11 = vcmp.eq.f32.partialorder %v1204_v32, 8.507059e+37 }
 0x3b2   :  { %v1159_v18 = vmul.f32 %v3431_v20, %v1158_v4 }
 0x3b3   :  { %v1178_v29 = vmul.f32 %v3433_v27, %v1177_v28 }
 0x3b4   :  { %v3435_v16 = vpop.eup %3434  ;;  %v1160_v3 = vadd.f32 %v3431_v20, %v1159_v18 }
 0x3b5   :  { %v1179_v7 = vadd.f32 %v3433_v27, %v1178_v29  ;;  %v1196_v42 = vmul.f32 %v3435_v16, %v1194_v5  ;;  %v3437_v1 = vpop.eup %3436  ;;  %vm1201_vm8 = vweird.f32 %v3435_v16  ;;  %v1206_v29 = vand.u32 2147483648, %v1194_v5 }
 0x3b6   :  { %v1164_v9 = vsel %vm1163_vm4, %v3431_v20, %v1160_v3  ;;  %vm1202_vm10 = vmor %vm1200_vm9, %vm1201_vm8 }
 0x3b7   :  { %v1169_v6 = vsel %vm1166_vm6, %v1168_v24, %v1164_v9  ;;  %v1183_v4 = vsel %vm1182_vm5, %v3433_v27, %v1179_v7  ;;  %v1197_v15 = vsub.f32 1.0, %v1196_v42  ;;  %v1207_v2 = vor.u32 1.1754944e-38, %v1206_v29  ;;  %v6465_v9 = vld [vmem:[#allocation74_spill] sm:$0xff] }
 0x3b8   :  { %v1188_v28 = vsel %vm1185_vm7, %v1187_v22, %v1183_v4  ;;  %v1211_v19 = vmul.f32 %v3437_v1, %v1169_v6  ;;  %v6466_v1 = vld [vmem:[#allocation64_spill] sm:$0xff] }
 0x3b9   :  { %v1210_v0 = vmul.f32 %v1188_v28, %v4735_v10  ;;  %v1198_v18 = vmul.f32 %v3435_v16, %v1197_v15  ;;  %v6463_v10 = vld [vmem:[#allocation72_spill] sm:$0xff]  ;;  %v293_v4 = vadd.f32 %v6466_v1, %v6465_v9  ;;  %v6467_v1 = vld [vmem:[#allocation62_spill] sm:$0xff] }
 0x3bb   :  { %v4817_v21 = vadd.f32 %v1211_v19, %v1210_v0  ;;  %v1199_v8 = vadd.f32 %v3435_v16, %v1198_v18  ;;  %v6464_v0 = vld [vmem:[#allocation61_spill] sm:$0xff] }
 0x3bc   :  { %v334_v19 = vadd.f32 %v6464_v0, %v6463_v10  ;;  %v1745_v0 = vld [vmem:[#allocation9 + $0x1a0] sm:$0xff] }
 0x3bd   :  { %3438 = vtanh.f32 %v4817_v21  ;;  %v1203_v20 = vsel %vm1202_vm10, %v3435_v16, %v1199_v8 }
 0x3be   :  { %v1208_v27 = vsel %vm1205_vm11, %v1207_v2, %v1203_v20 }
 0x3c3   :  { %v3439_v17 = vpop.eup %3438 }
 0x3c4   :  { %v4820_v23 = vmul.f32 %v3439_v17, %v1208_v27 }
 0x3c6   :  { %1240 = vmatmul.f32.vlgmr.msra.gmra.mxu0 %v4820_v23  ;;  %1260 = vmatmul.f32.vlgmr.msra.gmra.mxu1 %v4820_v23 }
 0x3c7   :  { %1280 = vmatmul.f32.vlgmr.msra.gmra.mxu2 %v4820_v23  ;;  %1300 = vmatmul.f32.vlgmr.msra.gmra.mxu3 %v4820_v23 }
 0x3c8   :  { %1536 = vmatpush.msra.mxu0 %v4452_v63  ;;  %1556 = vmatpush.msra.mxu1 %v4455_v52  ;;  %v6433_v63 = vld [vmem:[#allocation24_spill] sm:$0xff]  ;;  %v6434_v52 = vld [vmem:[#allocation26_spill] sm:$0xff] }
 0x3c9   :  { %1576 = vmatpush.msra.mxu2 %v4458_v62  ;;  %1596 = vmatpush.msra.mxu3 %v4461_v51  ;;  %v6435_v62 = vld [vmem:[#allocation25_spill] sm:$0xff]  ;;  %v6436_v51 = vld [vmem:[#allocation27_spill] sm:$0xff] }
 0x3ca   :  { %1537 = vmatpush.msra.mxu0 %v4464_v30  ;;  %1557 = vmatpush.msra.mxu1 %v4467_v31  ;;  %v6437_v30 = vld [vmem:[#allocation28_spill] sm:$0xff]  ;;  %v6439_v31 = vld [vmem:[#allocation29_spill] sm:$0xff] }
 0x3cb   :  { %1577 = vmatpush.msra.mxu2 %v4470_v33  ;;  %1597 = vmatpush.msra.mxu3 %v4473_v34  ;;  %v6440_v33 = vld [vmem:[#allocation31_spill] sm:$0xff]  ;;  %v6441_v34 = vld [vmem:[#allocation32_spill] sm:$0xff] }
 0x3cc   :  { %1538 = vmatpush.msra.mxu0 %v4476_v35  ;;  %1558 = vmatpush.msra.mxu1 %v4479_v36  ;;  %v6442_v35 = vld [vmem:[#allocation34_spill] sm:$0xff]  ;;  %v6444_v36 = vld [vmem:[#allocation35_spill] sm:$0xff] }
 0x3cd   :  { %1578 = vmatpush.msra.mxu2 %v4482_v37  ;;  %1598 = vmatpush.msra.mxu3 %v4485_v38  ;;  %v6445_v37 = vld [vmem:[#allocation36_spill] sm:$0xff]  ;;  %v6446_v38 = vld [vmem:[#allocation37_spill] sm:$0xff] }
 0x3ce   :  { %1539 = vmatpush.msra.mxu0 %v4488_v40  ;;  %1559 = vmatpush.msra.mxu1 %v4491_v41  ;;  %v6447_v40 = vld [vmem:[#allocation38_spill] sm:$0xff]  ;;  %v6448_v41 = vld [vmem:[#allocation39_spill] sm:$0xff] }
 0x3cf   :  { %1579 = vmatpush.msra.mxu2 %v4494_v43  ;;  %1599 = vmatpush.msra.mxu3 %v4497_v44  ;;  %v6449_v43 = vld [vmem:[#allocation40_spill] sm:$0xff]  ;;  %v6450_v44 = vld [vmem:[#allocation41_spill] sm:$0xff] }
 0x3d0   :  { %1540 = vmatpush.msra.mxu0 %v4500_v45  ;;  %1560 = vmatpush.msra.mxu1 %v4503_v47  ;;  %v6451_v45 = vld [vmem:[#allocation42_spill] sm:$0xff]  ;;  %v6452_v47 = vld [vmem:[#allocation43_spill] sm:$0xff] }
 0x3d1   :  { %1580 = vmatpush.msra.mxu2 %v4506_v55  ;;  %1600 = vmatpush.msra.mxu3 %v4509_v58  ;;  %v6453_v55 = vld [vmem:[#allocation44_spill] sm:$0xff]  ;;  %v6454_v58 = vld [vmem:[#allocation46_spill] sm:$0xff] }
 0x3d2   :  { %1541 = vmatpush.msra.mxu0 %v4512_v39  ;;  %1561 = vmatpush.msra.mxu1 %v4515_v50  ;;  %v6455_v39 = vld [vmem:[#allocation45_spill] sm:$0xff]  ;;  %v6456_v50 = vld [vmem:[#allocation47_spill] sm:$0xff] }
 0x3d3   :  { %1581 = vmatpush.msra.mxu2 %v4518_v56  ;;  %1601 = vmatpush.msra.mxu3 %v4521_v61  ;;  %v6457_v56 = vld [vmem:[#allocation48_spill] sm:$0xff]  ;;  %v6458_v61 = vld [vmem:[#allocation50_spill] sm:$0xff] }
 0x3d4   :  { %1542 = vmatpush.msra.mxu0 %v4524_v53  ;;  %1562 = vmatpush.msra.mxu1 %v4527_v49  ;;  %v6459_v53 = vld [vmem:[#allocation68_spill] sm:$0xff]  ;;  %v6460_v49 = vld [vmem:[#allocation58_spill] sm:$0xff] }
 0x3d5   :  { %1582 = vmatpush.msra.mxu2 %v4530_v13  ;;  %1602 = vmatpush.msra.mxu3 %v6363_v57  ;;  %v211_v13 = vadd.f32 %v6460_v49, %v6459_v53 }
 0x3d6   :  { %1543 = vmatpush.msra.mxu0 %v6364_v25  ;;  %1563 = vmatpush.msra.mxu1 %v6365_v11 }
 0x3d7   :  { %1583 = vmatpush.msra.mxu2 %v6366_v12  ;;  %1603 = vmatpush.msra.mxu3 %v6367_v14 }
 0x3d8   :  { %1544 = vmatpush.msra.mxu0 %v4548_v26  ;;  %1564 = vmatpush.msra.mxu1 %v4551_v46  ;;  %v6438_v26 = vld [vmem:[#allocation30_spill] sm:$0xff]  ;;  %v6461_v46 = vld [vmem:[#allocation69_spill] sm:$0xff] }
 0x3d9   :  { %1584 = vmatpush.msra.mxu2 %v4554_v54  ;;  %1604 = vmatpush.msra.mxu3 %v4557_v48  ;;  %v6462_v54 = vld [vmem:[#allocation59_spill] sm:$0xff] }
 0x3da   :  { %1545 = vmatpush.msra.mxu0 %v4560_v59  ;;  %1565 = vmatpush.msra.mxu1 %v4563_v60  ;;  %v6443_v60 = vld [vmem:[#allocation33_spill] sm:$0xff]  ;;  %v252_v48 = vadd.f32 %v6462_v54, %v6461_v46 }
 0x3db   :  { %1585 = vmatpush.msra.mxu2 %v6433_v63  ;;  %1605 = vmatpush.msra.mxu3 %v6434_v52 }
 0x3dc   :  { %1546 = vmatpush.msra.mxu0 %v6435_v62  ;;  %1566 = vmatpush.msra.mxu1 %v6436_v51 }
 0x3dd   :  { %1586 = vmatpush.msra.mxu2 %v6437_v30  ;;  %1606 = vmatpush.msra.mxu3 %v6438_v26 }
 0x3de   :  { %1547 = vmatpush.msra.mxu0 %v6439_v31  ;;  %1567 = vmatpush.msra.mxu1 %v6440_v33 }
 0x3df   :  { %1587 = vmatpush.msra.mxu2 %v6441_v34  ;;  %1607 = vmatpush.msra.mxu3 %v6442_v35 }
 0x3e0   :  { %1548 = vmatpush.msra.mxu0 %v6443_v60  ;;  %1568 = vmatpush.msra.mxu1 %v6444_v36 }
 0x3e1   :  { %1588 = vmatpush.msra.mxu2 %v6445_v37  ;;  %1608 = vmatpush.msra.mxu3 %v6446_v38 }
 0x3e2   :  { %1549 = vmatpush.msra.mxu0 %v6447_v40  ;;  %1569 = vmatpush.msra.mxu1 %v6448_v41 }
 0x3e3   :  { %1589 = vmatpush.msra.mxu2 %v6449_v43  ;;  %1609 = vmatpush.msra.mxu3 %v6450_v44 }
 0x3e4   :  { %1550 = vmatpush.msra.mxu0 %v6451_v45  ;;  %1570 = vmatpush.msra.mxu1 %v6452_v47 }
 0x3e5   :  { %1590 = vmatpush.msra.mxu2 %v6453_v55  ;;  %1610 = vmatpush.msra.mxu3 %v6454_v58 }
 0x3e6   :  { %1551 = vmatpush.msra.mxu0 %v6455_v39  ;;  %1571 = vmatpush.msra.mxu1 %v6456_v50 }
 0x3e7   :  { %1591 = vmatpush.msra.mxu2 %v6457_v56  ;;  %1611 = vmatpush.msra.mxu3 %v6458_v61 }
 0x443   :  { %v1241_v59 = vpop.f32.mrf.mxu0  ;;  %v1261_v57 = vpop.f32.mrf.mxu1 }
 0x444   :  { %v1304_v25 = vadd.f32 %v1241_v59, %v211_v13  ;;  %v1305_v11 = vadd.f32 %v1261_v57, %v252_v48  ;;  %v1754_v48 = vld [vmem:[#allocation9 + $0x1e8] sm:$0xff]  ;;  %v1755_v59 = vld [vmem:[#allocation9 + $0x1f0] sm:$0xff]  ;;  %v1756_v57 = vld [vmem:[#allocation9 + $0x1f8] sm:$0xff] }
 0x446   :  { %v3318_v12 = vmul.f32 -1.442695, %v1304_v25  ;;  %v3319_v14 = vmul.f32 -1.442695, %v1305_v11  ;;  %v1749_v25 = vld [vmem:[#allocation9 + $0x1c0] sm:$0xff]  ;;  %v1750_v11 = vld [vmem:[#allocation9 + $0x1c8] sm:$0xff] }
 0x448   :  { %3440 = vpow2.f32 %v3318_v12  ;;  %v1751_v12 = vld [vmem:[#allocation9 + $0x1d0] sm:$0xff] }
 0x449   :  { %3442 = vpow2.f32 %v3319_v14  ;;  %v1752_v14 = vld [vmem:[#allocation9 + $0x1d8] sm:$0xff] }
 0x44a   :  { %v1301_v15 = vpop.f32.mrf.mxu3  ;;  %v1281_v42 = vpop.f32.mrf.mxu2 }
 0x44b   :  { %v1307_v16 = vadd.f32 %v1301_v15, %v334_v19  ;;  %v1306_v8 = vadd.f32 %v1281_v42, %v293_v4  ;;  %v1746_v19 = vld [vmem:[#allocation9 + $0x1a8] sm:$0xff]  ;;  %v1747_v15 = vld [vmem:[#allocation9 + $0x1b0] sm:$0xff]  ;;  %v214_v4 = vadd.f32 %v6467_v1, %v6459_v53 }
 0x44c   :  { %v1738_v42 = vld [vmem:[#allocation9 + $0x168] sm:$0xff] }
 0x44d   :  { %v3320_v6 = vmul.f32 -1.442695, %v1307_v16  ;;  %v1748_v16 = vld [vmem:[#allocation9 + $0x1b8] sm:$0xff] }
 0x44e   :  { %v3441_v5 = vpop.eup %3440 }
 0x44f   :  { %v3443_v3 = vpop.eup %3442  ;;  %v1311_v24 = vadd.f32 1.0, %v3441_v5  ;;  %3444 = vpow2.f32 %v3320_v6  ;;  %v1741_v6 = vld [vmem:[#allocation9 + $0x180] sm:$0xff]  ;;  %v1742_v5 = vld [vmem:[#allocation9 + $0x188] sm:$0xff] }
 0x450   :  { %v1330_v7 = vadd.f32 1.0, %v3443_v3  ;;  %v1743_v3 = vld [vmem:[#allocation9 + $0x190] sm:$0xff] }
 0x451   :  { %3446 = vrcp.f32 %v1311_v24  ;;  %v1323_v27 = vand.u32 2147483648, %v1311_v24  ;;  %v1321_v62 = vand.u32 2147483647, %v1311_v24  ;;  %vm1317_vm14 = vweird.f32 %v1311_v24 }
 0x452   :  { %3448 = vrcp.f32 %v1330_v7  ;;  %v1342_v63 = vand.u32 2147483648, %v1330_v7  ;;  %v1340_v30 = vand.u32 2147483647, %v1330_v7  ;;  %vm1336_vm15 = vweird.f32 %v1330_v7 }
 0x453   :  { %v1324_v33 = vor.u32 1.1754944e-38, %v1323_v27  ;;  %vm1322_vm2 = vcmp.eq.f32.partialorder %v1321_v62, 8.507059e+37  ;;  %v1729_v62 = vld [vmem:[#allocation9 + $0x120] sm:$0xff] }
 0x454   :  { %v1343_v60 = vor.u32 1.1754944e-38, %v1342_v63  ;;  %vm1341_vm3 = vcmp.eq.f32.partialorder %v1340_v30, 8.507059e+37  ;;  %v1731_v30 = vld [vmem:[#allocation9 + $0x130] sm:$0xff] }
 0x455   :  { %v3445_v22 = vpop.eup %3444 }
 0x456   :  { %v1350_v28 = vadd.f32 1.0, %v3445_v22  ;;  %v1739_v22 = vld [vmem:[#allocation9 + $0x170] sm:$0xff] }
 0x457   :  { %v3447_v18 = vpop.eup %3446 }
 0x458   :  { %v3449_v29 = vpop.eup %3448  ;;  %v1313_v32 = vmul.f32 %v3447_v18, %v1311_v24  ;;  %3450 = vrcp.f32 %v1350_v28  ;;  %vm1318_vm12 = vweird.f32 %v3447_v18  ;;  %v1362_v39 = vand.u32 2147483648, %v1350_v28  ;;  %v1744_v24 = vld [vmem:[#allocation9 + $0x198] sm:$0xff] }
 0x459   :  { %v1332_v20 = vmul.f32 %v3449_v29, %v1330_v7  ;;  %3452 = vtanh.f32 %v1306_v8  ;;  %vm1337_vm13 = vweird.f32 %v3449_v29  ;;  %vm1319_vm0 = vmor %vm1317_vm14, %vm1318_vm12  ;;  %vm1356_vm5 = vweird.f32 %v1350_v28  ;;  %v1737_v7 = vld [vmem:[#allocation9 + $0x160] sm:$0xff]  ;;  %v1740_v8 = vld [vmem:[#allocation9 + $0x178] sm:$0xff] }
 0x45a   :  { %v1314_v2 = vsub.f32 1.0, %v1313_v32  ;;  %vm1338_vm1 = vmor %vm1336_vm15, %vm1337_vm13  ;;  %v1360_v50 = vand.u32 2147483647, %v1350_v28  ;;  %v1363_v61 = vor.u32 1.1754944e-38, %v1362_v39  ;;  %v1718_v39 = vld [vmem:[#allocation9 + $0xc8] sm:$0xff] }
 0x45b   :  { %v1333_v17 = vsub.f32 1.0, %v1332_v20  ;;  %v1733_v20 = vld [vmem:[#allocation9 + $0x140] sm:$0xff] }
 0x45c   :  { %v1315_v52 = vmul.f32 %v3447_v18, %v1314_v2  ;;  %vm1361_vm7 = vcmp.eq.f32.partialorder %v1360_v50, 8.507059e+37  ;;  %v1734_v2 = vld [vmem:[#allocation9 + $0x148] sm:$0xff]  ;;  %v1719_v50 = vld [vmem:[#allocation9 + $0xd0] sm:$0xff] }
 0x45d   :  { %v1334_v51 = vmul.f32 %v3449_v29, %v1333_v17  ;;  %v1735_v17 = vld [vmem:[#allocation9 + $0x150] sm:$0xff] }
 0x45e   :  { %v3451_v26 = vpop.eup %3450  ;;  %v1316_v31 = vadd.f32 %v3447_v18, %v1315_v52  ;;  %v1736_v52 = vld [vmem:[#allocation9 + $0x158] sm:$0xff] }
 0x45f   :  { %v1335_v34 = vadd.f32 %v3449_v29, %v1334_v51  ;;  %v1352_v35 = vmul.f32 %v3451_v26, %v1350_v28  ;;  %v3453_v37 = vpop.eup %3452  ;;  %vm1357_vm4 = vweird.f32 %v3451_v26  ;;  %v6468_v28 = vld [vmem:[#allocation63_spill] sm:$0xff]  ;;  %v1730_v51 = vld [vmem:[#allocation9 + $0x128] sm:$0xff] }
 0x460   :  { %v1320_v36 = vsel %vm1319_vm0, %v3447_v18, %v1316_v31  ;;  %vm1358_vm6 = vmor %vm1356_vm5, %vm1357_vm4  ;;  %v255_v18 = vadd.f32 %v6468_v28, %v6461_v46  ;;  %v1699_v28 = vld [vmem:[#allocation9 + $0x30] sm:$0xff] }
 0x461   :  { %v1325_v38 = vsel %vm1322_vm2, %v1324_v33, %v1320_v36  ;;  %v1339_v40 = vsel %vm1338_vm1, %v3449_v29, %v1335_v34  ;;  %v1353_v41 = vsub.f32 1.0, %v1352_v35  ;;  %v1732_v33 = vld [vmem:[#allocation9 + $0x138] sm:$0xff]  ;;  %v1725_v34 = vld [vmem:[#allocation9 + $0x100] sm:$0xff]  ;;  %v1726_v35 = vld [vmem:[#allocation9 + $0x108] sm:$0xff] }
 0x462   :  { %v1344_v43 = vsel %vm1341_vm3, %v1343_v60, %v1339_v40  ;;  %v1367_v44 = vmul.f32 %v3453_v37, %v1325_v38  ;;  %v1727_v60 = vld [vmem:[#allocation9 + $0x110] sm:$0xff]  ;;  %v1728_v36 = vld [vmem:[#allocation9 + $0x118] sm:$0xff]  ;;  %v6469_v37 = vld [vmem:[#allocation65_spill] sm:$0xff] }
 0x463   :  { %v1366_v45 = vmul.f32 %v1344_v43, %v4817_v21  ;;  %v1354_v47 = vmul.f32 %v3451_v26, %v1353_v41  ;;  %v1753_v21 = vld [vmem:[#allocation9 + $0x1e0] sm:$0xff]  ;;  %v337_v38 = vadd.f32 %v6469_v37, %v6463_v10  ;;  %v1722_v41 = vld [vmem:[#allocation9 + $0xe8] sm:$0xff]  ;;  %v1723_v43 = vld [vmem:[#allocation9 + $0xf0] sm:$0xff] }
 0x464   :  { %v1721_v40 = vld [vmem:[#allocation9 + $0xe0] sm:$0xff] }
 0x465   :  { %v4899_v55 = vadd.f32 %v1367_v44, %v1366_v45  ;;  %v1355_v58 = vadd.f32 %v3451_v26, %v1354_v47  ;;  %v1724_v45 = vld [vmem:[#allocation9 + $0xf8] sm:$0xff] }
 0x467   :  { %3454 = vtanh.f32 %v4899_v55  ;;  %v1359_v56 = vsel %vm1358_vm6, %v3451_v26, %v1355_v58  ;;  %v1717_v58 = vld [vmem:[#allocation9 + $0xc0] sm:$0xff] }
 0x468   :  { %v1364_v13 = vsel %vm1361_vm7, %v1363_v61, %v1359_v56  ;;  %v1720_v56 = vld [vmem:[#allocation9 + $0xd8] sm:$0xff] }
 0x46d   :  { %v3455_v49 = vpop.eup %3454 }
 0x46e   :  { %v4902_v54 = vmul.f32 %v3455_v49, %v1364_v13  ;;  %v1713_v49 = vld [vmem:[#allocation9 + $0xa0] sm:$0xff]  ;;  %v1714_v13 = vld [vmem:[#allocation9 + $0xa8] sm:$0xff] }
 0x470   :  { %1396 = vmatmul.f32.vlgmr.msrb.gmra.mxu0 %v4902_v54  ;;  %1416 = vmatmul.f32.vlgmr.msrb.gmra.mxu1 %v4902_v54 }
 0x471   :  { %1436 = vmatmul.f32.vlgmr.msrb.gmra.mxu2 %v4902_v54  ;;  %1456 = vmatmul.f32.vlgmr.msrb.gmra.mxu3 %v4902_v54 }
 0x472   :  { %1767 = vmatpush.msrb.mxu0 %v1753_v21  ;;  %1808 = vmatpush.msrb.mxu1 %v1754_v48  ;;  %v1715_v21 = vld [vmem:[#allocation9 + $0xb0] sm:$0xff] }
 0x473   :  { %1849 = vmatpush.msrb.mxu2 %v1755_v59  ;;  %1890 = vmatpush.msrb.mxu3 %v1756_v57  ;;  %v1716_v59 = vld [vmem:[#allocation9 + $0xb8] sm:$0xff]  ;;  %v1709_v57 = vld [vmem:[#allocation9 + $0x80] sm:$0xff] }
 0x474   :  { %1768 = vmatpush.msrb.mxu0 %v1749_v25  ;;  %1809 = vmatpush.msrb.mxu1 %v1750_v11  ;;  %v1710_v25 = vld [vmem:[#allocation9 + $0x88] sm:$0xff] }
 0x475   :  { %1850 = vmatpush.msrb.mxu2 %v1751_v12  ;;  %1891 = vmatpush.msrb.mxu3 %v1752_v14  ;;  %v1711_v14 = vld [vmem:[#allocation9 + $0x90] sm:$0xff] }
 0x476   :  { %1769 = vmatpush.msrb.mxu0 %v1745_v0  ;;  %1810 = vmatpush.msrb.mxu1 %v1746_v19  ;;  %v1712_v0 = vld [vmem:[#allocation9 + $0x98] sm:$0xff] }
 0x477   :  { %1851 = vmatpush.msrb.mxu2 %v1747_v15  ;;  %1892 = vmatpush.msrb.mxu3 %v1748_v16  ;;  %v1705_v15 = vld [vmem:[#allocation9 + $0x60] sm:$0xff]  ;;  %v1706_v16 = vld [vmem:[#allocation9 + $0x68] sm:$0xff] }
 0x478   :  { %1770 = vmatpush.msrb.mxu0 %v1741_v6  ;;  %1811 = vmatpush.msrb.mxu1 %v1742_v5  ;;  %v1707_v6 = vld [vmem:[#allocation9 + $0x70] sm:$0xff]  ;;  %v1708_v5 = vld [vmem:[#allocation9 + $0x78] sm:$0xff] }
 0x479   :  { %1852 = vmatpush.msrb.mxu2 %v1743_v3  ;;  %1893 = vmatpush.msrb.mxu3 %v1744_v24  ;;  %v1701_v3 = vld [vmem:[#allocation9 + $0x40] sm:$0xff]  ;;  %v1702_v24 = vld [vmem:[#allocation9 + $0x48] sm:$0xff] }
 0x47a   :  { %1771 = vmatpush.msrb.mxu0 %v1737_v7  ;;  %1812 = vmatpush.msrb.mxu1 %v1738_v42  ;;  %v1703_v7 = vld [vmem:[#allocation9 + $0x50] sm:$0xff]  ;;  %v1704_v42 = vld [vmem:[#allocation9 + $0x58] sm:$0xff] }
 0x47b   :  { %1853 = vmatpush.msrb.mxu2 %v1739_v22  ;;  %1894 = vmatpush.msrb.mxu3 %v1740_v8  ;;  %v1697_v22 = vld [vmem:[#allocation9 + $0x20] sm:$0xff] }
 0x47c   :  { %1772 = vmatpush.msrb.mxu0 %v1733_v20  ;;  %1813 = vmatpush.msrb.mxu1 %v1734_v2  ;;  %v1693_v20 = vld [vmem:[#allocation9] sm:$0xff]  ;;  %v1694_v2 = vld [vmem:[#allocation9 + $0x8] sm:$0xff] }
 0x47d   :  { %1854 = vmatpush.msrb.mxu2 %v1735_v17  ;;  %1895 = vmatpush.msrb.mxu3 %v1736_v52 }
 0x47e   :  { %1773 = vmatpush.msrb.mxu0 %v1729_v62  ;;  %1814 = vmatpush.msrb.mxu1 %v1730_v51 }
 0x47f   :  { %1855 = vmatpush.msrb.mxu2 %v1731_v30  ;;  %1896 = vmatpush.msrb.mxu3 %v1732_v33 }
 0x480   :  { %1774 = vmatpush.msrb.mxu0 %v1725_v34  ;;  %1815 = vmatpush.msrb.mxu1 %v1726_v35 }
 0x481   :  { %1856 = vmatpush.msrb.mxu2 %v1727_v60  ;;  %1897 = vmatpush.msrb.mxu3 %v1728_v36 }
 0x482   :  { %1775 = vmatpush.msrb.mxu0 %v1721_v40  ;;  %1816 = vmatpush.msrb.mxu1 %v1722_v41 }
 0x483   :  { %1857 = vmatpush.msrb.mxu2 %v1723_v43  ;;  %1898 = vmatpush.msrb.mxu3 %v1724_v45 }
 0x484   :  { %1776 = vmatpush.msrb.mxu0 %v1717_v58  ;;  %1817 = vmatpush.msrb.mxu1 %v1718_v39 }
 0x485   :  { %1858 = vmatpush.msrb.mxu2 %v1719_v50  ;;  %1899 = vmatpush.msrb.mxu3 %v1720_v56 }
 0x486   :  { %1777 = vmatpush.msrb.mxu0 %v1713_v49  ;;  %1818 = vmatpush.msrb.mxu1 %v1714_v13 }
 0x487   :  { %1859 = vmatpush.msrb.mxu2 %v1715_v21  ;;  %1900 = vmatpush.msrb.mxu3 %v1716_v59 }
 0x488   :  { %1778 = vmatpush.msrb.mxu0 %v1709_v57  ;;  %1819 = vmatpush.msrb.mxu1 %v1710_v25 }
 0x489   :  { %1860 = vmatpush.msrb.mxu2 %v1711_v14  ;;  %1901 = vmatpush.msrb.mxu3 %v1712_v0 }
 0x48a   :  { %1779 = vmatpush.msrb.mxu0 %v1705_v15  ;;  %1820 = vmatpush.msrb.mxu1 %v1706_v16  ;;  %v6472_v16 = vld [vmem:[#allocation18_spill] sm:$0xff] }
 0x48b   :  { %1861 = vmatpush.msrb.mxu2 %v1707_v6  ;;  %1902 = vmatpush.msrb.mxu3 %v1708_v5  ;;  %v6473_v6 = vld [vmem:[#allocation23_spill] sm:$0xff]  ;;  %v4946_v5 = vld [vmem:[#allocation10 + $0x1e0] sm:$0xff] }
 0x48c   :  { %1780 = vmatpush.msrb.mxu0 %v1701_v3  ;;  %1821 = vmatpush.msrb.mxu1 %v1702_v24  ;;  %6474 = vst [vmem:[#allocation17_spill] sm:$0xff] %v4946_v5  ;;  %v4948_v3 = vld [vmem:[#allocation10 + $0x1e8] sm:$0xff]  ;;  %v4950_v24 = vld [vmem:[#allocation10 + $0x1c0] sm:$0xff] }
 0x48d   :  { %1862 = vmatpush.msrb.mxu2 %v1703_v7  ;;  %1903 = vmatpush.msrb.mxu3 %v1704_v42  ;;  %v4954_v7 = vld [vmem:[#allocation10 + $0x1c8] sm:$0xff]  ;;  %v4956_v42 = vld [vmem:[#allocation10 + $0x1f8] sm:$0xff] }
 0x48e   :  { %1781 = vmatpush.msrb.mxu0 %v1697_v22  ;;  %6475 = vst [vmem:[#allocation19_spill] sm:$0xff] %v4954_v7  ;;  %v4959_v22 = vld [vmem:[#allocation10 + $0x1a0] sm:$0xff] }
 0x48f   :  { %1863 = vmatpush.msrb.mxu2 %v1699_v28  ;;  %v6478_v28 = vld [vmem:[#allocation49_spill] sm:$0xff] }
 0x490   :  { %1782 = vmatpush.msrb.mxu0 %v1693_v20  ;;  %v4994_v20 = vld [vmem:[#allocation10 + $0x188] sm:$0xff] }
 0x4ed   :  { %v1397_v29 = vpop.f32.mrf.mxu0  ;;  %v1417_v32 = vpop.f32.mrf.mxu1 }
 0x4ee   :  { %v1460_v27 = vadd.f32 %v1397_v29, %v214_v4  ;;  %v1461_v63 = vadd.f32 %v1417_v32, %v255_v18  ;;  %v1698_v4 = vld [vmem:[#allocation9 + $0x28] sm:$0xff]  ;;  %v1700_v18 = vld [vmem:[#allocation9 + $0x38] sm:$0xff] }
 0x4ef   :  { %v6470_v29 = vld [vmem:[#allocation70_spill] sm:$0xff]  ;;  %1822 = vmatpush.msrb.mxu1 %v1698_v4  ;;  %1904 = vmatpush.msrb.mxu3 %v1700_v18  ;;  %v4963_v4 = vld [vmem:[#allocation10 + $0x1d8] sm:$0xff] }
 0x4f0   :  { %v3321_v26 = vmul.f32 -1.442695, %v1460_v27  ;;  %v3322_v31 = vmul.f32 -1.442695, %v1461_v63  ;;  %v296_v32 = vadd.f32 %v6470_v29, %v6465_v9  ;;  %v1695_v27 = vld [vmem:[#allocation9 + $0x10] sm:$0xff]  ;;  %v1696_v63 = vld [vmem:[#allocation9 + $0x18] sm:$0xff] }
 0x4f1   :  { %1823 = vmatpush.msrb.mxu1 %v1694_v2  ;;  %1864 = vmatpush.msrb.mxu2 %v1695_v27  ;;  %6477 = vst [vmem:[#allocation22_spill] sm:$0xff] %v4963_v4  ;;  %v4982_v18 = vld [vmem:[#allocation10 + $0x1f0] sm:$0xff]  ;;  %v5002_v2 = vld [vmem:[#allocation10 + $0x168] sm:$0xff] }
 0x4f2   :  { %3456 = vpow2.f32 %v3321_v26  ;;  %1905 = vmatpush.msrb.mxu3 %v1696_v63  ;;  %v4990_v29 = vld [vmem:[#allocation10 + $0x1b0] sm:$0xff]  ;;  %v5012_v63 = vld [vmem:[#allocation10 + $0x178] sm:$0xff] }
 0x4f3   :  { %3458 = vpow2.f32 %v3322_v31  ;;  %v5006_v27 = vld [vmem:[#allocation10 + $0x190] sm:$0xff] }
 0x4f4   :  { %v1457_v44 = vpop.f32.mrf.mxu3  ;;  %v1437_v1 = vpop.f32.mrf.mxu2 }
 0x4f5   :  { %v1463_v47 = vadd.f32 %v1457_v44, %v337_v38  ;;  %v1462_v62 = vadd.f32 %v1437_v1, %v296_v32  ;;  %v4961_v1 = vld [vmem:[#allocation10 + $0x1a8] sm:$0xff]  ;;  %v4992_v32 = vld [vmem:[#allocation10 + $0x180] sm:$0xff] }
 0x4f6   :  { %6476 = vst [vmem:[#allocation20_spill] sm:$0xff] %v4961_v1 }
 0x4f7   :  { %v3323_v61 = vmul.f32 -1.442695, %v1463_v47  ;;  %6480 = vst [vmem:[#allocation51_spill] sm:$0xff] %v4992_v32 }
 0x4f8   :  { %v3457_v48 = vpop.eup %3456 }
 0x4f9   :  { %v3459_v11 = vpop.eup %3458  ;;  %v4914_v12 = vadd.f32 1.0, %v3457_v48  ;;  %3460 = vpow2.f32 %v3323_v61 }
 0x4fa   :  { %v4916_v19 = vadd.f32 1.0, %v3459_v11 }
 0x4fb   :  { %3462 = vrcp.f32 %v4914_v12  ;;  %v1479_v34 = vand.u32 2147483648, %v4914_v12  ;;  %v1477_v36 = vand.u32 2147483647, %v4914_v12  ;;  %vm1473_vm10 = vweird.f32 %v4914_v12 }
 0x4fc   :  { %3464 = vrcp.f32 %v4916_v19  ;;  %v1498_v35 = vand.u32 2147483648, %v4916_v19  ;;  %v1496_v38 = vand.u32 2147483647, %v4916_v19  ;;  %vm1492_vm11 = vweird.f32 %v4916_v19 }
 0x4fd   :  { %v1480_v43 = vor.u32 1.1754944e-38, %v1479_v34  ;;  %vm1478_vm14 = vcmp.eq.f32.partialorder %v1477_v36, 8.507059e+37  ;;  %v5026_v34 = vld [vmem:[#allocation10 + $0x158] sm:$0xff]  ;;  %v5030_v36 = vld [vmem:[#allocation10 + $0x150] sm:$0xff] }
 0x4fe   :  { %v1499_v47 = vor.u32 1.1754944e-38, %v1498_v35  ;;  %vm1497_vm15 = vcmp.eq.f32.partialorder %v1496_v38, 8.507059e+37 }
 0x4ff   :  { %v3461_v8 = vpop.eup %3460 }
 0x500   :  { %v1506_v17 = vadd.f32 1.0, %v3461_v8  ;;  %v4985_v8 = vld [vmem:[#allocation10 + $0x1d0] sm:$0xff] }
 0x501   :  { %v3463_v52 = vpop.eup %3462 }
 0x502   :  { %v3465_v51 = vpop.eup %3464  ;;  %v1469_v30 = vmul.f32 %v3463_v52, %v4914_v12  ;;  %3466 = vrcp.f32 %v1506_v17  ;;  %vm1474_vm8 = vweird.f32 %v3463_v52  ;;  %v1518_v25 = vand.u32 2147483648, %v1506_v17 }
 0x503   :  { %v1488_v26 = vmul.f32 %v3465_v51, %v4916_v19  ;;  %3468 = vtanh.f32 %v1462_v62  ;;  %vm1493_vm9 = vweird.f32 %v3465_v51  ;;  %vm1475_vm12 = vmor %vm1473_vm10, %vm1474_vm8  ;;  %vm1512_vm1 = vweird.f32 %v1506_v17  ;;  %v6481_v62 = vld [vmem:[#allocation66_spill] sm:$0xff] }
 0x504   :  { %v1470_v31 = vsub.f32 1.0, %v1469_v30  ;;  %vm1494_vm13 = vmor %vm1492_vm11, %vm1493_vm9  ;;  %v1516_v11 = vand.u32 2147483647, %v1506_v17  ;;  %v1519_v14 = vor.u32 1.1754944e-38, %v1518_v25  ;;  %v6482_v30 = vld [vmem:[#allocation67_spill] sm:$0xff]  ;;  %v5072_v25 = vld [vmem:[#allocation10 + $0xa0] sm:$0xff] }
 0x505   :  { %v1489_v33 = vsub.f32 1.0, %v1488_v26  ;;  %v258_v26 = vadd.f32 %v6482_v30, %v6461_v46  ;;  %v5037_v46 = vld [vmem:[#allocation10 + $0x138] sm:$0xff]  ;;  %6485 = vst [vmem:[#allocation54_spill] sm:$0xff] %v5072_v25 }
 0x506   :  { %v1471_v60 = vmul.f32 %v3463_v52, %v1470_v31  ;;  %vm1517_vm3 = vcmp.eq.f32.partialorder %v1516_v11, 8.507059e+37  ;;  %v5022_v31 = vld [vmem:[#allocation10 + $0x140] sm:$0xff]  ;;  %v5074_v11 = vld [vmem:[#allocation10 + $0xa8] sm:$0xff] }
 0x507   :  { %v1490_v37 = vmul.f32 %v3465_v51, %v1489_v33  ;;  %v5024_v33 = vld [vmem:[#allocation10 + $0x148] sm:$0xff]  ;;  %6486 = vst [vmem:[#allocation53_spill] sm:$0xff] %v5074_v11 }
 0x508   :  { %v3467_v40 = vpop.eup %3466  ;;  %v1472_v41 = vadd.f32 %v3463_v52, %v1471_v60 }
 0x509   :  { %v1491_v44 = vadd.f32 %v3465_v51, %v1490_v37  ;;  %v1508_v45 = vmul.f32 %v3467_v40, %v1506_v17  ;;  %v3469_v39 = vpop.eup %3468  ;;  %vm1513_vm0 = vweird.f32 %v3467_v40  ;;  %v5004_v17 = vld [vmem:[#allocation10 + $0x198] sm:$0xff] }
 0x50a   :  { %v1476_v58 = vsel %vm1475_vm12, %v3463_v52, %v1472_v41  ;;  %vm1514_vm2 = vmor %vm1512_vm1, %vm1513_vm0  ;;  %v5014_v52 = vld [vmem:[#allocation10 + $0x170] sm:$0xff] }
 0x50b   :  { %v1481_v50 = vsel %vm1478_vm14, %v1480_v43, %v1476_v58  ;;  %v1495_v56 = vsel %vm1494_vm13, %v3465_v51, %v1491_v44  ;;  %v1509_v61 = vsub.f32 1.0, %v1508_v45  ;;  %v217_v51 = vadd.f32 %v6481_v62, %v6459_v53  ;;  %v5032_v53 = vld [vmem:[#allocation10 + $0x120] sm:$0xff]  ;;  %v5042_v41 = vld [vmem:[#allocation10 + $0x130] sm:$0xff] }
 0x50c   :  { %v1500_v49 = vsel %vm1497_vm15, %v1499_v47, %v1495_v56  ;;  %v1523_v13 = vmul.f32 %v3469_v39, %v1481_v50  ;;  %v5044_v45 = vld [vmem:[#allocation10 + $0x100] sm:$0xff]  ;;  %v5046_v47 = vld [vmem:[#allocation10 + $0x108] sm:$0xff]  ;;  %v5056_v50 = vld [vmem:[#allocation10 + $0x118] sm:$0xff] }
 0x50d   :  { %v1522_v21 = vmul.f32 %v1500_v49, %v4899_v55  ;;  %v1510_v48 = vmul.f32 %v3467_v40, %v1509_v61  ;;  %v6471_v55 = vld [vmem:[#allocation75_spill] sm:$0xff]  ;;  %v5052_v58 = vld [vmem:[#allocation10 + $0xe0] sm:$0xff]  ;;  %v5054_v39 = vld [vmem:[#allocation10 + $0xe8] sm:$0xff] }
 0x50e   :  { %v5059_v56 = vld [vmem:[#allocation10 + $0xc0] sm:$0xff]  ;;  %v5061_v61 = vld [vmem:[#allocation10 + $0xc8] sm:$0xff]  ;;  %v5063_v49 = vld [vmem:[#allocation10 + $0xf8] sm:$0xff] }
 0x50f   :  { %v4931_v59 = vadd.f32 %v1523_v13, %v1522_v21  ;;  %v1511_v57 = vadd.f32 %v3467_v40, %v1510_v48  ;;  %v6483_v13 = vld [vmem:[#allocation71_spill] sm:$0xff]  ;;  %v5098_v62 = vld [vmem:[#allocation10 + $0x60] sm:$0xff] }
 0x510   :  { %v340_v21 = vadd.f32 %v6483_v13, %v6463_v10  ;;  %v5069_v48 = vld [vmem:[#allocation10 + $0xd8] sm:$0xff]  ;;  %6492 = vst [vmem:[#allocation26_spill] sm:$0xff] %v5098_v62  ;;  %v5126_v13 = vld [vmem:[#allocation10 + $0x20] sm:$0xff] }
 0x511   :  { %3470 = vtanh.f32 %v4931_v59  ;;  %v1515_v12 = vsel %vm1514_vm2, %v3467_v40, %v1511_v57  ;;  %v5034_v40 = vld [vmem:[#allocation10 + $0x128] sm:$0xff]  ;;  %6484 = vst [vmem:[#allocation52_spill] sm:$0xff] %v5069_v48  ;;  %v5080_v10 = vld [vmem:[#allocation10 + $0xb8] sm:$0xff] }
 0x512   :  { %v1520_v19 = vsel %vm1517_vm3, %v1519_v14, %v1515_v12  ;;  %v5076_v12 = vld [vmem:[#allocation10 + $0x110] sm:$0xff]  ;;  %6487 = vst [vmem:[#allocation55_spill] sm:$0xff] %v5080_v10 }
 0x513   :  { %6499 = vst [vmem:[#allocation32_spill] sm:$0xff] %v5126_v13 }
 0x517   :  { %v3471_v0 = vpop.eup %3470 }
 0x518   :  { %v1526_v15 = vmul.f32 %v3471_v0, %v1520_v19  ;;  %v5082_v0 = vld [vmem:[#allocation10 + $0xf0] sm:$0xff]  ;;  %v5086_v19 = vld [vmem:[#allocation10 + $0x80] sm:$0xff] }
 0x519   :  { %6488 = vst [vmem:[#allocation56_spill] sm:$0xff] %v5086_v19 }
 0x51a   :  { %1552 = vmatmul.f32.vlgmr.msra.gmra.mxu0 %v1526_v15  ;;  %1572 = vmatmul.f32.vlgmr.msra.gmra.mxu1 %v1526_v15 }
 0x51b   :  { %1592 = vmatmul.f32.vlgmr.msra.gmra.mxu2 %v1526_v15  ;;  %1612 = vmatmul.f32.vlgmr.msra.gmra.mxu3 %v1526_v15 }
 0x51c   :  { %2031 = vmatpush.msra.mxu0 %v4946_v5  ;;  %2051 = vmatpush.msra.mxu1 %v4948_v3 }
 0x51d   :  { %2091 = vmatpush.msra.mxu3 %v4956_v42  ;;  %2071 = vmatpush.msra.mxu2 %v4982_v18 }
 0x51e   :  { %2032 = vmatpush.msra.mxu0 %v4950_v24  ;;  %2052 = vmatpush.msra.mxu1 %v4954_v7 }
 0x51f   :  { %2092 = vmatpush.msra.mxu3 %v4963_v4  ;;  %2072 = vmatpush.msra.mxu2 %v4985_v8 }
 0x520   :  { %2033 = vmatpush.msra.mxu0 %v4959_v22  ;;  %2053 = vmatpush.msra.mxu1 %v4961_v1 }
 0x521   :  { %2073 = vmatpush.msra.mxu2 %v4990_v29 }
 0x522   :  { %1783 = vmatmul.f32.vlgmr.msrb.gmra.mxu0 %v6471_v55  ;;  %1824 = vmatmul.f32.vlgmr.msrb.gmra.mxu1 %v6471_v55 }
 0x523   :  { %1865 = vmatmul.f32.vlgmr.msrb.gmra.mxu2 %v6471_v55  ;;  %1906 = vmatmul.f32.vlgmr.msrb.gmra.mxu3 %v6471_v55 }
 0x524   :  { %2034 = vmatpush.msra.mxu0 %v4992_v32  ;;  %2054 = vmatpush.msra.mxu1 %v4994_v20 }
 0x525   :  { %2074 = vmatpush.msra.mxu2 %v5006_v27 }
 0x526   :  { %2055 = vmatpush.msra.mxu1 %v5002_v2 }
 0x527   :  { %2075 = vmatpush.msra.mxu2 %v5014_v52 }
 0x528   :  { %2056 = vmatpush.msra.mxu1 %v5024_v33 }
 0x529   :  { %2076 = vmatpush.msra.mxu2 %v5030_v36 }
 0x52a   :  { %1786 = vmatmul.f32.gmra.mxu0 %v6472_v16  ;;  %1827 = vmatmul.f32.gmra.mxu1 %v6472_v16 }
 0x52b   :  { %1868 = vmatmul.f32.gmra.mxu2 %v6472_v16  ;;  %1909 = vmatmul.f32.gmra.mxu3 %v6472_v16  ;;  %v5092_v16 = vld [vmem:[#allocation10 + $0x98] sm:$0xff] }
 0x52c   :  { %2057 = vmatpush.msra.mxu1 %v5034_v40  ;;  %2077 = vmatpush.msra.mxu2 %v5042_v41  ;;  %6490 = vst [vmem:[#allocation60_spill] sm:$0xff] %v5092_v16 }
 0x52e   :  { %2058 = vmatpush.msra.mxu1 %v5046_v47  ;;  %2078 = vmatpush.msra.mxu2 %v5076_v12 }
 0x530   :  { %2059 = vmatpush.msra.mxu1 %v5054_v39  ;;  %2079 = vmatpush.msra.mxu2 %v5082_v0 }
 0x532   :  { %1789 = vmatmul.f32.gmra.mxu0 %v6473_v6  ;;  %1830 = vmatmul.f32.gmra.mxu1 %v6473_v6 }
 0x533   :  { %1871 = vmatmul.f32.gmra.mxu2 %v6473_v6  ;;  %1912 = vmatmul.f32.gmra.mxu3 %v6473_v6  ;;  %v5094_v6 = vld [vmem:[#allocation10 + $0xd0] sm:$0xff] }
 0x534   :  { %2060 = vmatpush.msra.mxu1 %v5061_v61  ;;  %6491 = vst [vmem:[#allocation24_spill] sm:$0xff] %v5094_v6  ;;  %2080 = vmatpush.msra.mxu2 %v5094_v6 }
 0x536   :  { %2061 = vmatpush.msra.mxu1 %v5074_v11 }
 0x53a   :  { %1792 = vmatmul.f32.gmra.mxu0 %v6478_v28  ;;  %1833 = vmatmul.f32.gmra.mxu1 %v6478_v28 }
 0x53b   :  { %1874 = vmatmul.f32.gmra.mxu2 %v6478_v28  ;;  %1915 = vmatmul.f32.gmra.mxu3 %v6478_v28 }
 0x542   :  { %1795 = vmatmul.f32.gmra.mxu0 %v4820_v23  ;;  %1836 = vmatmul.f32.gmra.mxu1 %v4820_v23 }
 0x543   :  { %1877 = vmatmul.f32.gmra.mxu2 %v4820_v23  ;;  %1918 = vmatmul.f32.gmra.mxu3 %v4820_v23  ;;  %v4988_v23 = vld [vmem:[#allocation10 + $0x1b8] sm:$0xff] }
 0x544   :  { %6479 = vst [vmem:[#allocation21_spill] sm:$0xff] %v4988_v23  ;;  %2093 = vmatpush.msra.mxu3 %v4988_v23 }
 0x546   :  { %2094 = vmatpush.msra.mxu3 %v5004_v17 }
 0x548   :  { %2095 = vmatpush.msra.mxu3 %v5012_v63 }
 0x54a   :  { %1798 = vmatmul.f32.gmra.mxu0 %v4902_v54  ;;  %1839 = vmatmul.f32.gmra.mxu1 %v4902_v54 }
 0x54b   :  { %1880 = vmatmul.f32.gmra.mxu2 %v4902_v54  ;;  %1921 = vmatmul.f32.gmra.mxu3 %v4902_v54  ;;  %v4997_v54 = vld [vmem:[#allocation10 + $0x160] sm:$0xff] }
 0x54c   :  { %2035 = vmatpush.msra.mxu0 %v4997_v54  ;;  %2096 = vmatpush.msra.mxu3 %v5026_v34 }
 0x54e   :  { %2036 = vmatpush.msra.mxu0 %v5022_v31  ;;  %2097 = vmatpush.msra.mxu3 %v5037_v46 }
 0x550   :  { %2037 = vmatpush.msra.mxu0 %v5032_v53  ;;  %2098 = vmatpush.msra.mxu3 %v5056_v50 }
 0x552   :  { %1801 = vmatmul.f32.gmra.mxu0 %v1526_v15  ;;  %1842 = vmatmul.f32.gmra.mxu1 %v1526_v15 }
 0x553   :  { %1883 = vmatmul.f32.gmra.mxu2 %v1526_v15  ;;  %1924 = vmatmul.f32.gmra.mxu3 %v1526_v15  ;;  %v5088_v15 = vld [vmem:[#allocation10 + $0x88] sm:$0xff] }
 0x554   :  { %2038 = vmatpush.msra.mxu0 %v5044_v45  ;;  %2099 = vmatpush.msra.mxu3 %v5063_v49  ;;  %6489 = vst [vmem:[#allocation57_spill] sm:$0xff] %v5088_v15 }
 0x555   :  { %2062 = vmatpush.msra.mxu1 %v5088_v15 }
 0x556   :  { %2039 = vmatpush.msra.mxu0 %v5052_v58  ;;  %2100 = vmatpush.msra.mxu3 %v5069_v48 }
 0x558   :  { %2040 = vmatpush.msra.mxu0 %v5059_v56  ;;  %2101 = vmatpush.msra.mxu3 %v5080_v10 }
 0x55a   :  { %2041 = vmatpush.msra.mxu0 %v5072_v25  ;;  %2102 = vmatpush.msra.mxu3 %v5092_v16  ;;  %v5150_v16 = vld [vmem:[#allocation10 + $0x18] sm:$0xff] }
 0x55b   :  { %6508 = vst [vmem:[#allocation40_spill] sm:$0xff] %v5150_v16 }
 0x55c   :  { %2042 = vmatpush.msra.mxu0 %v5086_v19 }
 0x55e   :  { %2043 = vmatpush.msra.mxu0 %v5098_v62 }
 0x597   :  { %v1553_v35 = vpop.f32.mrf.mxu0  ;;  %v1573_v60 = vpop.f32.mrf.mxu1 }
 0x598   :  { %v1616_v37 = vadd.f32 %v1553_v35, %v217_v51  ;;  %v1617_v38 = vadd.f32 %v1573_v60, %v258_v26  ;;  %v5100_v51 = vld [vmem:[#allocation10 + $0x68] sm:$0xff]  ;;  %v5106_v35 = vld [vmem:[#allocation10 + $0xb0] sm:$0xff]  ;;  %v5108_v60 = vld [vmem:[#allocation10 + $0x78] sm:$0xff] }
 0x599   :  { %6493 = vst [vmem:[#allocation25_spill] sm:$0xff] %v5100_v51  ;;  %2063 = vmatpush.msra.mxu1 %v5100_v51  ;;  %2081 = vmatpush.msra.mxu2 %v5106_v35  ;;  %v6505_v51 = vld [vmem:[#allocation73_spill] sm:$0xff] }
 0x59a   :  { %v3324_v43 = vmul.f32 -1.442695, %v1616_v37  ;;  %v3325_v44 = vmul.f32 -1.442695, %v1617_v38  ;;  %6494 = vst [vmem:[#allocation27_spill] sm:$0xff] %v5106_v35  ;;  %v5114_v38 = vld [vmem:[#allocation10 + $0x40] sm:$0xff]  ;;  %2103 = vmatpush.msra.mxu3 %v5108_v60  ;;  %v299_v62 = vadd.f32 %v6505_v51, %v6465_v9 }
 0x59b   :  { %6495 = vst [vmem:[#allocation28_spill] sm:$0xff] %v5108_v60  ;;  %2044 = vmatpush.msra.mxu0 %v5114_v38  ;;  %v5158_v9 = vld [vmem:[#allocation10 + $0x30] sm:$0xff] }
 0x59c   :  { %3472 = vpow2.f32 %v3324_v43  ;;  %6496 = vst [vmem:[#allocation30_spill] sm:$0xff] %v5114_v38  ;;  %v5116_v43 = vld [vmem:[#allocation10 + $0x48] sm:$0xff]  ;;  %v5148_v38 = vld [vmem:[#allocation10 + $0x38] sm:$0xff] }
 0x59d   :  { %3474 = vpow2.f32 %v3325_v44  ;;  %6497 = vst [vmem:[#allocation29_spill] sm:$0xff] %v5116_v43  ;;  %v5121_v44 = vld [vmem:[#allocation10 + $0x90] sm:$0xff]  ;;  %2064 = vmatpush.msra.mxu1 %v5116_v43  ;;  %2045 = vmatpush.msra.mxu0 %v5126_v13 }
 0x59e   :  { %v1613_v57 = vpop.f32.mrf.mxu3  ;;  %6498 = vst [vmem:[#allocation31_spill] sm:$0xff] %v5121_v44  ;;  %2082 = vmatpush.msra.mxu2 %v5121_v44  ;;  %v5146_v43 = vld [vmem:[#allocation10 + $0x50] sm:$0xff] }
 0x59f   :  { %v1619_v14 = vadd.f32 %v1613_v57, %v340_v21  ;;  %v5128_v21 = vld [vmem:[#allocation10 + $0x28] sm:$0xff]  ;;  %v5130_v57 = vld [vmem:[#allocation10 + $0x58] sm:$0xff]  ;;  %6506 = vst [vmem:[#allocation38_spill] sm:$0xff] %v5146_v43 }
 0x5a0   :  { %6500 = vst [vmem:[#allocation34_spill] sm:$0xff] %v5128_v21  ;;  %2104 = vmatpush.msra.mxu3 %v5130_v57  ;;  %2065 = vmatpush.msra.mxu1 %v5128_v21 }
 0x5a1   :  { %v3326_v55 = vmul.f32 -1.442695, %v1619_v14  ;;  %6501 = vst [vmem:[#allocation33_spill] sm:$0xff] %v5130_v57  ;;  %v5134_v14 = vld [vmem:[#allocation10 + $0x70] sm:$0xff] }
 0x5a2   :  { %v3473_v28 = vpop.eup %3472  ;;  %6502 = vst [vmem:[#allocation35_spill] sm:$0xff] %v5134_v14  ;;  %2083 = vmatpush.msra.mxu2 %v5134_v14  ;;  %2105 = vmatpush.msra.mxu3 %v5148_v38 }
 0x5a3   :  { %v3475_v30 = vpop.eup %3474  ;;  %v5102_v26 = vadd.f32 1.0, %v3473_v28  ;;  %3476 = vpow2.f32 %v3326_v55  ;;  %v1593_v55 = vpop.f32.mrf.mxu2  ;;  %v5138_v28 = vld [vmem:[#allocation10] sm:$0xff]  ;;  %6507 = vst [vmem:[#allocation39_spill] sm:$0xff] %v5148_v38  ;;  %v5165_v38 = vld [vmem:[#allocation10 + $0x10] sm:$0xff] }
 0x5a4   :  { %v5110_v37 = vadd.f32 1.0, %v3475_v30  ;;  %6503 = vst [vmem:[#allocation36_spill] sm:$0xff] %v5138_v28  ;;  %v5140_v30 = vld [vmem:[#allocation10 + $0x8] sm:$0xff]  ;;  %v1618_v15 = vadd.f32 %v1593_v55, %v299_v62  ;;  %2046 = vmatpush.msra.mxu0 %v5138_v28  ;;  %2084 = vmatpush.msra.mxu2 %v5146_v43 }
 0x5a5   :  { %3478 = vrcp.f32 %v5102_v26  ;;  %6504 = vst [vmem:[#allocation37_spill] sm:$0xff] %v5140_v30  ;;  %2066 = vmatpush.msra.mxu1 %v5140_v30  ;;  %2106 = vmatpush.msra.mxu3 %v5150_v16  ;;  %v1635_v30 = vand.u32 2147483648, %v5102_v26  ;;  %vm1629_vm6 = vweird.f32 %v5102_v26 }
 0x5a6   :  { %3480 = vrcp.f32 %v5110_v37  ;;  %6509 = vst [vmem:[#allocation41_spill] sm:$0xff] %v5158_v9  ;;  %2182 = vmatpush.msrb.mxu0 %v4946_v5  ;;  %2085 = vmatpush.msra.mxu2 %v5158_v9  ;;  %v1654_v16 = vand.u32 2147483648, %v5110_v37  ;;  %v1633_v5 = vand.u32 2147483647, %v5102_v26  ;;  %vm1648_vm7 = vweird.f32 %v5110_v37 }
 0x5a7   :  { %6510 = vst [vmem:[#allocation42_spill] sm:$0xff] %v5165_v38  ;;  %2202 = vmatpush.msrb.mxu1 %v4948_v3  ;;  %2242 = vmatpush.msrb.mxu3 %v4956_v42 }
 0x5a8   :  { %2183 = vmatpush.msrb.mxu0 %v4950_v24  ;;  %2086 = vmatpush.msra.mxu2 %v5165_v38  ;;  %vm1634_vm10 = vcmp.eq.f32.partialorder %v1633_v5, 8.507059e+37 }
 0x5a9   :  { %v3477_v60 = vpop.eup %3476  ;;  %2203 = vmatpush.msrb.mxu1 %v4954_v7  ;;  %2243 = vmatpush.msrb.mxu3 %v4963_v4 }
 0x5aa   :  { %v5152_v44 = vadd.f32 1.0, %v3477_v60  ;;  %2222 = vmatpush.msrb.mxu2 %v4982_v18  ;;  %2184 = vmatpush.msrb.mxu0 %v4959_v22 }
 0x5ab   :  { %v3479_v57 = vpop.eup %3478  ;;  %2204 = vmatpush.msrb.mxu1 %v4961_v1  ;;  %2244 = vmatpush.msrb.mxu3 %v4988_v23 }
 0x5ac   :  { %v3481_v51 = vpop.eup %3480  ;;  %v1625_v21 = vmul.f32 %v3479_v57, %v5102_v26  ;;  %3482 = vrcp.f32 %v5152_v44  ;;  %vm1630_vm4 = vweird.f32 %v3479_v57  ;;  %2223 = vmatpush.msrb.mxu2 %v4985_v8  ;;  %2185 = vmatpush.msrb.mxu0 %v4992_v32  ;;  %v1655_v26 = vor.u32 1.1754944e-38, %v1654_v16 }
 0x5ad   :  { %v1644_v60 = vmul.f32 %v3481_v51, %v5110_v37  ;;  %3484 = vtanh.f32 %v1618_v15  ;;  %vm1649_vm5 = vweird.f32 %v3481_v51  ;;  %vm1631_vm8 = vmor %vm1629_vm6, %vm1630_vm4  ;;  %2205 = vmatpush.msrb.mxu1 %v4994_v20  ;;  %2245 = vmatpush.msrb.mxu3 %v5004_v17  ;;  %vm1668_vm13 = vweird.f32 %v5152_v44 }
 0x5ae   :  { %v1626_v62 = vsub.f32 1.0, %v1625_v21  ;;  %vm1650_vm9 = vmor %vm1648_vm7, %vm1649_vm5  ;;  %2224 = vmatpush.msrb.mxu2 %v4990_v29  ;;  %2186 = vmatpush.msrb.mxu0 %v4997_v54 }
 0x5af   :  { %v1645_v55 = vsub.f32 1.0, %v1644_v60  ;;  %v1652_v60 = vand.u32 2147483647, %v5110_v37  ;;  %2206 = vmatpush.msrb.mxu1 %v5002_v2  ;;  %2246 = vmatpush.msrb.mxu3 %v5012_v63 }
 0x5b0   :  { %v1627_v28 = vmul.f32 %v3479_v57, %v1626_v62  ;;  %v1636_v62 = vor.u32 1.1754944e-38, %v1635_v30  ;;  %2225 = vmatpush.msrb.mxu2 %v5006_v27  ;;  %2187 = vmatpush.msrb.mxu0 %v5022_v31 }
 0x5b1   :  { %v1646_v21 = vmul.f32 %v3481_v51, %v1645_v55  ;;  %vm1653_vm11 = vcmp.eq.f32.partialorder %v1652_v60, 8.507059e+37  ;;  %2207 = vmatpush.msrb.mxu1 %v5024_v33  ;;  %2247 = vmatpush.msrb.mxu3 %v5026_v34  ;;  %v6511_v60 = vld [vmem:[#allocation57_spill] sm:$0xff] }
 0x5b2   :  { %v5181_v15 = vpop.eup %3482  ;;  %v1628_v7 = vadd.f32 %v3479_v57, %v1627_v28  ;;  %2226 = vmatpush.msrb.mxu2 %v5014_v52  ;;  %2188 = vmatpush.msrb.mxu0 %v5032_v53 }
 0x5b3   :  { %v1647_v55 = vadd.f32 %v3481_v51, %v1646_v21  ;;  %v1664_v4 = vmul.f32 %v5181_v15, %v5152_v44  ;;  %v3485_v37 = vpop.eup %3484  ;;  %vm1669_vm12 = vweird.f32 %v5181_v15  ;;  %2208 = vmatpush.msrb.mxu1 %v5034_v40  ;;  %2248 = vmatpush.msrb.mxu3 %v5037_v46 }
 0x5b4   :  { %v1632_v28 = vsel %vm1631_vm8, %v3479_v57, %v1628_v7  ;;  %2227 = vmatpush.msrb.mxu2 %v5030_v36  ;;  %2189 = vmatpush.msrb.mxu0 %v5044_v45  ;;  %vm1670_vm14 = vmor %vm1668_vm13, %vm1669_vm12 }
 0x5b5   :  { %v1637_v23 = vsel %vm1634_vm10, %v1636_v62, %v1632_v28  ;;  %v1651_v30 = vsel %vm1650_vm9, %v3481_v51, %v1647_v55  ;;  %v1665_v21 = vsub.f32 1.0, %v1664_v4  ;;  %2209 = vmatpush.msrb.mxu1 %v5046_v47  ;;  %2249 = vmatpush.msrb.mxu3 %v5056_v50  ;;  %v6513_v62 = vld [vmem:[#allocation31_spill] sm:$0xff]  ;;  %v6514_v55 = vld [vmem:[#allocation26_spill] sm:$0xff]  ;;  %v6516_v28 = vld [vmem:[#allocation28_spill] sm:$0xff] }
 0x5b6   :  { %v1656_v1 = vsel %vm1653_vm11, %v1655_v26, %v1651_v30  ;;  %v1679_v32 = vmul.f32 %v3485_v37, %v1637_v23  ;;  %2228 = vmatpush.msrb.mxu2 %v5042_v41  ;;  %2190 = vmatpush.msrb.mxu0 %v5052_v58  ;;  %v6515_v26 = vld [vmem:[#allocation25_spill] sm:$0xff]  ;;  %v6517_v37 = vld [vmem:[#allocation30_spill] sm:$0xff] }
 0x5b7   :  { %v1678_v5 = vmul.f32 %v1656_v1, %v4931_v59  ;;  %v1666_v7 = vmul.f32 %v5181_v15, %v1665_v21  ;;  %v1674_v59 = vand.u32 2147483648, %v5152_v44  ;;  %v1672_v1 = vand.u32 2147483647, %v5152_v44  ;;  %2210 = vmatpush.msrb.mxu1 %v5054_v39  ;;  %2250 = vmatpush.msrb.mxu3 %v5063_v49  ;;  %v6518_v30 = vld [vmem:[#allocation29_spill] sm:$0xff] }
 0x5b8   :  { %2229 = vmatpush.msrb.mxu2 %v5076_v12  ;;  %2191 = vmatpush.msrb.mxu0 %v5059_v56  ;;  %v6519_v21 = vld [vmem:[#allocation33_spill] sm:$0xff] }
 0x5b9   :  { %v1680_v4 = vadd.f32 %v1679_v32, %v1678_v5  ;;  %v1667_v23 = vadd.f32 %v5181_v15, %v1666_v7  ;;  %v1675_v16 = vor.u32 1.1754944e-38, %v1674_v59  ;;  %vm1673_vm15 = vcmp.eq.f32.partialorder %v1672_v1, 8.507059e+37  ;;  %2211 = vmatpush.msrb.mxu1 %v5061_v61  ;;  %2251 = vmatpush.msrb.mxu3 %v5069_v48  ;;  %v6521_v7 = vld [vmem:[#allocation34_spill] sm:$0xff]  ;;  %v6524_v59 = vld [vmem:[#allocation37_spill] sm:$0xff]  ;;  %v6525_v1 = vld [vmem:[#allocation40_spill] sm:$0xff] }
 0x5ba   :  { %2230 = vmatpush.msrb.mxu2 %v5082_v0  ;;  %2192 = vmatpush.msrb.mxu0 %v5072_v25  ;;  %v6520_v5 = vmov 0.0  }
 0x5bb   :  { %3486 = vtanh.f32 %v1680_v4  ;;  %v1671_v32 = vsel %vm1670_vm14, %v5181_v15, %v1667_v23  ;;  %2212 = vmatpush.msrb.mxu1 %v5074_v11  ;;  %2252 = vmatpush.msrb.mxu3 %v5080_v10  ;;  %v6512_v15 = vld [vmem:[#allocation60_spill] sm:$0xff]  ;;  %v6522_v4 = vld [vmem:[#allocation39_spill] sm:$0xff] }
 0x5bc   :  { %v1676_v57 = vsel %vm1673_vm15, %v1675_v16, %v1671_v32  ;;  %2231 = vmatpush.msrb.mxu2 %v5094_v6  ;;  %2193 = vmatpush.msrb.mxu0 %v5086_v19  ;;  %v6523_v23 = vld [vmem:[#allocation36_spill] sm:$0xff]  ;;  %v6526_v32 = vld [vmem:[#allocation17_spill] sm:$0xff]  ;;  %v6527_v16 = vld [vmem:[#allocation19_spill] sm:$0xff] }
 0x5bd   :  { %2213 = vmatpush.msrb.mxu1 %v6511_v60  ;;  %2253 = vmatpush.msrb.mxu3 %v6512_v15 }
 0x5be   :  { %2232 = vmatpush.msrb.mxu2 %v5106_v35  ;;  %2194 = vmatpush.msrb.mxu0 %v6514_v55 }
 0x5bf   :  { %2214 = vmatpush.msrb.mxu1 %v6515_v26  ;;  %2254 = vmatpush.msrb.mxu3 %v6516_v28 }
 0x5c0   :  { %2233 = vmatpush.msrb.mxu2 %v6513_v62  ;;  %2195 = vmatpush.msrb.mxu0 %v6517_v37 }
 0x5c1   :  { %v3487_v44 = vpop.eup %3486  ;;  %2215 = vmatpush.msrb.mxu1 %v6518_v30  ;;  %2255 = vmatpush.msrb.mxu3 %v6519_v21 }
 0x5c2   :  { %v1682_v51 = vmul.f32 %v3487_v44, %v1676_v57  ;;  %2234 = vmatpush.msrb.mxu2 %v5134_v14  ;;  %2196 = vmatpush.msrb.mxu0 %v5126_v13  ;;  %v6528_v44 = vld [vmem:[#allocation22_spill] sm:$0xff]  ;;  %v6529_v57 = vld [vmem:[#allocation20_spill] sm:$0xff] }
 0x5c3   :  { %2216 = vmatpush.msrb.mxu1 %v6521_v7  ;;  %2256 = vmatpush.msrb.mxu3 %v6522_v4 }
 0x5c4   :  { %1804 = vmatmul.f32.gmra.mxu0 %v1682_v51  ;;  %1845 = vmatmul.f32.gmra.mxu1 %v1682_v51 }
 0x5c5   :  { %1886 = vmatmul.f32.gmra.mxu2 %v1682_v51  ;;  %1927 = vmatmul.f32.gmra.mxu3 %v1682_v51  ;;  %v6530_v51 = vld [vmem:[#allocation21_spill] sm:$0xff] }
 0x5c6   :  { %2235 = vmatpush.msrb.mxu2 %v5146_v43  ;;  %2197 = vmatpush.msrb.mxu0 %v6523_v23 }
 0x5c7   :  { %2217 = vmatpush.msrb.mxu1 %v6524_v59  ;;  %2257 = vmatpush.msrb.mxu3 %v6525_v1 }
 0x5c8   :  { %2236 = vmatpush.msrb.mxu2 %v5158_v9 }
 0x5ca   :  { %2237 = vmatpush.msrb.mxu2 %v5165_v38 }
 0x5cc   :  { %2047 = vmatmul.f32.vlgmr.msra.gmra.mxu0 %v6520_v5  ;;  %2067 = vmatmul.f32.vlgmr.msra.gmra.mxu1 %v6520_v5 }
 0x5cd   :  { %2087 = vmatmul.f32.vlgmr.msra.gmra.mxu2 %v6520_v5  ;;  %2107 = vmatmul.f32.vlgmr.msra.gmra.mxu3 %v6520_v5  ;;  %v6531_v5 = vld [vmem:[#allocation51_spill] sm:$0xff] }
 0x5ce   :  { %2333 = vmatpush.msra.mxu0 %v6526_v32  ;;  %2353 = vmatpush.msra.mxu1 %v4948_v3 }
 0x5cf   :  { %2373 = vmatpush.msra.mxu2 %v4982_v18  ;;  %2393 = vmatpush.msra.mxu3 %v4956_v42 }
 0x5d0   :  { %2334 = vmatpush.msra.mxu0 %v4950_v24  ;;  %2354 = vmatpush.msra.mxu1 %v6527_v16 }
 0x5d1   :  { %2374 = vmatpush.msra.mxu2 %v4985_v8  ;;  %2394 = vmatpush.msra.mxu3 %v6528_v44 }
 0x5d2   :  { %2335 = vmatpush.msra.mxu0 %v4959_v22  ;;  %2355 = vmatpush.msra.mxu1 %v6529_v57 }
 0x5d3   :  { %2375 = vmatpush.msra.mxu2 %v4990_v29  ;;  %2395 = vmatpush.msra.mxu3 %v6530_v51 }
 0x5d4   :  { %2336 = vmatpush.msra.mxu0 %v6531_v5  ;;  %2356 = vmatpush.msra.mxu1 %v4994_v20 }
 0x5d5   :  { %2376 = vmatpush.msra.mxu2 %v5006_v27  ;;  %2396 = vmatpush.msra.mxu3 %v5004_v17 }
 0x5d6   :  { %2337 = vmatpush.msra.mxu0 %v4997_v54  ;;  %2357 = vmatpush.msra.mxu1 %v5002_v2 }
 0x5d7   :  { %2377 = vmatpush.msra.mxu2 %v5014_v52  ;;  %2397 = vmatpush.msra.mxu3 %v5012_v63 }
 0x5d8   :  { %2338 = vmatpush.msra.mxu0 %v5022_v31  ;;  %2358 = vmatpush.msra.mxu1 %v5024_v33 }
 0x5d9   :  { %2378 = vmatpush.msra.mxu2 %v5030_v36  ;;  %2398 = vmatpush.msra.mxu3 %v5026_v34 }
 0x5da   :  { %2339 = vmatpush.msra.mxu0 %v5032_v53  ;;  %2359 = vmatpush.msra.mxu1 %v5034_v40 }
 0x5db   :  { %2379 = vmatpush.msra.mxu2 %v5042_v41  ;;  %2399 = vmatpush.msra.mxu3 %v5037_v46 }
 0x5dc   :  { %2340 = vmatpush.msra.mxu0 %v5044_v45  ;;  %2360 = vmatpush.msra.mxu1 %v5046_v47 }
 0x5dd   :  { %2380 = vmatpush.msra.mxu2 %v5076_v12  ;;  %2400 = vmatpush.msra.mxu3 %v5056_v50 }
 0x5de   :  { %2341 = vmatpush.msra.mxu0 %v5052_v58  ;;  %2361 = vmatpush.msra.mxu1 %v5054_v39 }
 0x5df   :  { %2381 = vmatpush.msra.mxu2 %v5082_v0  ;;  %2401 = vmatpush.msra.mxu3 %v5063_v49 }
 0x5e0   :  { %2342 = vmatpush.msra.mxu0 %v5059_v56  ;;  %2362 = vmatpush.msra.mxu1 %v5061_v61 }
 0x5e1   :  { %2382 = vmatpush.msra.mxu2 %v5094_v6  ;;  %2402 = vmatpush.msra.mxu3 %v5069_v48 }
 0x5e2   :  { %2343 = vmatpush.msra.mxu0 %v5072_v25  ;;  %2363 = vmatpush.msra.mxu1 %v5074_v11 }
 0x5e3   :  { %2383 = vmatpush.msra.mxu2 %v5106_v35  ;;  %2403 = vmatpush.msra.mxu3 %v5080_v10 }
 0x5e4   :  { %2344 = vmatpush.msra.mxu0 %v5086_v19  ;;  %2364 = vmatpush.msra.mxu1 %v6511_v60 }
 0x5e5   :  { %2384 = vmatpush.msra.mxu2 %v6513_v62  ;;  %2404 = vmatpush.msra.mxu3 %v6512_v15 }
 0x5e6   :  { %2345 = vmatpush.msra.mxu0 %v6514_v55  ;;  %2365 = vmatpush.msra.mxu1 %v6515_v26 }
 0x5e7   :  { %2385 = vmatpush.msra.mxu2 %v5134_v14  ;;  %2405 = vmatpush.msra.mxu3 %v6516_v28 }
 0x5e8   :  { %2346 = vmatpush.msra.mxu0 %v6517_v37  ;;  %2366 = vmatpush.msra.mxu1 %v6518_v30  ;;  %v1784_v30 = vpop.f32.mrf.mxu0  ;;  %v1907_v37 = vpop.f32.mrf.mxu3 }
 0x5e9   :  { %2386 = vmatpush.msra.mxu2 %v5146_v43  ;;  %2406 = vmatpush.msra.mxu3 %v6519_v21  ;;  %v1825_v43 = vpop.f32.mrf.mxu1 }
 0x5ea   :  { %2347 = vmatpush.msra.mxu0 %v5126_v13  ;;  %2367 = vmatpush.msra.mxu1 %v6521_v7  ;;  %v1866_v7 = vpop.f32.mrf.mxu2 }
 0x5eb   :  { %2387 = vmatpush.msra.mxu2 %v5158_v9  ;;  %2407 = vmatpush.msra.mxu3 %v6522_v4 }
 0x5ec   :  { %2348 = vmatpush.msra.mxu0 %v6523_v23  ;;  %2368 = vmatpush.msra.mxu1 %v6524_v59 }
 0x5ed   :  { %2388 = vmatpush.msra.mxu2 %v5165_v38  ;;  %2408 = vmatpush.msra.mxu3 %v6525_v1 }
 0x5f0   :  { %v5321_v21 = vpop.f32.mrf.mxu0  ;;  %v5325_v28 = vpop.f32.mrf.mxu3 }
 0x5f1   :  { %6532 = vst [vmem:[#allocation43_spill] sm:$0xff] %v5321_v21  ;;  %v5323_v13 = vpop.f32.mrf.mxu1 }
 0x5f2   :  { %6533 = vst [vmem:[#allocation44_spill] sm:$0xff] %v5323_v13  ;;  %v5331_v23 = vpop.f32.mrf.mxu2 }
 0x5f3   :  { %6534 = vst [vmem:[#allocation46_spill] sm:$0xff] %v5325_v28 }
 0x5f4   :  { %6537 = vst [vmem:[#allocation48_spill] sm:$0xff] %v5331_v23 }
 0x5f8   :  { %v5327_v9 = vpop.f32.mrf.mxu0  ;;  %v5333_v59 = vpop.f32.mrf.mxu3 }
 0x5f9   :  { %6535 = vst [vmem:[#allocation45_spill] sm:$0xff] %v5327_v9  ;;  %v5329_v4 = vpop.f32.mrf.mxu1 }
 0x5fa   :  { %6536 = vst [vmem:[#allocation47_spill] sm:$0xff] %v5329_v4  ;;  %v5339_v14 = vpop.f32.mrf.mxu2 }
 0x5fb   :  { %6538 = vst [vmem:[#allocation50_spill] sm:$0xff] %v5333_v59 }
 0x5fc   :  { %6541 = vst [vmem:[#allocation69_spill] sm:$0xff] %v5339_v14 }
 0x600   :  { %v5335_v38 = vpop.f32.mrf.mxu0  ;;  %v5341_v21 = vpop.f32.mrf.mxu3 }
 0x601   :  { %6539 = vst [vmem:[#allocation68_spill] sm:$0xff] %v5335_v38  ;;  %v5337_v1 = vpop.f32.mrf.mxu1 }
 0x602   :  { %6540 = vst [vmem:[#allocation58_spill] sm:$0xff] %v5337_v1  ;;  %v5347_v28 = vpop.f32.mrf.mxu2 }
 0x603   :  { %6542 = vst [vmem:[#allocation59_spill] sm:$0xff] %v5341_v21 }
 0x604   :  { %6545 = vst [vmem:[#allocation74_spill] sm:$0xff] %v5347_v28 }
 0x608   :  { %v5343_v13 = vpop.f32.mrf.mxu0  ;;  %v5349_v9 = vpop.f32.mrf.mxu3 }
 0x609   :  { %6543 = vst [vmem:[#allocation72_spill] sm:$0xff] %v5343_v13  ;;  %v5345_v26 = vpop.f32.mrf.mxu1 }
 0x60a   :  { %6544 = vst [vmem:[#allocation61_spill] sm:$0xff] %v5345_v26  ;;  %v5355_v59 = vpop.f32.mrf.mxu2 }
 0x60b   :  { %6546 = vst [vmem:[#allocation64_spill] sm:$0xff] %v5349_v9  ;;  %v1757_v9 = vld [vmem:[%s5984_s6] sm:$0xf] }
 0x60c   :  { %6549 = vst [vmem:[#allocation65_spill] sm:$0xff] %v5355_v59  ;;  %v5376_v59 = vperm.slane %v1757_v9, 1  ;;  %v5384_v62 = vperm.slane %v1757_v9, 3 }
 0x60e   :  { %6558 = vst [vmem:[#allocation73_spill] sm:$0xff] %v5376_v59  ;;  %v1908_v60 = vadd.f32 %v1907_v37, %v5384_v62 }
 0x60f   :  { %6561 = vst [vmem:[#allocation22_spill] sm:$0xff] %v5384_v62 }
 0x610   :  { %v5351_v4 = vpop.f32.mrf.mxu0  ;;  %v5357_v38 = vpop.f32.mrf.mxu3 }
 0x611   :  { %6547 = vst [vmem:[#allocation62_spill] sm:$0xff] %v5351_v4  ;;  %v5353_v23 = vpop.f32.mrf.mxu1 }
 0x612   :  { %6548 = vst [vmem:[#allocation63_spill] sm:$0xff] %v5353_v23  ;;  %v5363_v21 = vpop.f32.mrf.mxu2  ;;  %v5374_v23 = vperm.slane %v1757_v9, 0 }
 0x613   :  { %6550 = vst [vmem:[#allocation70_spill] sm:$0xff] %v5357_v38 }
 0x614   :  { %6553 = vst [vmem:[#allocation23_spill] sm:$0xff] %v5363_v21 }
 0x615   :  { %6557 = vst [vmem:[#allocation71_spill] sm:$0xff] %v5374_v23 }
 0x618   :  { %v5359_v1 = vpop.f32.mrf.mxu0  ;;  %v5365_v13 = vpop.f32.mrf.mxu3 }
 0x619   :  { %6551 = vst [vmem:[#allocation75_spill] sm:$0xff] %v5359_v1  ;;  %v5361_v14 = vpop.f32.mrf.mxu1  ;;  %v1785_v1 = vadd.f32 %v1784_v30, %v5374_v23 }
 0x61a   :  { %6552 = vst [vmem:[#allocation18_spill] sm:$0xff] %v5361_v14  ;;  %v1826_v14 = vadd.f32 %v1825_v43, %v5376_v59  ;;  %v5380_v38 = vpop.f32.mrf.mxu2 }
 0x61b   :  { %6554 = vst [vmem:[#allocation49_spill] sm:$0xff] %v5365_v13 }
 0x61c   :  { %6559 = vst [vmem:[#allocation17_spill] sm:$0xff] %v5380_v38 }
 0x641   :  { %v5370_v26 = vpop.f32.mrf.mxu0  ;;  %v5372_v4 = vpop.f32.mrf.mxu1 }
 0x642   :  { %6555 = vst [vmem:[#allocation66_spill] sm:$0xff] %v5370_v26 }
 0x643   :  { %6556 = vst [vmem:[#allocation67_spill] sm:$0xff] %v5372_v4 }
 0x648   :  { %v5382_v21 = vpop.f32.mrf.mxu3  ;;  %v5387_v19 = vpop.f32.mrf.mxu2 }
 0x649   :  { %6560 = vst [vmem:[#allocation19_spill] sm:$0xff] %v5382_v21  ;;  %v2048_v13 = vpop.f32.mrf.mxu0  ;;  %v2068_v28 = vpop.f32.mrf.mxu1 }
 0x64a   :  { %v2111_v55 = vadd.f32 %v2048_v13, %v1785_v1  ;;  %v2112_v15 = vadd.f32 %v2068_v28, %v1826_v14  ;;  %6562 = vst [vmem:[#allocation20_spill] sm:$0xff] %v5387_v19  ;;  %v5389_v13 = vperm.slane %v1757_v9, 2 }
 0x64c   :  { %v3327_v26 = vmul.f32 -1.442695, %v2111_v55  ;;  %v3328_v4 = vmul.f32 -1.442695, %v2112_v15  ;;  %6563 = vst [vmem:[#allocation21_spill] sm:$0xff] %v5389_v13  ;;  %v1867_v55 = vadd.f32 %v1866_v7, %v5389_v13 }
 0x64e   :  { %3488 = vpow2.f32 %v3327_v26 }
 0x64f   :  { %3490 = vpow2.f32 %v3328_v4 }
 0x650   :  { %v2108_v30 = vpop.f32.mrf.mxu3  ;;  %v2088_v14 = vpop.f32.mrf.mxu2 }
 0x651   :  { %v2114_v43 = vadd.f32 %v2108_v30, %v1908_v60  ;;  %v2113_v37 = vadd.f32 %v2088_v14, %v1867_v55 }
 0x653   :  { %v3329_v59 = vmul.f32 -1.442695, %v2114_v43 }
 0x654   :  { %v3489_v38 = vpop.eup %3488 }
 0x655   :  { %v3491_v23 = vpop.eup %3490  ;;  %v2118_v21 = vadd.f32 1.0, %v3489_v38  ;;  %3492 = vpow2.f32 %v3329_v59 }
 0x656   :  { %v2137_v10 = vadd.f32 1.0, %v3491_v23 }
 0x657   :  { %3494 = vrcp.f32 %v2118_v21  ;;  %v2130_v38 = vand.u32 2147483648, %v2118_v21  ;;  %v2128_v59 = vand.u32 2147483647, %v2118_v21  ;;  %vm2124_vm2 = vweird.f32 %v2118_v21 }
 0x658   :  { %3496 = vrcp.f32 %v2137_v10  ;;  %v2149_v23 = vand.u32 2147483648, %v2137_v10  ;;  %v2147_v62 = vand.u32 2147483647, %v2137_v10  ;;  %vm2143_vm3 = vweird.f32 %v2137_v10 }
 0x659   :  { %v2131_v14 = vor.u32 1.1754944e-38, %v2130_v38  ;;  %vm2129_vm5 = vcmp.eq.f32.partialorder %v2128_v59, 8.507059e+37 }
 0x65a   :  { %v2150_v13 = vor.u32 1.1754944e-38, %v2149_v23  ;;  %vm2148_vm7 = vcmp.eq.f32.partialorder %v2147_v62, 8.507059e+37 }
 0x65b   :  { %v3493_v15 = vpop.eup %3492 }
 0x65c   :  { %v2157_v26 = vadd.f32 1.0, %v3493_v15 }
 0x65d   :  { %v3495_v28 = vpop.eup %3494 }
 0x65e   :  { %v3497_v4 = vpop.eup %3496  ;;  %v2120_v1 = vmul.f32 %v3495_v28, %v2118_v21  ;;  %3498 = vrcp.f32 %v2157_v26  ;;  %vm2125_vm0 = vweird.f32 %v3495_v28  ;;  %vm2163_vm9 = vweird.f32 %v2157_v26 }
 0x65f   :  { %v2139_v60 = vmul.f32 %v3497_v4, %v2137_v10  ;;  %3500 = vtanh.f32 %v2113_v37  ;;  %vm2144_vm1 = vweird.f32 %v3497_v4  ;;  %vm2126_vm4 = vmor %vm2124_vm2, %vm2125_vm0  ;;  %v2167_v21 = vand.u32 2147483647, %v2157_v26 }
 0x660   :  { %v2121_v30 = vsub.f32 1.0, %v2120_v1  ;;  %vm2145_vm6 = vmor %vm2143_vm3, %vm2144_vm1 }
 0x661   :  { %v2140_v43 = vsub.f32 1.0, %v2139_v60  ;;  %vm2168_vm11 = vcmp.eq.f32.partialorder %v2167_v21, 8.507059e+37 }
 0x662   :  { %v2122_v9 = vmul.f32 %v3495_v28, %v2121_v30 }
 0x663   :  { %v2141_v19 = vmul.f32 %v3497_v4, %v2140_v43 }
 0x664   :  { %v3499_v35 = vpop.eup %3498  ;;  %v2123_v7 = vadd.f32 %v3495_v28, %v2122_v9 }
 0x665   :  { %v2142_v15 = vadd.f32 %v3497_v4, %v2141_v19  ;;  %v2159_v55 = vmul.f32 %v3499_v35, %v2157_v26  ;;  %v3501_v37 = vpop.eup %3500  ;;  %vm2164_vm8 = vweird.f32 %v3499_v35  ;;  %v2169_v19 = vand.u32 2147483648, %v2157_v26 }
 0x666   :  { %v2127_v1 = vsel %vm2126_vm4, %v3495_v28, %v2123_v7  ;;  %vm2165_vm10 = vmor %vm2163_vm9, %vm2164_vm8 }
 0x667   :  { %v2132_v60 = vsel %vm2129_vm5, %v2131_v14, %v2127_v1  ;;  %v2146_v30 = vsel %vm2145_vm6, %v3497_v4, %v2142_v15  ;;  %v2160_v11 = vsub.f32 1.0, %v2159_v55  ;;  %v2170_v38 = vor.u32 1.1754944e-38, %v2169_v19  ;;  %v6596_v1 = vld [vmem:[#allocation21_spill] sm:$0xff] }
 0x668   :  { %v2151_v43 = vsel %vm2148_vm7, %v2150_v13, %v2146_v30  ;;  %v2174_v25 = vmul.f32 %v3501_v37, %v2132_v60  ;;  %v6597_v37 = vld [vmem:[#allocation48_spill] sm:$0xff] }
 0x669   :  { %v2173_v48 = vmul.f32 0.0, %v2151_v43  ;;  %v2161_v6 = vmul.f32 %v3499_v35, %v2160_v11  ;;  %v1870_v60 = vadd.f32 %v6597_v37, %v6596_v1  ;;  %v5528_v37 = vld [vmem:[#allocation10 + $0x178] sm:$0xff] }
 0x66b   :  { %v5392_v9 = vadd.f32 %v2174_v25, %v2173_v48  ;;  %v2162_v10 = vadd.f32 %v3499_v35, %v2161_v6  ;;  %v6593_v48 = vld [vmem:[#allocation44_spill] sm:$0xff] }
 0x66d   :  { %3502 = vtanh.f32 %v5392_v9  ;;  %v2166_v28 = vsel %vm2165_vm10, %v3499_v35, %v2162_v10 }
 0x66e   :  { %v2171_v62 = vsel %vm2168_vm11, %v2170_v38, %v2166_v28 }
 0x673   :  { %v3503_v4 = vpop.eup %3502 }
 0x674   :  { %v2177_v23 = vmul.f32 %v3503_v4, %v2171_v62 }
 0x676   :  { %2198 = vmatmul.f32.vlgmr.msrb.gmra.mxu0 %v2177_v23  ;;  %2218 = vmatmul.f32.vlgmr.msrb.gmra.mxu1 %v2177_v23 }
 0x677   :  { %2238 = vmatmul.f32.vlgmr.msrb.gmra.mxu2 %v2177_v23  ;;  %2258 = vmatmul.f32.vlgmr.msrb.gmra.mxu3 %v2177_v23 }
 0x678   :  { %2484 = vmatpush.msrb.mxu0 %v6526_v32  ;;  %2504 = vmatpush.msrb.mxu1 %v4948_v3  ;;  %v6564_v3 = vld [vmem:[#allocation24_spill] sm:$0xff] }
 0x679   :  { %2524 = vmatpush.msrb.mxu2 %v4982_v18  ;;  %2544 = vmatpush.msrb.mxu3 %v4956_v42  ;;  %v6566_v42 = vld [vmem:[#allocation54_spill] sm:$0xff]  ;;  %v6568_v18 = vld [vmem:[#allocation27_spill] sm:$0xff] }
 0x67a   :  { %2485 = vmatpush.msrb.mxu0 %v4950_v24  ;;  %2505 = vmatpush.msrb.mxu1 %v6527_v16  ;;  %v6565_v24 = vld [vmem:[#allocation52_spill] sm:$0xff]  ;;  %v6594_v16 = vld [vmem:[#allocation22_spill] sm:$0xff] }
 0x67b   :  { %2525 = vmatpush.msrb.mxu2 %v4985_v8  ;;  %2545 = vmatpush.msrb.mxu3 %v6528_v44  ;;  %v6569_v8 = vld [vmem:[#allocation55_spill] sm:$0xff]  ;;  %v6595_v44 = vld [vmem:[#allocation46_spill] sm:$0xff] }
 0x67c   :  { %2486 = vmatpush.msrb.mxu0 %v4959_v22  ;;  %2506 = vmatpush.msrb.mxu1 %v6529_v57  ;;  %v6567_v22 = vld [vmem:[#allocation53_spill] sm:$0xff]  ;;  %v1911_v57 = vadd.f32 %v6595_v44, %v6594_v16 }
 0x67d   :  { %2526 = vmatpush.msrb.mxu2 %v4990_v29  ;;  %2546 = vmatpush.msrb.mxu3 %v6530_v51  ;;  %v6570_v29 = vld [vmem:[#allocation56_spill] sm:$0xff] }
 0x67e   :  { %2487 = vmatpush.msrb.mxu0 %v6531_v5  ;;  %2507 = vmatpush.msrb.mxu1 %v4994_v20  ;;  %v6571_v20 = vld [vmem:[#allocation57_spill] sm:$0xff] }
 0x67f   :  { %2527 = vmatpush.msrb.mxu2 %v5006_v27  ;;  %2547 = vmatpush.msrb.mxu3 %v5004_v17  ;;  %v6574_v17 = vld [vmem:[#allocation26_spill] sm:$0xff]  ;;  %v6575_v27 = vld [vmem:[#allocation25_spill] sm:$0xff] }
 0x680   :  { %2488 = vmatpush.msrb.mxu0 %v4997_v54  ;;  %2508 = vmatpush.msrb.mxu1 %v5002_v2  ;;  %v6572_v54 = vld [vmem:[#allocation31_spill] sm:$0xff]  ;;  %v6573_v2 = vld [vmem:[#allocation60_spill] sm:$0xff] }
 0x681   :  { %2528 = vmatpush.msrb.mxu2 %v5014_v52  ;;  %2548 = vmatpush.msrb.mxu3 %v5012_v63  ;;  %v6576_v63 = vld [vmem:[#allocation35_spill] sm:$0xff]  ;;  %v6577_v52 = vld [vmem:[#allocation28_spill] sm:$0xff] }
 0x682   :  { %2489 = vmatpush.msrb.mxu0 %v5022_v31  ;;  %2509 = vmatpush.msrb.mxu1 %v5024_v33  ;;  %v6578_v31 = vld [vmem:[#allocation30_spill] sm:$0xff]  ;;  %v6579_v33 = vld [vmem:[#allocation29_spill] sm:$0xff] }
 0x683   :  { %2529 = vmatpush.msrb.mxu2 %v5030_v36  ;;  %2549 = vmatpush.msrb.mxu3 %v5026_v34  ;;  %v6580_v34 = vld [vmem:[#allocation38_spill] sm:$0xff]  ;;  %v6581_v36 = vld [vmem:[#allocation33_spill] sm:$0xff] }
 0x684   :  { %2490 = vmatpush.msrb.mxu0 %v5032_v53  ;;  %2510 = vmatpush.msrb.mxu1 %v5034_v40  ;;  %v6582_v53 = vld [vmem:[#allocation32_spill] sm:$0xff]  ;;  %v6583_v40 = vld [vmem:[#allocation34_spill] sm:$0xff] }
 0x685   :  { %2530 = vmatpush.msrb.mxu2 %v5042_v41  ;;  %2550 = vmatpush.msrb.mxu3 %v5037_v46  ;;  %v6584_v46 = vld [vmem:[#allocation41_spill] sm:$0xff]  ;;  %v6585_v41 = vld [vmem:[#allocation39_spill] sm:$0xff] }
 0x686   :  { %2491 = vmatpush.msrb.mxu0 %v5044_v45  ;;  %2511 = vmatpush.msrb.mxu1 %v5046_v47  ;;  %v6586_v45 = vld [vmem:[#allocation36_spill] sm:$0xff]  ;;  %v6587_v47 = vld [vmem:[#allocation37_spill] sm:$0xff] }
 0x687   :  { %2531 = vmatpush.msrb.mxu2 %v5076_v12  ;;  %2551 = vmatpush.msrb.mxu3 %v5056_v50  ;;  %v6590_v50 = vld [vmem:[#allocation71_spill] sm:$0xff]  ;;  %v5495_v44 = vld [vmem:[#allocation10 + $0x1a0] sm:$0xff] }
 0x688   :  { %2492 = vmatpush.msrb.mxu0 %v5052_v58  ;;  %2512 = vmatpush.msrb.mxu1 %v5054_v39  ;;  %v6588_v58 = vld [vmem:[#allocation42_spill] sm:$0xff]  ;;  %v6589_v39 = vld [vmem:[#allocation40_spill] sm:$0xff] }
 0x689   :  { %2532 = vmatpush.msrb.mxu2 %v5082_v0  ;;  %2552 = vmatpush.msrb.mxu3 %v5063_v49  ;;  %v6592_v49 = vld [vmem:[#allocation73_spill] sm:$0xff] }
 0x68a   :  { %2493 = vmatpush.msrb.mxu0 %v5059_v56  ;;  %2513 = vmatpush.msrb.mxu1 %v5061_v61  ;;  %v6591_v56 = vld [vmem:[#allocation43_spill] sm:$0xff]  ;;  %v1829_v25 = vadd.f32 %v6593_v48, %v6592_v49 }
 0x68b   :  { %2533 = vmatpush.msrb.mxu2 %v6564_v3  ;;  %2553 = vmatpush.msrb.mxu3 %v6565_v24  ;;  %v1788_v61 = vadd.f32 %v6591_v56, %v6590_v50 }
 0x68c   :  { %2494 = vmatpush.msrb.mxu0 %v6566_v42  ;;  %2514 = vmatpush.msrb.mxu1 %v6567_v22 }
 0x68d   :  { %2534 = vmatpush.msrb.mxu2 %v6568_v18  ;;  %2554 = vmatpush.msrb.mxu3 %v6569_v8 }
 0x68e   :  { %2495 = vmatpush.msrb.mxu0 %v6570_v29  ;;  %2515 = vmatpush.msrb.mxu1 %v6571_v20 }
 0x68f   :  { %2535 = vmatpush.msrb.mxu2 %v6572_v54  ;;  %2555 = vmatpush.msrb.mxu3 %v6573_v2 }
 0x690   :  { %2496 = vmatpush.msrb.mxu0 %v6574_v17  ;;  %2516 = vmatpush.msrb.mxu1 %v6575_v27 }
 0x691   :  { %2536 = vmatpush.msrb.mxu2 %v6576_v63  ;;  %2556 = vmatpush.msrb.mxu3 %v6577_v52 }
 0x692   :  { %2497 = vmatpush.msrb.mxu0 %v6578_v31  ;;  %2517 = vmatpush.msrb.mxu1 %v6579_v33 }
 0x693   :  { %2537 = vmatpush.msrb.mxu2 %v6580_v34  ;;  %2557 = vmatpush.msrb.mxu3 %v6581_v36 }
 0x694   :  { %2498 = vmatpush.msrb.mxu0 %v6582_v53  ;;  %2518 = vmatpush.msrb.mxu1 %v6583_v40 }
 0x695   :  { %2538 = vmatpush.msrb.mxu2 %v6584_v46  ;;  %2558 = vmatpush.msrb.mxu3 %v6585_v41 }
 0x696   :  { %2499 = vmatpush.msrb.mxu0 %v6586_v45  ;;  %2519 = vmatpush.msrb.mxu1 %v6587_v47 }
 0x697   :  { %2539 = vmatpush.msrb.mxu2 %v6588_v58  ;;  %2559 = vmatpush.msrb.mxu3 %v6589_v39 }
 0x6f3   :  { %v2199_v11 = vpop.f32.mrf.mxu0  ;;  %v2219_v12 = vpop.f32.mrf.mxu1 }
 0x6f4   :  { %v2262_v0 = vadd.f32 %v2199_v11, %v1788_v61  ;;  %v2263_v6 = vadd.f32 %v2219_v12, %v1829_v25  ;;  %v5474_v25 = vld [vmem:[#allocation10 + $0x1e8] sm:$0xff]  ;;  %v5477_v11 = vld [vmem:[#allocation10 + $0x1f0] sm:$0xff]  ;;  %v5480_v12 = vld [vmem:[#allocation10 + $0x1f8] sm:$0xff] }
 0x6f6   :  { %v3330_v35 = vmul.f32 -1.442695, %v2262_v0  ;;  %v3331_v32 = vmul.f32 -1.442695, %v2263_v6  ;;  %v5483_v0 = vld [vmem:[#allocation10 + $0x1c0] sm:$0xff]  ;;  %v5486_v6 = vld [vmem:[#allocation10 + $0x1c8] sm:$0xff] }
 0x6f8   :  { %3504 = vpow2.f32 %v3330_v35  ;;  %v5489_v35 = vld [vmem:[#allocation10 + $0x1d0] sm:$0xff] }
 0x6f9   :  { %3506 = vpow2.f32 %v3331_v32  ;;  %v5492_v32 = vld [vmem:[#allocation10 + $0x1d8] sm:$0xff] }
 0x6fa   :  { %v2259_v51 = vpop.f32.mrf.mxu3  ;;  %v2239_v15 = vpop.f32.mrf.mxu2 }
 0x6fb   :  { %v2265_v5 = vadd.f32 %v2259_v51, %v1911_v57  ;;  %v2264_v10 = vadd.f32 %v2239_v15, %v1870_v60  ;;  %v5498_v57 = vld [vmem:[#allocation10 + $0x1a8] sm:$0xff]  ;;  %v5501_v51 = vld [vmem:[#allocation10 + $0x1b0] sm:$0xff]  ;;  %v5531_v60 = vld [vmem:[#allocation10 + $0x140] sm:$0xff] }
 0x6fc   :  { %v5522_v15 = vld [vmem:[#allocation10 + $0x168] sm:$0xff] }
 0x6fd   :  { %v3332_v13 = vmul.f32 -1.442695, %v2265_v5  ;;  %v5504_v5 = vld [vmem:[#allocation10 + $0x1b8] sm:$0xff] }
 0x6fe   :  { %v3505_v26 = vpop.eup %3504 }
 0x6ff   :  { %v3507_v59 = vpop.eup %3506  ;;  %v2269_v7 = vadd.f32 1.0, %v3505_v26  ;;  %3508 = vpow2.f32 %v3332_v13  ;;  %v5507_v13 = vld [vmem:[#allocation10 + $0x180] sm:$0xff]  ;;  %v5510_v26 = vld [vmem:[#allocation10 + $0x188] sm:$0xff] }
 0x700   :  { %v2288_v14 = vadd.f32 1.0, %v3507_v59  ;;  %v5513_v59 = vld [vmem:[#allocation10 + $0x190] sm:$0xff] }
 0x701   :  { %3510 = vrcp.f32 %v2269_v7  ;;  %v2281_v62 = vand.u32 2147483648, %v2269_v7  ;;  %v2279_v24 = vand.u32 2147483647, %v2269_v7  ;;  %vm2275_vm14 = vweird.f32 %v2269_v7 }
 0x702   :  { %3512 = vrcp.f32 %v2288_v14  ;;  %v2300_v23 = vand.u32 2147483648, %v2288_v14  ;;  %v2298_v22 = vand.u32 2147483647, %v2288_v14  ;;  %vm2294_vm15 = vweird.f32 %v2288_v14 }
 0x703   :  { %v2282_v29 = vor.u32 1.1754944e-38, %v2281_v62  ;;  %vm2280_vm2 = vcmp.eq.f32.partialorder %v2279_v24, 8.507059e+37  ;;  %v5558_v62 = vld [vmem:[#allocation10 + $0x108] sm:$0xff]  ;;  %v5567_v24 = vld [vmem:[#allocation10 + $0xe0] sm:$0xff] }
 0x704   :  { %v2301_v2 = vor.u32 1.1754944e-38, %v2300_v23  ;;  %vm2299_vm3 = vcmp.eq.f32.partialorder %v2298_v22, 8.507059e+37  ;;  %v5561_v23 = vld [vmem:[#allocation10 + $0x110] sm:$0xff] }
 0x705   :  { %v3509_v55 = vpop.eup %3508  ;;  %v5573_v22 = vld [vmem:[#allocation10 + $0xf0] sm:$0xff] }
 0x706   :  { %v2308_v30 = vadd.f32 1.0, %v3509_v55  ;;  %v5525_v55 = vld [vmem:[#allocation10 + $0x170] sm:$0xff] }
 0x707   :  { %v3511_v43 = vpop.eup %3510 }
 0x708   :  { %v3513_v19 = vpop.eup %3512  ;;  %v2271_v21 = vmul.f32 %v3511_v43, %v2269_v7  ;;  %3514 = vrcp.f32 %v2308_v30  ;;  %vm2276_vm12 = vweird.f32 %v3511_v43  ;;  %v2320_v41 = vand.u32 2147483648, %v2308_v30  ;;  %v5516_v7 = vld [vmem:[#allocation10 + $0x198] sm:$0xff] }
 0x709   :  { %v2290_v28 = vmul.f32 %v3513_v19, %v2288_v14  ;;  %3516 = vtanh.f32 %v2264_v10  ;;  %vm2295_vm13 = vweird.f32 %v3513_v19  ;;  %vm2277_vm0 = vmor %vm2275_vm14, %vm2276_vm12  ;;  %vm2314_vm5 = vweird.f32 %v2308_v30  ;;  %v5519_v14 = vld [vmem:[#allocation10 + $0x160] sm:$0xff]  ;;  %v5540_v10 = vld [vmem:[#allocation10 + $0x158] sm:$0xff] }
 0x70a   :  { %v2272_v38 = vsub.f32 1.0, %v2271_v21  ;;  %vm2296_vm1 = vmor %vm2294_vm15, %vm2295_vm13  ;;  %v2318_v45 = vand.u32 2147483647, %v2308_v30  ;;  %v2321_v39 = vor.u32 1.1754944e-38, %v2320_v41  ;;  %v5546_v21 = vld [vmem:[#allocation10 + $0x128] sm:$0xff]  ;;  %v5624_v41 = vld [vmem:[#allocation10 + $0x78] sm:$0xff] }
 0x70b   :  { %v2291_v4 = vsub.f32 1.0, %v2290_v28  ;;  %v5549_v28 = vld [vmem:[#allocation10 + $0x130] sm:$0xff]  ;;  %6611 = vst [vmem:[#allocation35_spill] sm:$0xff] %v5624_v41 }
 0x70c   :  { %v2273_v3 = vmul.f32 %v3511_v43, %v2272_v38  ;;  %vm2319_vm7 = vcmp.eq.f32.partialorder %v2318_v45, 8.507059e+37  ;;  %v5552_v38 = vld [vmem:[#allocation10 + $0x138] sm:$0xff]  ;;  %v5627_v45 = vld [vmem:[#allocation10 + $0x40] sm:$0xff] }
 0x70d   :  { %v2292_v42 = vmul.f32 %v3513_v19, %v2291_v4  ;;  %v5555_v4 = vld [vmem:[#allocation10 + $0x100] sm:$0xff]  ;;  %6612 = vst [vmem:[#allocation28_spill] sm:$0xff] %v5627_v45 }
 0x70e   :  { %v3515_v18 = vpop.eup %3514  ;;  %v2274_v8 = vadd.f32 %v3511_v43, %v2273_v3  ;;  %v5564_v3 = vld [vmem:[#allocation10 + $0x118] sm:$0xff] }
 0x70f   :  { %v2293_v20 = vadd.f32 %v3513_v19, %v2292_v42  ;;  %v2310_v54 = vmul.f32 %v3515_v18, %v2308_v30  ;;  %v3517_v27 = vpop.eup %3516  ;;  %vm2315_vm4 = vweird.f32 %v3515_v18  ;;  %v5534_v30 = vld [vmem:[#allocation10 + $0x148] sm:$0xff] }
 0x710   :  { %v2278_v17 = vsel %vm2277_vm0, %v3511_v43, %v2274_v8  ;;  %vm2316_vm6 = vmor %vm2314_vm5, %vm2315_vm4  ;;  %v5537_v43 = vld [vmem:[#allocation10 + $0x150] sm:$0xff]  ;;  %v5570_v42 = vld [vmem:[#allocation10 + $0xe8] sm:$0xff] }
 0x711   :  { %v2283_v63 = vsel %vm2280_vm2, %v2282_v29, %v2278_v17  ;;  %v2297_v52 = vsel %vm2296_vm1, %v3513_v19, %v2293_v20  ;;  %v2311_v31 = vsub.f32 1.0, %v2310_v54  ;;  %v5543_v19 = vld [vmem:[#allocation10 + $0x120] sm:$0xff]  ;;  %v5582_v29 = vld [vmem:[#allocation10 + $0xc8] sm:$0xff]  ;;  %v5585_v20 = vld [vmem:[#allocation10 + $0xd0] sm:$0xff] }
 0x712   :  { %v2302_v33 = vsel %vm2299_vm3, %v2301_v2, %v2297_v52  ;;  %v2325_v34 = vmul.f32 %v3517_v27, %v2283_v63  ;;  %v5579_v8 = vld [vmem:[#allocation10 + $0xc0] sm:$0xff]  ;;  %6598 = vst [vmem:[#allocation51_spill] sm:$0xff] %v5585_v20  ;;  %v5588_v54 = vld [vmem:[#allocation10 + $0xd8] sm:$0xff]  ;;  %v5594_v17 = vld [vmem:[#allocation10 + $0xa8] sm:$0xff] }
 0x713   :  { %v2324_v36 = vmul.f32 %v2302_v33, %v5392_v9  ;;  %v2312_v53 = vmul.f32 %v3515_v18, %v2311_v31  ;;  %v5471_v9 = vld [vmem:[#allocation10 + $0x1e0] sm:$0xff]  ;;  %6599 = vst [vmem:[#allocation24_spill] sm:$0xff] %v5588_v54  ;;  %v5597_v27 = vld [vmem:[#allocation10 + $0xb0] sm:$0xff]  ;;  %v5600_v63 = vld [vmem:[#allocation10 + $0xb8] sm:$0xff] }
 0x714   :  { %v5591_v2 = vld [vmem:[#allocation10 + $0xa0] sm:$0xff]  ;;  %6601 = vst [vmem:[#allocation54_spill] sm:$0xff] %v5594_v17  ;;  %v5606_v31 = vld [vmem:[#allocation10 + $0x88] sm:$0xff]  ;;  %v5609_v33 = vld [vmem:[#allocation10 + $0x90] sm:$0xff] }
 0x715   :  { %v5468_v40 = vadd.f32 %v2325_v34, %v2324_v36  ;;  %v2313_v46 = vadd.f32 %v3515_v18, %v2312_v53  ;;  %6600 = vst [vmem:[#allocation52_spill] sm:$0xff] %v5591_v2  ;;  %v5603_v52 = vld [vmem:[#allocation10 + $0x80] sm:$0xff]  ;;  %v5612_v34 = vld [vmem:[#allocation10 + $0x98] sm:$0xff]  ;;  %v5618_v53 = vld [vmem:[#allocation10 + $0x68] sm:$0xff] }
 0x716   :  { %6602 = vst [vmem:[#allocation53_spill] sm:$0xff] %v5597_v27  ;;  %v5615_v36 = vld [vmem:[#allocation10 + $0x60] sm:$0xff] }
 0x717   :  { %3518 = vtanh.f32 %v5468_v40  ;;  %v2317_v47 = vsel %vm2316_vm6, %v3515_v18, %v2313_v46  ;;  %v5576_v18 = vld [vmem:[#allocation10 + $0xf8] sm:$0xff]  ;;  %6603 = vst [vmem:[#allocation27_spill] sm:$0xff] %v5600_v63  ;;  %v5621_v46 = vld [vmem:[#allocation10 + $0x70] sm:$0xff] }
 0x718   :  { %v2322_v61 = vsel %vm2319_vm7, %v2321_v39, %v2317_v47  ;;  %6604 = vst [vmem:[#allocation55_spill] sm:$0xff] %v5603_v52  ;;  %v5630_v47 = vld [vmem:[#allocation10 + $0x48] sm:$0xff]  ;;  %v5633_v39 = vld [vmem:[#allocation10 + $0x50] sm:$0xff] }
 0x719   :  { %6605 = vst [vmem:[#allocation56_spill] sm:$0xff] %v5606_v31 }
 0x71a   :  { %6606 = vst [vmem:[#allocation57_spill] sm:$0xff] %v5609_v33 }
 0x71b   :  { %6607 = vst [vmem:[#allocation31_spill] sm:$0xff] %v5612_v34 }
 0x71c   :  { %6608 = vst [vmem:[#allocation60_spill] sm:$0xff] %v5615_v36 }
 0x71d   :  { %v3519_v56 = vpop.eup %3518  ;;  %6609 = vst [vmem:[#allocation26_spill] sm:$0xff] %v5618_v53 }
 0x71e   :  { %v2328_v48 = vmul.f32 %v3519_v56, %v2322_v61  ;;  %6610 = vst [vmem:[#allocation25_spill] sm:$0xff] %v5621_v46  ;;  %v5636_v56 = vld [vmem:[#allocation10 + $0x58] sm:$0xff]  ;;  %v5639_v61 = vld [vmem:[#allocation10 + $0x20] sm:$0xff] }
 0x71f   :  { %6613 = vst [vmem:[#allocation30_spill] sm:$0xff] %v5630_v47 }
 0x720   :  { %2349 = vmatmul.f32.vlgmr.msra.gmra.mxu0 %v2328_v48  ;;  %2369 = vmatmul.f32.vlgmr.msra.gmra.mxu1 %v2328_v48  ;;  %6614 = vst [vmem:[#allocation29_spill] sm:$0xff] %v5633_v39 }
 0x721   :  { %2389 = vmatmul.f32.vlgmr.msra.gmra.mxu2 %v2328_v48  ;;  %2409 = vmatmul.f32.vlgmr.msra.gmra.mxu3 %v2328_v48  ;;  %6615 = vst [vmem:[#allocation38_spill] sm:$0xff] %v5636_v56  ;;  %v5642_v48 = vld [vmem:[#allocation10 + $0x28] sm:$0xff] }
 0x722   :  { %2635 = vmatpush.msra.mxu0 %v5471_v9  ;;  %2655 = vmatpush.msra.mxu1 %v5474_v25  ;;  %6616 = vst [vmem:[#allocation33_spill] sm:$0xff] %v5639_v61 }
 0x723   :  { %2675 = vmatpush.msra.mxu2 %v5477_v11  ;;  %2695 = vmatpush.msra.mxu3 %v5480_v12  ;;  %6617 = vst [vmem:[#allocation32_spill] sm:$0xff] %v5642_v48 }
 0x724   :  { %2636 = vmatpush.msra.mxu0 %v5483_v0  ;;  %2656 = vmatpush.msra.mxu1 %v5486_v6 }
 0x725   :  { %2676 = vmatpush.msra.mxu2 %v5489_v35  ;;  %2696 = vmatpush.msra.mxu3 %v5492_v32 }
 0x726   :  { %2637 = vmatpush.msra.mxu0 %v5495_v44  ;;  %2657 = vmatpush.msra.mxu1 %v5498_v57 }
 0x727   :  { %2677 = vmatpush.msra.mxu2 %v5501_v51  ;;  %2697 = vmatpush.msra.mxu3 %v5504_v5 }
 0x728   :  { %2638 = vmatpush.msra.mxu0 %v5507_v13  ;;  %2658 = vmatpush.msra.mxu1 %v5510_v26 }
 0x729   :  { %2678 = vmatpush.msra.mxu2 %v5513_v59  ;;  %2698 = vmatpush.msra.mxu3 %v5516_v7 }
 0x72a   :  { %2639 = vmatpush.msra.mxu0 %v5519_v14  ;;  %2659 = vmatpush.msra.mxu1 %v5522_v15 }
 0x72b   :  { %2679 = vmatpush.msra.mxu2 %v5525_v55  ;;  %2699 = vmatpush.msra.mxu3 %v5528_v37 }
 0x72c   :  { %2640 = vmatpush.msra.mxu0 %v5531_v60  ;;  %2660 = vmatpush.msra.mxu1 %v5534_v30 }
 0x72d   :  { %2680 = vmatpush.msra.mxu2 %v5537_v43  ;;  %2700 = vmatpush.msra.mxu3 %v5540_v10 }
 0x72e   :  { %2641 = vmatpush.msra.mxu0 %v5543_v19  ;;  %2661 = vmatpush.msra.mxu1 %v5546_v21 }
 0x72f   :  { %2681 = vmatpush.msra.mxu2 %v5549_v28  ;;  %2701 = vmatpush.msra.mxu3 %v5552_v38 }
 0x730   :  { %2642 = vmatpush.msra.mxu0 %v5555_v4  ;;  %2662 = vmatpush.msra.mxu1 %v5558_v62 }
 0x731   :  { %2682 = vmatpush.msra.mxu2 %v5561_v23  ;;  %2702 = vmatpush.msra.mxu3 %v5564_v3 }
 0x732   :  { %2643 = vmatpush.msra.mxu0 %v5567_v24  ;;  %2663 = vmatpush.msra.mxu1 %v5570_v42 }
 0x733   :  { %2683 = vmatpush.msra.mxu2 %v5573_v22  ;;  %2703 = vmatpush.msra.mxu3 %v5576_v18 }
 0x734   :  { %2644 = vmatpush.msra.mxu0 %v5579_v8  ;;  %2664 = vmatpush.msra.mxu1 %v5582_v29 }
 0x735   :  { %2684 = vmatpush.msra.mxu2 %v5585_v20  ;;  %2704 = vmatpush.msra.mxu3 %v5588_v54 }
 0x736   :  { %2645 = vmatpush.msra.mxu0 %v5591_v2  ;;  %2665 = vmatpush.msra.mxu1 %v5594_v17 }
 0x737   :  { %2685 = vmatpush.msra.mxu2 %v5597_v27  ;;  %2705 = vmatpush.msra.mxu3 %v5600_v63 }
 0x738   :  { %2646 = vmatpush.msra.mxu0 %v5603_v52  ;;  %2666 = vmatpush.msra.mxu1 %v5606_v31 }
 0x739   :  { %2686 = vmatpush.msra.mxu2 %v5609_v33  ;;  %2706 = vmatpush.msra.mxu3 %v5612_v34 }
 0x73a   :  { %2647 = vmatpush.msra.mxu0 %v5615_v36  ;;  %2667 = vmatpush.msra.mxu1 %v5618_v53 }
 0x73b   :  { %2687 = vmatpush.msra.mxu2 %v5621_v46  ;;  %2707 = vmatpush.msra.mxu3 %v5624_v41  ;;  %v6624_v41 = vld [vmem:[#allocation47_spill] sm:$0xff] }
 0x73c   :  { %2648 = vmatpush.msra.mxu0 %v5627_v45  ;;  %2668 = vmatpush.msra.mxu1 %v5630_v47  ;;  %v5645_v45 = vld [vmem:[#allocation10 + $0x30] sm:$0xff]  ;;  %v5648_v47 = vld [vmem:[#allocation10 + $0x38] sm:$0xff] }
 0x73d   :  { %2688 = vmatpush.msra.mxu2 %v5633_v39  ;;  %2708 = vmatpush.msra.mxu3 %v5636_v56  ;;  %6618 = vst [vmem:[#allocation34_spill] sm:$0xff] %v5645_v45  ;;  %v5651_v39 = vld [vmem:[#allocation10] sm:$0xff]  ;;  %v5654_v56 = vld [vmem:[#allocation10 + $0x8] sm:$0xff] }
 0x73e   :  { %2649 = vmatpush.msra.mxu0 %v5639_v61  ;;  %2669 = vmatpush.msra.mxu1 %v5642_v48  ;;  %6619 = vst [vmem:[#allocation41_spill] sm:$0xff] %v5648_v47  ;;  %v5658_v61 = vld [vmem:[#allocation10 + $0x18] sm:$0xff] }
 0x73f   :  { %2689 = vmatpush.msra.mxu2 %v5645_v45  ;;  %2709 = vmatpush.msra.mxu3 %v5648_v47  ;;  %6620 = vst [vmem:[#allocation39_spill] sm:$0xff] %v5651_v39  ;;  %v6623_v45 = vld [vmem:[#allocation45_spill] sm:$0xff]  ;;  %v1832_v47 = vadd.f32 %v6624_v41, %v6592_v49 }
 0x740   :  { %2650 = vmatpush.msra.mxu0 %v5651_v39  ;;  %6621 = vst [vmem:[#allocation36_spill] sm:$0xff] %v5654_v56  ;;  %2670 = vmatpush.msra.mxu1 %v5654_v56  ;;  %v1791_v48 = vadd.f32 %v6623_v45, %v6590_v50  ;;  %v6625_v56 = vld [vmem:[#allocation50_spill] sm:$0xff] }
 0x741   :  { %2690 = vmatpush.msra.mxu2 %v6588_v58  ;;  %6622 = vst [vmem:[#allocation37_spill] sm:$0xff] %v5658_v61  ;;  %2710 = vmatpush.msra.mxu3 %v5658_v61  ;;  %v1914_v58 = vadd.f32 %v6625_v56, %v6594_v16 }
 0x79d   :  { %v2350_v46 = vpop.f32.mrf.mxu0  ;;  %v2370_v53 = vpop.f32.mrf.mxu1 }
 0x79e   :  { %v2413_v36 = vadd.f32 %v2350_v46, %v1791_v48  ;;  %v2414_v39 = vadd.f32 %v2370_v53, %v1832_v47 }
 0x7a0   :  { %v3333_v34 = vmul.f32 -1.442695, %v2413_v36  ;;  %v3334_v33 = vmul.f32 -1.442695, %v2414_v39  ;;  %v6626_v36 = vld [vmem:[#allocation69_spill] sm:$0xff] }
 0x7a1   :  { %v1873_v53 = vadd.f32 %v6626_v36, %v6596_v1 }
 0x7a2   :  { %3520 = vpow2.f32 %v3333_v34 }
 0x7a3   :  { %3522 = vpow2.f32 %v3334_v33 }
 0x7a4   :  { %v2410_v31 = vpop.f32.mrf.mxu3  ;;  %v2390_v41 = vpop.f32.mrf.mxu2 }
 0x7a5   :  { %v2416_v52 = vadd.f32 %v2410_v31, %v1914_v58  ;;  %v2415_v39 = vadd.f32 %v2390_v41, %v1873_v53 }
 0x7a7   :  { %v3335_v61 = vmul.f32 -1.442695, %v2416_v52 }
 0x7a8   :  { %v3521_v63 = vpop.eup %3520 }
 0x7a9   :  { %v3523_v27 = vpop.eup %3522  ;;  %v2420_v45 = vadd.f32 1.0, %v3521_v63  ;;  %3524 = vpow2.f32 %v3335_v61 }
 0x7aa   :  { %v2439_v50 = vadd.f32 1.0, %v3523_v27 }
 0x7ab   :  { %3526 = vrcp.f32 %v2420_v45  ;;  %v2432_v58 = vand.u32 2147483648, %v2420_v45  ;;  %v2430_v61 = vand.u32 2147483647, %v2420_v45  ;;  %vm2426_vm10 = vweird.f32 %v2420_v45 }
 0x7ac   :  { %3528 = vrcp.f32 %v2439_v50  ;;  %v2451_v63 = vand.u32 2147483648, %v2439_v50  ;;  %v2449_v49 = vand.u32 2147483647, %v2439_v50  ;;  %vm2445_vm11 = vweird.f32 %v2439_v50 }
 0x7ad   :  { %v2433_v41 = vor.u32 1.1754944e-38, %v2432_v58  ;;  %vm2431_vm14 = vcmp.eq.f32.partialorder %v2430_v61, 8.507059e+37 }
 0x7ae   :  { %vm2450_vm15 = vcmp.eq.f32.partialorder %v2449_v49, 8.507059e+37 }
 0x7af   :  { %v3525_v46 = vpop.eup %3524 }
 0x7b0   :  { %v2459_v34 = vadd.f32 1.0, %v3525_v46 }
 0x7b1   :  { %v3527_v47 = vpop.eup %3526 }
 0x7b2   :  { %v3529_v56 = vpop.eup %3528  ;;  %v2422_v33 = vmul.f32 %v3527_v47, %v2420_v45  ;;  %3530 = vrcp.f32 %v2459_v34  ;;  %vm2427_vm8 = vweird.f32 %v3527_v47  ;;  %vm2465_vm1 = vweird.f32 %v2459_v34 }
 0x7b3   :  { %v2441_v31 = vmul.f32 %v3529_v56, %v2439_v50  ;;  %3532 = vtanh.f32 %v2415_v39  ;;  %vm2446_vm9 = vweird.f32 %v3529_v56  ;;  %vm2428_vm12 = vmor %vm2426_vm10, %vm2427_vm8 }
 0x7b4   :  { %v2423_v52 = vsub.f32 1.0, %v2422_v33  ;;  %vm2447_vm13 = vmor %vm2445_vm11, %vm2446_vm9  ;;  %v2452_v33 = vor.u32 1.1754944e-38, %v2451_v63 }
 0x7b5   :  { %v2442_v48 = vsub.f32 1.0, %v2441_v31 }
 0x7b6   :  { %v2424_v27 = vmul.f32 %v3527_v47, %v2423_v52 }
 0x7b7   :  { %v2443_v16 = vmul.f32 %v3529_v56, %v2442_v48 }
 0x7b8   :  { %v3531_v17 = vpop.eup %3530  ;;  %v2425_v36 = vadd.f32 %v3527_v47, %v2424_v27 }
 0x7b9   :  { %v2444_v46 = vadd.f32 %v3529_v56, %v2443_v16  ;;  %v2461_v53 = vmul.f32 %v3531_v17, %v2459_v34  ;;  %v3533_v39 = vpop.eup %3532  ;;  %vm2466_vm0 = vweird.f32 %v3531_v17  ;;  %v2471_v16 = vand.u32 2147483648, %v2459_v34 }
 0x7ba   :  { %v2429_v31 = vsel %vm2428_vm12, %v3527_v47, %v2425_v36  ;;  %v2469_v47 = vand.u32 2147483647, %v2459_v34  ;;  %vm2467_vm2 = vmor %vm2465_vm1, %vm2466_vm0  ;;  %v6633_v34 = vld [vmem:[#allocation55_spill] sm:$0xff]  ;;  %v6634_v36 = vld [vmem:[#allocation56_spill] sm:$0xff] }
 0x7bb   :  { %v2434_v1 = vsel %vm2431_vm14, %v2433_v41, %v2429_v31  ;;  %v2448_v52 = vsel %vm2447_vm13, %v3529_v56, %v2444_v46  ;;  %v2462_v2 = vsub.f32 1.0, %v2461_v53  ;;  %v2472_v63 = vor.u32 1.1754944e-38, %v2471_v16  ;;  %v6635_v41 = vld [vmem:[#allocation57_spill] sm:$0xff]  ;;  %v6636_v46 = vld [vmem:[#allocation31_spill] sm:$0xff]  ;;  %v6637_v53 = vld [vmem:[#allocation60_spill] sm:$0xff] }
 0x7bc   :  { %v2453_v48 = vsel %vm2450_vm15, %v2452_v33, %v2448_v52  ;;  %v2476_v54 = vmul.f32 %v3533_v39, %v2434_v1  ;;  %vm2470_vm3 = vcmp.eq.f32.partialorder %v2469_v47, 8.507059e+37  ;;  %v6627_v1 = vld [vmem:[#allocation51_spill] sm:$0xff]  ;;  %v6638_v33 = vld [vmem:[#allocation26_spill] sm:$0xff]  ;;  %v6639_v31 = vld [vmem:[#allocation25_spill] sm:$0xff] }
 0x7bd   :  { %v2475_v20 = vmul.f32 %v2453_v48, %v5468_v40  ;;  %v2463_v27 = vmul.f32 %v3531_v17, %v2462_v2  ;;  %v6628_v40 = vld [vmem:[#allocation24_spill] sm:$0xff]  ;;  %v6631_v2 = vld [vmem:[#allocation53_spill] sm:$0xff]  ;;  %v6640_v39 = vld [vmem:[#allocation35_spill] sm:$0xff] }
 0x7be   :  { %v6641_v52 = vld [vmem:[#allocation28_spill] sm:$0xff]  ;;  %v6642_v48 = vld [vmem:[#allocation30_spill] sm:$0xff]  ;;  %v6645_v16 = vld [vmem:[#allocation33_spill] sm:$0xff] }
 0x7bf   :  { %v5670_v45 = vadd.f32 %v2476_v54, %v2475_v20  ;;  %v2464_v50 = vadd.f32 %v3531_v17, %v2463_v27  ;;  %v6629_v20 = vld [vmem:[#allocation52_spill] sm:$0xff]  ;;  %v6630_v54 = vld [vmem:[#allocation54_spill] sm:$0xff]  ;;  %v6643_v27 = vld [vmem:[#allocation29_spill] sm:$0xff] }
 0x7c0   :  { %v6646_v47 = vld [vmem:[#allocation32_spill] sm:$0xff] }
 0x7c1   :  { %3534 = vtanh.f32 %v5670_v45  ;;  %v2468_v58 = vsel %vm2467_vm2, %v3531_v17, %v2464_v50  ;;  %v6632_v17 = vld [vmem:[#allocation27_spill] sm:$0xff]  ;;  %v6644_v50 = vld [vmem:[#allocation38_spill] sm:$0xff] }
 0x7c2   :  { %v2473_v56 = vsel %vm2470_vm3, %v2472_v63, %v2468_v58  ;;  %v6647_v58 = vld [vmem:[#allocation34_spill] sm:$0xff]  ;;  %v6648_v63 = vld [vmem:[#allocation41_spill] sm:$0xff] }
 0x7c7   :  { %v3535_v49 = vpop.eup %3534 }
 0x7c8   :  { %v2479_v61 = vmul.f32 %v3535_v49, %v2473_v56  ;;  %v6649_v49 = vld [vmem:[#allocation39_spill] sm:$0xff]  ;;  %v6650_v56 = vld [vmem:[#allocation36_spill] sm:$0xff] }
 0x7ca   :  { %2500 = vmatmul.f32.vlgmr.msrb.gmra.mxu0 %v2479_v61  ;;  %2520 = vmatmul.f32.vlgmr.msrb.gmra.mxu1 %v2479_v61 }
 0x7cb   :  { %2540 = vmatmul.f32.vlgmr.msrb.gmra.mxu2 %v2479_v61  ;;  %2560 = vmatmul.f32.vlgmr.msrb.gmra.mxu3 %v2479_v61  ;;  %v5735_v61 = vld [vmem:[#allocation10 + $0x10] sm:$0xff] }
 0x7cc   :  { %2786 = vmatpush.msrb.mxu0 %v5471_v9  ;;  %2806 = vmatpush.msrb.mxu1 %v5474_v25  ;;  %6651 = vst [vmem:[#allocation42_spill] sm:$0xff] %v5735_v61 }
 0x7cd   :  { %2826 = vmatpush.msrb.mxu2 %v5477_v11  ;;  %2846 = vmatpush.msrb.mxu3 %v5480_v12 }
 0x7ce   :  { %2787 = vmatpush.msrb.mxu0 %v5483_v0  ;;  %2807 = vmatpush.msrb.mxu1 %v5486_v6 }
 0x7cf   :  { %2827 = vmatpush.msrb.mxu2 %v5489_v35  ;;  %2847 = vmatpush.msrb.mxu3 %v5492_v32 }
 0x7d0   :  { %2788 = vmatpush.msrb.mxu0 %v5495_v44  ;;  %2808 = vmatpush.msrb.mxu1 %v5498_v57 }
 0x7d1   :  { %2828 = vmatpush.msrb.mxu2 %v5501_v51  ;;  %2848 = vmatpush.msrb.mxu3 %v5504_v5 }
 0x7d2   :  { %2789 = vmatpush.msrb.mxu0 %v5507_v13  ;;  %2809 = vmatpush.msrb.mxu1 %v5510_v26 }
 0x7d3   :  { %2829 = vmatpush.msrb.mxu2 %v5513_v59  ;;  %2849 = vmatpush.msrb.mxu3 %v5516_v7 }
 0x7d4   :  { %2790 = vmatpush.msrb.mxu0 %v5519_v14  ;;  %2810 = vmatpush.msrb.mxu1 %v5522_v15 }
 0x7d5   :  { %2830 = vmatpush.msrb.mxu2 %v5525_v55  ;;  %2850 = vmatpush.msrb.mxu3 %v5528_v37 }
 0x7d6   :  { %2791 = vmatpush.msrb.mxu0 %v5531_v60  ;;  %2811 = vmatpush.msrb.mxu1 %v5534_v30 }
 0x7d7   :  { %2831 = vmatpush.msrb.mxu2 %v5537_v43  ;;  %2851 = vmatpush.msrb.mxu3 %v5540_v10 }
 0x7d8   :  { %2792 = vmatpush.msrb.mxu0 %v5543_v19  ;;  %2812 = vmatpush.msrb.mxu1 %v5546_v21 }
 0x7d9   :  { %2832 = vmatpush.msrb.mxu2 %v5549_v28  ;;  %2852 = vmatpush.msrb.mxu3 %v5552_v38 }
 0x7da   :  { %2793 = vmatpush.msrb.mxu0 %v5555_v4  ;;  %2813 = vmatpush.msrb.mxu1 %v5558_v62 }
 0x7db   :  { %2833 = vmatpush.msrb.mxu2 %v5561_v23  ;;  %2853 = vmatpush.msrb.mxu3 %v5564_v3 }
 0x7dc   :  { %2794 = vmatpush.msrb.mxu0 %v5567_v24  ;;  %2814 = vmatpush.msrb.mxu1 %v5570_v42 }
 0x7dd   :  { %2834 = vmatpush.msrb.mxu2 %v5573_v22  ;;  %2854 = vmatpush.msrb.mxu3 %v5576_v18 }
 0x7de   :  { %2795 = vmatpush.msrb.mxu0 %v5579_v8  ;;  %2815 = vmatpush.msrb.mxu1 %v5582_v29 }
 0x7df   :  { %2835 = vmatpush.msrb.mxu2 %v6627_v1  ;;  %2855 = vmatpush.msrb.mxu3 %v6628_v40 }
 0x7e0   :  { %2796 = vmatpush.msrb.mxu0 %v6629_v20  ;;  %2816 = vmatpush.msrb.mxu1 %v6630_v54 }
 0x7e1   :  { %2836 = vmatpush.msrb.mxu2 %v6631_v2  ;;  %2856 = vmatpush.msrb.mxu3 %v6632_v17 }
 0x7e2   :  { %2797 = vmatpush.msrb.mxu0 %v6633_v34  ;;  %2817 = vmatpush.msrb.mxu1 %v6634_v36 }
 0x7e3   :  { %2837 = vmatpush.msrb.mxu2 %v6635_v41  ;;  %2857 = vmatpush.msrb.mxu3 %v6636_v46  ;;  %v6658_v46 = vld [vmem:[#allocation59_spill] sm:$0xff] }
 0x7e4   :  { %2798 = vmatpush.msrb.mxu0 %v6637_v53  ;;  %2818 = vmatpush.msrb.mxu1 %v6638_v33 }
 0x7e5   :  { %2838 = vmatpush.msrb.mxu2 %v6639_v31  ;;  %2858 = vmatpush.msrb.mxu3 %v6640_v39  ;;  %v6656_v39 = vld [vmem:[#allocation58_spill] sm:$0xff] }
 0x7e6   :  { %2799 = vmatpush.msrb.mxu0 %v6641_v52  ;;  %2819 = vmatpush.msrb.mxu1 %v6642_v48  ;;  %v6652_v48 = vld [vmem:[#allocation37_spill] sm:$0xff] }
 0x7e7   :  { %2839 = vmatpush.msrb.mxu2 %v6643_v27  ;;  %2859 = vmatpush.msrb.mxu3 %v6644_v50  ;;  %v6653_v27 = vld [vmem:[#allocation71_spill] sm:$0xff]  ;;  %v6654_v50 = vld [vmem:[#allocation68_spill] sm:$0xff] }
 0x7e8   :  { %2800 = vmatpush.msrb.mxu0 %v6645_v16  ;;  %2820 = vmatpush.msrb.mxu1 %v6646_v47  ;;  %v1794_v52 = vadd.f32 %v6654_v50, %v6653_v27  ;;  %v6655_v16 = vld [vmem:[#allocation73_spill] sm:$0xff] }
 0x7e9   :  { %2840 = vmatpush.msrb.mxu2 %v6647_v58  ;;  %2860 = vmatpush.msrb.mxu3 %v6648_v63  ;;  %v1835_v47 = vadd.f32 %v6656_v39, %v6655_v16 }
 0x7ea   :  { %2801 = vmatpush.msrb.mxu0 %v6649_v49  ;;  %2821 = vmatpush.msrb.mxu1 %v6650_v56  ;;  %v6657_v56 = vld [vmem:[#allocation22_spill] sm:$0xff] }
 0x7eb   :  { %2841 = vmatpush.msrb.mxu2 %v5735_v61  ;;  %2861 = vmatpush.msrb.mxu3 %v6652_v48  ;;  %v1917_v41 = vadd.f32 %v6658_v46, %v6657_v56 }
 0x847   :  { %v2501_v31 = vpop.f32.mrf.mxu0  ;;  %v2521_v58 = vpop.f32.mrf.mxu1 }
 0x848   :  { %v2564_v33 = vadd.f32 %v2501_v31, %v1794_v52  ;;  %v2565_v63 = vadd.f32 %v2521_v58, %v1835_v47  ;;  %v6659_v52 = vld [vmem:[#allocation21_spill] sm:$0xff] }
 0x84a   :  { %v3336_v53 = vmul.f32 -1.442695, %v2564_v33  ;;  %v3337_v49 = vmul.f32 -1.442695, %v2565_v63  ;;  %v6660_v33 = vld [vmem:[#allocation74_spill] sm:$0xff] }
 0x84b   :  { %v1876_v47 = vadd.f32 %v6660_v33, %v6659_v52 }
 0x84c   :  { %3536 = vpow2.f32 %v3336_v53 }
 0x84d   :  { %3538 = vpow2.f32 %v3337_v49 }
 0x84e   :  { %v2561_v61 = vpop.f32.mrf.mxu3  ;;  %v2541_v39 = vpop.f32.mrf.mxu2 }
 0x84f   :  { %v2567_v36 = vadd.f32 %v2561_v61, %v1917_v41  ;;  %v2566_v63 = vadd.f32 %v2541_v39, %v1876_v47 }
 0x851   :  { %v3338_v48 = vmul.f32 -1.442695, %v2567_v36 }
 0x852   :  { %v3537_v34 = vpop.eup %3536 }
 0x853   :  { %v3539_v17 = vpop.eup %3538  ;;  %v2571_v50 = vadd.f32 1.0, %v3537_v34  ;;  %3540 = vpow2.f32 %v3338_v48 }
 0x854   :  { %v2590_v27 = vadd.f32 1.0, %v3539_v17 }
 0x855   :  { %3542 = vrcp.f32 %v2571_v50  ;;  %v2583_v56 = vand.u32 2147483648, %v2571_v50  ;;  %v2581_v48 = vand.u32 2147483647, %v2571_v50  ;;  %vm2577_vm6 = vweird.f32 %v2571_v50 }
 0x856   :  { %3544 = vrcp.f32 %v2590_v27  ;;  %v2602_v34 = vand.u32 2147483648, %v2590_v27  ;;  %v2600_v2 = vand.u32 2147483647, %v2590_v27  ;;  %vm2596_vm7 = vweird.f32 %v2590_v27 }
 0x857   :  { %v2584_v39 = vor.u32 1.1754944e-38, %v2583_v56  ;;  %vm2582_vm10 = vcmp.eq.f32.partialorder %v2581_v48, 8.507059e+37 }
 0x858   :  { %vm2601_vm11 = vcmp.eq.f32.partialorder %v2600_v2, 8.507059e+37 }
 0x859   :  { %v3541_v31 = vpop.eup %3540 }
 0x85a   :  { %v2610_v53 = vadd.f32 1.0, %v3541_v31 }
 0x85b   :  { %v3543_v58 = vpop.eup %3542 }
 0x85c   :  { %v3545_v46 = vpop.eup %3544  ;;  %v2573_v49 = vmul.f32 %v3543_v58, %v2571_v50  ;;  %3546 = vrcp.f32 %v2610_v53  ;;  %vm2578_vm4 = vweird.f32 %v3543_v58  ;;  %vm2616_vm13 = vweird.f32 %v2610_v53 }
 0x85d   :  { %v2592_v41 = vmul.f32 %v3545_v46, %v2590_v27  ;;  %3548 = vtanh.f32 %v2566_v63  ;;  %vm2597_vm5 = vweird.f32 %v3545_v46  ;;  %vm2579_vm8 = vmor %vm2577_vm6, %vm2578_vm4  ;;  %v2620_v56 = vand.u32 2147483647, %v2610_v53 }
 0x85e   :  { %v2574_v36 = vsub.f32 1.0, %v2573_v49  ;;  %vm2598_vm9 = vmor %vm2596_vm7, %vm2597_vm5  ;;  %v2603_v49 = vor.u32 1.1754944e-38, %v2602_v34 }
 0x85f   :  { %v2593_v61 = vsub.f32 1.0, %v2592_v41  ;;  %vm2621_vm15 = vcmp.eq.f32.partialorder %v2620_v56, 8.507059e+37  ;;  %v6680_v56 = vld [vmem:[#allocation32_spill] sm:$0xff] }
 0x860   :  { %v2575_v17 = vmul.f32 %v3543_v58, %v2574_v36 }
 0x861   :  { %v2594_v16 = vmul.f32 %v3545_v46, %v2593_v61 }
 0x862   :  { %v3547_v54 = vpop.eup %3546  ;;  %v2576_v33 = vadd.f32 %v3543_v58, %v2575_v17 }
 0x863   :  { %v2595_v31 = vadd.f32 %v3545_v46, %v2594_v16  ;;  %v2612_v47 = vmul.f32 %v3547_v54, %v2610_v53  ;;  %v3549_v63 = vpop.eup %3548  ;;  %vm2617_vm12 = vweird.f32 %v3547_v54  ;;  %v2622_v16 = vand.u32 2147483648, %v2610_v53  ;;  %v6667_v53 = vld [vmem:[#allocation55_spill] sm:$0xff] }
 0x864   :  { %v2580_v41 = vsel %vm2579_vm8, %v3543_v58, %v2576_v33  ;;  %vm2618_vm14 = vmor %vm2616_vm13, %vm2617_vm12  ;;  %v6668_v33 = vld [vmem:[#allocation56_spill] sm:$0xff] }
 0x865   :  { %v2585_v52 = vsel %vm2582_vm10, %v2584_v39, %v2580_v41  ;;  %v2599_v36 = vsel %vm2598_vm9, %v3545_v46, %v2595_v31  ;;  %v2613_v20 = vsub.f32 1.0, %v2612_v47  ;;  %v2623_v34 = vor.u32 1.1754944e-38, %v2622_v16  ;;  %v6669_v39 = vld [vmem:[#allocation57_spill] sm:$0xff]  ;;  %v6670_v31 = vld [vmem:[#allocation31_spill] sm:$0xff]  ;;  %v6671_v47 = vld [vmem:[#allocation60_spill] sm:$0xff] }
 0x866   :  { %v2604_v61 = vsel %vm2601_vm11, %v2603_v49, %v2599_v36  ;;  %v2627_v40 = vmul.f32 %v3549_v63, %v2585_v52  ;;  %v6666_v52 = vld [vmem:[#allocation27_spill] sm:$0xff]  ;;  %v6672_v49 = vld [vmem:[#allocation26_spill] sm:$0xff]  ;;  %v6673_v41 = vld [vmem:[#allocation25_spill] sm:$0xff] }
 0x867   :  { %v2626_v1 = vmul.f32 %v2604_v61, %v5670_v45  ;;  %v2614_v17 = vmul.f32 %v3547_v54, %v2613_v20  ;;  %v6661_v45 = vld [vmem:[#allocation51_spill] sm:$0xff]  ;;  %v6664_v20 = vld [vmem:[#allocation54_spill] sm:$0xff]  ;;  %v6675_v36 = vld [vmem:[#allocation28_spill] sm:$0xff] }
 0x868   :  { %v6674_v63 = vld [vmem:[#allocation35_spill] sm:$0xff]  ;;  %v6676_v61 = vld [vmem:[#allocation30_spill] sm:$0xff]  ;;  %v6679_v16 = vld [vmem:[#allocation33_spill] sm:$0xff] }
 0x869   :  { %v5748_v50 = vadd.f32 %v2627_v40, %v2626_v1  ;;  %v2615_v27 = vadd.f32 %v3547_v54, %v2614_v17  ;;  %v6662_v1 = vld [vmem:[#allocation24_spill] sm:$0xff]  ;;  %v6677_v17 = vld [vmem:[#allocation29_spill] sm:$0xff] }
 0x86a   :  { %v6663_v40 = vld [vmem:[#allocation52_spill] sm:$0xff] }
 0x86b   :  { %3550 = vtanh.f32 %v5748_v50  ;;  %v2619_v58 = vsel %vm2618_vm14, %v3547_v54, %v2615_v27  ;;  %v6665_v54 = vld [vmem:[#allocation53_spill] sm:$0xff]  ;;  %v6678_v27 = vld [vmem:[#allocation38_spill] sm:$0xff] }
 0x86c   :  { %v2624_v46 = vsel %vm2621_vm15, %v2623_v34, %v2619_v58  ;;  %v6681_v58 = vld [vmem:[#allocation34_spill] sm:$0xff]  ;;  %v6682_v34 = vld [vmem:[#allocation41_spill] sm:$0xff] }
 0x871   :  { %v3551_v2 = vpop.eup %3550 }
 0x872   :  { %v2630_v48 = vmul.f32 %v3551_v2, %v2624_v46  ;;  %v6683_v2 = vld [vmem:[#allocation39_spill] sm:$0xff]  ;;  %v6684_v46 = vld [vmem:[#allocation36_spill] sm:$0xff] }
 0x874   :  { %2651 = vmatmul.f32.vlgmr.msra.gmra.mxu0 %v2630_v48  ;;  %2671 = vmatmul.f32.vlgmr.msra.gmra.mxu1 %v2630_v48 }
 0x875   :  { %2691 = vmatmul.f32.vlgmr.msra.gmra.mxu2 %v2630_v48  ;;  %2711 = vmatmul.f32.vlgmr.msra.gmra.mxu3 %v2630_v48  ;;  %v6685_v48 = vld [vmem:[#allocation42_spill] sm:$0xff] }
 0x876   :  { %2937 = vmatpush.msra.mxu0 %v5471_v9  ;;  %2957 = vmatpush.msra.mxu1 %v5474_v25 }
 0x877   :  { %2977 = vmatpush.msra.mxu2 %v5477_v11  ;;  %2997 = vmatpush.msra.mxu3 %v5480_v12 }
 0x878   :  { %2938 = vmatpush.msra.mxu0 %v5483_v0  ;;  %2958 = vmatpush.msra.mxu1 %v5486_v6 }
 0x879   :  { %2978 = vmatpush.msra.mxu2 %v5489_v35  ;;  %2998 = vmatpush.msra.mxu3 %v5492_v32 }
 0x87a   :  { %2939 = vmatpush.msra.mxu0 %v5495_v44  ;;  %2959 = vmatpush.msra.mxu1 %v5498_v57 }
 0x87b   :  { %2979 = vmatpush.msra.mxu2 %v5501_v51  ;;  %2999 = vmatpush.msra.mxu3 %v5504_v5 }
 0x87c   :  { %2940 = vmatpush.msra.mxu0 %v5507_v13  ;;  %2960 = vmatpush.msra.mxu1 %v5510_v26 }
 0x87d   :  { %2980 = vmatpush.msra.mxu2 %v5513_v59  ;;  %3000 = vmatpush.msra.mxu3 %v5516_v7 }
 0x87e   :  { %2941 = vmatpush.msra.mxu0 %v5519_v14  ;;  %2961 = vmatpush.msra.mxu1 %v5522_v15 }
 0x87f   :  { %2981 = vmatpush.msra.mxu2 %v5525_v55  ;;  %3001 = vmatpush.msra.mxu3 %v5528_v37 }
 0x880   :  { %2942 = vmatpush.msra.mxu0 %v5531_v60  ;;  %2962 = vmatpush.msra.mxu1 %v5534_v30 }
 0x881   :  { %2982 = vmatpush.msra.mxu2 %v5537_v43  ;;  %3002 = vmatpush.msra.mxu3 %v5540_v10 }
 0x882   :  { %2943 = vmatpush.msra.mxu0 %v5543_v19  ;;  %2963 = vmatpush.msra.mxu1 %v5546_v21 }
 0x883   :  { %2983 = vmatpush.msra.mxu2 %v5549_v28  ;;  %3003 = vmatpush.msra.mxu3 %v5552_v38 }
 0x884   :  { %2944 = vmatpush.msra.mxu0 %v5555_v4  ;;  %2964 = vmatpush.msra.mxu1 %v5558_v62 }
 0x885   :  { %2984 = vmatpush.msra.mxu2 %v5561_v23  ;;  %3004 = vmatpush.msra.mxu3 %v5564_v3 }
 0x886   :  { %2945 = vmatpush.msra.mxu0 %v5567_v24  ;;  %2965 = vmatpush.msra.mxu1 %v5570_v42 }
 0x887   :  { %2985 = vmatpush.msra.mxu2 %v5573_v22  ;;  %3005 = vmatpush.msra.mxu3 %v5576_v18 }
 0x888   :  { %2946 = vmatpush.msra.mxu0 %v5579_v8  ;;  %2966 = vmatpush.msra.mxu1 %v5582_v29 }
 0x889   :  { %2986 = vmatpush.msra.mxu2 %v6661_v45  ;;  %3006 = vmatpush.msra.mxu3 %v6662_v1 }
 0x88a   :  { %2947 = vmatpush.msra.mxu0 %v6663_v40  ;;  %2967 = vmatpush.msra.mxu1 %v6664_v20 }
 0x88b   :  { %2987 = vmatpush.msra.mxu2 %v6665_v54  ;;  %3007 = vmatpush.msra.mxu3 %v6666_v52 }
 0x88c   :  { %2948 = vmatpush.msra.mxu0 %v6667_v53  ;;  %2968 = vmatpush.msra.mxu1 %v6668_v33 }
 0x88d   :  { %2988 = vmatpush.msra.mxu2 %v6669_v39  ;;  %3008 = vmatpush.msra.mxu3 %v6670_v31  ;;  %v6692_v39 = vld [vmem:[#allocation64_spill] sm:$0xff] }
 0x88e   :  { %2949 = vmatpush.msra.mxu0 %v6671_v47  ;;  %2969 = vmatpush.msra.mxu1 %v6672_v49 }
 0x88f   :  { %2989 = vmatpush.msra.mxu2 %v6673_v41  ;;  %3009 = vmatpush.msra.mxu3 %v6674_v63  ;;  %v6690_v41 = vld [vmem:[#allocation61_spill] sm:$0xff] }
 0x890   :  { %2950 = vmatpush.msra.mxu0 %v6675_v36  ;;  %2970 = vmatpush.msra.mxu1 %v6676_v61  ;;  %v6686_v36 = vld [vmem:[#allocation37_spill] sm:$0xff]  ;;  %v6687_v61 = vld [vmem:[#allocation71_spill] sm:$0xff] }
 0x891   :  { %2990 = vmatpush.msra.mxu2 %v6677_v17  ;;  %3010 = vmatpush.msra.mxu3 %v6678_v27  ;;  %v6688_v17 = vld [vmem:[#allocation72_spill] sm:$0xff]  ;;  %v6689_v27 = vld [vmem:[#allocation73_spill] sm:$0xff] }
 0x892   :  { %2951 = vmatpush.msra.mxu0 %v6679_v16  ;;  %2971 = vmatpush.msra.mxu1 %v6680_v56  ;;  %v1797_v63 = vadd.f32 %v6688_v17, %v6687_v61  ;;  %v1838_v16 = vadd.f32 %v6690_v41, %v6689_v27 }
 0x893   :  { %2991 = vmatpush.msra.mxu2 %v6681_v58  ;;  %3011 = vmatpush.msra.mxu3 %v6682_v34 }
 0x894   :  { %2952 = vmatpush.msra.mxu0 %v6683_v2  ;;  %2972 = vmatpush.msra.mxu1 %v6684_v46  ;;  %v6691_v2 = vld [vmem:[#allocation22_spill] sm:$0xff] }
 0x895   :  { %2992 = vmatpush.msra.mxu2 %v6685_v48  ;;  %3012 = vmatpush.msra.mxu3 %v6686_v36  ;;  %v1920_v46 = vadd.f32 %v6692_v39, %v6691_v2 }
 0x8f1   :  { %v2652_v49 = vpop.f32.mrf.mxu0  ;;  %v2672_v56 = vpop.f32.mrf.mxu1 }
 0x8f2   :  { %v2715_v47 = vadd.f32 %v2652_v49, %v1797_v63  ;;  %v2716_v58 = vadd.f32 %v2672_v56, %v1838_v16  ;;  %v6693_v63 = vld [vmem:[#allocation21_spill] sm:$0xff] }
 0x8f4   :  { %v3339_v31 = vmul.f32 -1.442695, %v2715_v47  ;;  %v3340_v34 = vmul.f32 -1.442695, %v2716_v58  ;;  %v6694_v47 = vld [vmem:[#allocation65_spill] sm:$0xff] }
 0x8f5   :  { %v1879_v16 = vadd.f32 %v6694_v47, %v6693_v63 }
 0x8f6   :  { %3552 = vpow2.f32 %v3339_v31 }
 0x8f7   :  { %3554 = vpow2.f32 %v3340_v34 }
 0x8f8   :  { %v2712_v48 = vpop.f32.mrf.mxu3  ;;  %v2692_v41 = vpop.f32.mrf.mxu2 }
 0x8f9   :  { %v2718_v33 = vadd.f32 %v2712_v48, %v1920_v46  ;;  %v2717_v58 = vadd.f32 %v2692_v41, %v1879_v16 }
 0x8fb   :  { %v3341_v36 = vmul.f32 -1.442695, %v2718_v33 }
 0x8fc   :  { %v3553_v53 = vpop.eup %3552 }
 0x8fd   :  { %v3555_v52 = vpop.eup %3554  ;;  %v2722_v17 = vadd.f32 1.0, %v3553_v53  ;;  %3556 = vpow2.f32 %v3341_v36 }
 0x8fe   :  { %v2741_v61 = vadd.f32 1.0, %v3555_v52 }
 0x8ff   :  { %3558 = vrcp.f32 %v2722_v17  ;;  %v2734_v2 = vand.u32 2147483648, %v2722_v17  ;;  %v2732_v36 = vand.u32 2147483647, %v2722_v17  ;;  %vm2728_vm2 = vweird.f32 %v2722_v17 }
 0x900   :  { %3560 = vrcp.f32 %v2741_v61  ;;  %v2753_v53 = vand.u32 2147483648, %v2741_v61  ;;  %v2751_v54 = vand.u32 2147483647, %v2741_v61  ;;  %vm2747_vm3 = vweird.f32 %v2741_v61 }
 0x901   :  { %v2735_v41 = vor.u32 1.1754944e-38, %v2734_v2  ;;  %vm2733_vm6 = vcmp.eq.f32.partialorder %v2732_v36, 8.507059e+37 }
 0x902   :  { %vm2752_vm7 = vcmp.eq.f32.partialorder %v2751_v54, 8.507059e+37 }
 0x903   :  { %v3557_v49 = vpop.eup %3556 }
 0x904   :  { %v2761_v31 = vadd.f32 1.0, %v3557_v49 }
 0x905   :  { %v3559_v56 = vpop.eup %3558 }
 0x906   :  { %v3561_v39 = vpop.eup %3560  ;;  %v2724_v34 = vmul.f32 %v3559_v56, %v2722_v17  ;;  %3562 = vrcp.f32 %v2761_v31  ;;  %vm2729_vm0 = vweird.f32 %v3559_v56  ;;  %vm2767_vm9 = vweird.f32 %v2761_v31 }
 0x907   :  { %v2743_v46 = vmul.f32 %v3561_v39, %v2741_v61  ;;  %3564 = vtanh.f32 %v2717_v58  ;;  %vm2748_vm1 = vweird.f32 %v3561_v39  ;;  %vm2730_vm4 = vmor %vm2728_vm2, %vm2729_vm0  ;;  %v2771_v2 = vand.u32 2147483647, %v2761_v31 }
 0x908   :  { %v2725_v33 = vsub.f32 1.0, %v2724_v34  ;;  %vm2749_vm5 = vmor %vm2747_vm3, %vm2748_vm1  ;;  %v2754_v34 = vor.u32 1.1754944e-38, %v2753_v53 }
 0x909   :  { %v2744_v48 = vsub.f32 1.0, %v2743_v46  ;;  %vm2772_vm11 = vcmp.eq.f32.partialorder %v2771_v2, 8.507059e+37 }
 0x90a   :  { %v2726_v52 = vmul.f32 %v3559_v56, %v2725_v33 }
 0x90b   :  { %v2745_v27 = vmul.f32 %v3561_v39, %v2744_v48 }
 0x90c   :  { %v3563_v20 = vpop.eup %3562  ;;  %v2727_v47 = vadd.f32 %v3559_v56, %v2726_v52 }
 0x90d   :  { %v2746_v49 = vadd.f32 %v3561_v39, %v2745_v27  ;;  %v2763_v16 = vmul.f32 %v3563_v20, %v2761_v31  ;;  %v3565_v58 = vpop.eup %3564  ;;  %vm2768_vm8 = vweird.f32 %v3563_v20  ;;  %v2773_v27 = vand.u32 2147483648, %v2761_v31 }
 0x90e   :  { %v2731_v46 = vsel %vm2730_vm4, %v3559_v56, %v2727_v47  ;;  %vm2769_vm10 = vmor %vm2767_vm9, %vm2768_vm8 }
 0x90f   :  { %v2736_v63 = vsel %vm2733_vm6, %v2735_v41, %v2731_v46  ;;  %v2750_v33 = vsel %vm2749_vm5, %v3561_v39, %v2746_v49  ;;  %v2764_v40 = vsub.f32 1.0, %v2763_v16  ;;  %v2774_v53 = vor.u32 1.1754944e-38, %v2773_v27  ;;  %v6727_v46 = vld [vmem:[#allocation21_spill] sm:$0xff] }
 0x910   :  { %v2755_v48 = vsel %vm2752_vm7, %v2754_v34, %v2750_v33  ;;  %v2778_v1 = vmul.f32 %v3565_v58, %v2736_v63  ;;  %v6728_v58 = vld [vmem:[#allocation23_spill] sm:$0xff] }
 0x911   :  { %v2777_v45 = vmul.f32 %v2755_v48, %v5748_v50  ;;  %v2765_v52 = vmul.f32 %v3563_v20, %v2764_v40  ;;  %v6725_v50 = vld [vmem:[#allocation22_spill] sm:$0xff]  ;;  %v1882_v33 = vadd.f32 %v6728_v58, %v6727_v46 }
 0x913   :  { %v5824_v17 = vadd.f32 %v2778_v1, %v2777_v45  ;;  %v2766_v61 = vadd.f32 %v3563_v20, %v2765_v52  ;;  %v6726_v45 = vld [vmem:[#allocation70_spill] sm:$0xff] }
 0x914   :  { %v1923_v1 = vadd.f32 %v6726_v45, %v6725_v50 }
 0x915   :  { %3566 = vtanh.f32 %v5824_v17  ;;  %v2770_v56 = vsel %vm2769_vm10, %v3563_v20, %v2766_v61 }
 0x916   :  { %v2775_v39 = vsel %vm2772_vm11, %v2774_v53, %v2770_v56 }
 0x91b   :  { %v3567_v54 = vpop.eup %3566 }
 0x91c   :  { %v2781_v36 = vmul.f32 %v3567_v54, %v2775_v39 }
 0x91e   :  { %2802 = vmatmul.f32.vlgmr.msrb.gmra.mxu0 %v2781_v36  ;;  %2822 = vmatmul.f32.vlgmr.msrb.gmra.mxu1 %v2781_v36 }
 0x91f   :  { %2842 = vmatmul.f32.vlgmr.msrb.gmra.mxu2 %v2781_v36  ;;  %2862 = vmatmul.f32.vlgmr.msrb.gmra.mxu3 %v2781_v36 }
 0x920   :  { %3088 = vmatpush.msrb.mxu0 %v5471_v9  ;;  %3108 = vmatpush.msrb.mxu1 %v5474_v25  ;;  %v6695_v9 = vld [vmem:[#allocation51_spill] sm:$0xff]  ;;  %v6696_v25 = vld [vmem:[#allocation24_spill] sm:$0xff] }
 0x921   :  { %3128 = vmatpush.msrb.mxu2 %v5477_v11  ;;  %3148 = vmatpush.msrb.mxu3 %v5480_v12  ;;  %v6697_v11 = vld [vmem:[#allocation52_spill] sm:$0xff]  ;;  %v6698_v12 = vld [vmem:[#allocation54_spill] sm:$0xff] }
 0x922   :  { %3089 = vmatpush.msrb.mxu0 %v5483_v0  ;;  %3109 = vmatpush.msrb.mxu1 %v5486_v6  ;;  %v6699_v0 = vld [vmem:[#allocation53_spill] sm:$0xff]  ;;  %v6700_v6 = vld [vmem:[#allocation27_spill] sm:$0xff] }
 0x923   :  { %3129 = vmatpush.msrb.mxu2 %v5489_v35  ;;  %3149 = vmatpush.msrb.mxu3 %v5492_v32  ;;  %v6701_v35 = vld [vmem:[#allocation55_spill] sm:$0xff]  ;;  %v6702_v32 = vld [vmem:[#allocation56_spill] sm:$0xff] }
 0x924   :  { %3090 = vmatpush.msrb.mxu0 %v5495_v44  ;;  %3110 = vmatpush.msrb.mxu1 %v5498_v57  ;;  %v6703_v44 = vld [vmem:[#allocation57_spill] sm:$0xff]  ;;  %v6704_v57 = vld [vmem:[#allocation31_spill] sm:$0xff] }
 0x925   :  { %3130 = vmatpush.msrb.mxu2 %v5501_v51  ;;  %3150 = vmatpush.msrb.mxu3 %v5504_v5  ;;  %v6705_v51 = vld [vmem:[#allocation60_spill] sm:$0xff]  ;;  %v6706_v5 = vld [vmem:[#allocation26_spill] sm:$0xff] }
 0x926   :  { %3091 = vmatpush.msrb.mxu0 %v5507_v13  ;;  %3111 = vmatpush.msrb.mxu1 %v5510_v26  ;;  %v6707_v13 = vld [vmem:[#allocation25_spill] sm:$0xff]  ;;  %v6708_v26 = vld [vmem:[#allocation35_spill] sm:$0xff] }
 0x927   :  { %3131 = vmatpush.msrb.mxu2 %v5513_v59  ;;  %3151 = vmatpush.msrb.mxu3 %v5516_v7  ;;  %v6709_v59 = vld [vmem:[#allocation28_spill] sm:$0xff]  ;;  %v6710_v7 = vld [vmem:[#allocation30_spill] sm:$0xff] }
 0x928   :  { %3092 = vmatpush.msrb.mxu0 %v5519_v14  ;;  %3112 = vmatpush.msrb.mxu1 %v5522_v15  ;;  %v6711_v14 = vld [vmem:[#allocation29_spill] sm:$0xff]  ;;  %v6712_v15 = vld [vmem:[#allocation38_spill] sm:$0xff] }
 0x929   :  { %3132 = vmatpush.msrb.mxu2 %v5525_v55  ;;  %3152 = vmatpush.msrb.mxu3 %v5528_v37  ;;  %v6713_v55 = vld [vmem:[#allocation33_spill] sm:$0xff]  ;;  %v6714_v37 = vld [vmem:[#allocation32_spill] sm:$0xff] }
 0x92a   :  { %3093 = vmatpush.msrb.mxu0 %v5531_v60  ;;  %3113 = vmatpush.msrb.mxu1 %v5534_v30  ;;  %v6715_v60 = vld [vmem:[#allocation34_spill] sm:$0xff]  ;;  %v6716_v30 = vld [vmem:[#allocation41_spill] sm:$0xff] }
 0x92b   :  { %3133 = vmatpush.msrb.mxu2 %v5537_v43  ;;  %3153 = vmatpush.msrb.mxu3 %v5540_v10  ;;  %v6717_v43 = vld [vmem:[#allocation39_spill] sm:$0xff]  ;;  %v6718_v10 = vld [vmem:[#allocation36_spill] sm:$0xff] }
 0x92c   :  { %3094 = vmatpush.msrb.mxu0 %v5543_v19  ;;  %3114 = vmatpush.msrb.mxu1 %v5546_v21  ;;  %v6719_v19 = vld [vmem:[#allocation42_spill] sm:$0xff]  ;;  %v6720_v21 = vld [vmem:[#allocation37_spill] sm:$0xff] }
 0x92d   :  { %3134 = vmatpush.msrb.mxu2 %v5549_v28  ;;  %3154 = vmatpush.msrb.mxu3 %v5552_v38  ;;  %v6721_v28 = vld [vmem:[#allocation71_spill] sm:$0xff]  ;;  %v6722_v38 = vld [vmem:[#allocation62_spill] sm:$0xff] }
 0x92e   :  { %3095 = vmatpush.msrb.mxu0 %v5555_v4  ;;  %3115 = vmatpush.msrb.mxu1 %v5558_v62  ;;  %v1800_v4 = vadd.f32 %v6722_v38, %v6721_v28  ;;  %v6723_v62 = vld [vmem:[#allocation73_spill] sm:$0xff] }
 0x92f   :  { %3135 = vmatpush.msrb.mxu2 %v5561_v23  ;;  %3155 = vmatpush.msrb.mxu3 %v5564_v3  ;;  %v6724_v23 = vld [vmem:[#allocation63_spill] sm:$0xff] }
 0x930   :  { %3096 = vmatpush.msrb.mxu0 %v5567_v24  ;;  %3116 = vmatpush.msrb.mxu1 %v5570_v42  ;;  %v1841_v3 = vadd.f32 %v6724_v23, %v6723_v62 }
 0x931   :  { %3136 = vmatpush.msrb.mxu2 %v5573_v22  ;;  %3156 = vmatpush.msrb.mxu3 %v5576_v18 }
 0x932   :  { %3097 = vmatpush.msrb.mxu0 %v5579_v8  ;;  %3117 = vmatpush.msrb.mxu1 %v5582_v29 }
 0x933   :  { %3137 = vmatpush.msrb.mxu2 %v6695_v9  ;;  %3157 = vmatpush.msrb.mxu3 %v6696_v25 }
 0x934   :  { %3098 = vmatpush.msrb.mxu0 %v6697_v11  ;;  %3118 = vmatpush.msrb.mxu1 %v6698_v12 }
 0x935   :  { %3138 = vmatpush.msrb.mxu2 %v6699_v0  ;;  %3158 = vmatpush.msrb.mxu3 %v6700_v6 }
 0x936   :  { %3099 = vmatpush.msrb.mxu0 %v6701_v35  ;;  %3119 = vmatpush.msrb.mxu1 %v6702_v32 }
 0x937   :  { %3139 = vmatpush.msrb.mxu2 %v6703_v44  ;;  %3159 = vmatpush.msrb.mxu3 %v6704_v57 }
 0x938   :  { %3100 = vmatpush.msrb.mxu0 %v6705_v51  ;;  %3120 = vmatpush.msrb.mxu1 %v6706_v5 }
 0x939   :  { %3140 = vmatpush.msrb.mxu2 %v6707_v13  ;;  %3160 = vmatpush.msrb.mxu3 %v6708_v26 }
 0x93a   :  { %3101 = vmatpush.msrb.mxu0 %v6709_v59  ;;  %3121 = vmatpush.msrb.mxu1 %v6710_v7 }
 0x93b   :  { %3141 = vmatpush.msrb.mxu2 %v6711_v14  ;;  %3161 = vmatpush.msrb.mxu3 %v6712_v15 }
 0x93c   :  { %3102 = vmatpush.msrb.mxu0 %v6713_v55  ;;  %3122 = vmatpush.msrb.mxu1 %v6714_v37 }
 0x93d   :  { %3142 = vmatpush.msrb.mxu2 %v6715_v60  ;;  %3162 = vmatpush.msrb.mxu3 %v6716_v30 }
 0x93e   :  { %3103 = vmatpush.msrb.mxu0 %v6717_v43  ;;  %3123 = vmatpush.msrb.mxu1 %v6718_v10 }
 0x93f   :  { %3143 = vmatpush.msrb.mxu2 %v6719_v19  ;;  %3163 = vmatpush.msrb.mxu3 %v6720_v21 }
 0x99b   :  { %v2803_v24 = vpop.f32.mrf.mxu0  ;;  %v2823_v42 = vpop.f32.mrf.mxu1 }
 0x99c   :  { %v2866_v22 = vadd.f32 %v2803_v24, %v1800_v4  ;;  %v2867_v18 = vadd.f32 %v2823_v42, %v1841_v3  ;;  %v6730_v3 = vld [vmem:[#allocation18_spill] sm:$0xff] }
 0x99d   :  { %v1844_v24 = vadd.f32 %v6730_v3, %v6723_v62  ;;  %v3249_v3 = vld [vmem:[%s5985_s7 + $0x70] sm:$0xff] }
 0x99e   :  { %v3342_v8 = vmul.f32 -1.442695, %v2866_v22  ;;  %v3343_v29 = vmul.f32 -1.442695, %v2867_v18 }
 0x9a0   :  { %3568 = vpow2.f32 %v3342_v8 }
 0x9a1   :  { %3570 = vpow2.f32 %v3343_v29 }
 0x9a2   :  { %v2863_v40 = vpop.f32.mrf.mxu3  ;;  %v2843_v16 = vpop.f32.mrf.mxu2 }
 0x9a3   :  { %v2869_v20 = vadd.f32 %v2863_v40, %v1923_v1  ;;  %v2868_v61 = vadd.f32 %v2843_v16, %v1882_v33  ;;  %v6731_v1 = vld [vmem:[#allocation49_spill] sm:$0xff] }
 0x9a4   :  { %v1926_v40 = vadd.f32 %v6731_v1, %v6725_v50  ;;  %v6732_v33 = vld [vmem:[#allocation17_spill] sm:$0xff]  ;;  %v6733_v1 = vld [vmem:[#allocation66_spill] sm:$0xff] }
 0x9a5   :  { %v3344_v63 = vmul.f32 -1.442695, %v2869_v20 }
 0x9a6   :  { %v3569_v31 = vpop.eup %3568 }
 0x9a7   :  { %v3571_v47 = vpop.eup %3570  ;;  %v2873_v41 = vadd.f32 1.0, %v3569_v31  ;;  %3572 = vpow2.f32 %v3344_v63 }
 0x9a8   :  { %v2892_v49 = vadd.f32 1.0, %v3571_v47 }
 0x9a9   :  { %3574 = vrcp.f32 %v2873_v41  ;;  %v2885_v39 = vand.u32 2147483648, %v2873_v41  ;;  %v2883_v25 = vand.u32 2147483647, %v2873_v41  ;;  %vm2879_vm14 = vweird.f32 %v2873_v41 }
 0x9aa   :  { %3576 = vrcp.f32 %v2892_v49  ;;  %v2904_v36 = vand.u32 2147483648, %v2892_v49  ;;  %v2902_v12 = vand.u32 2147483647, %v2892_v49  ;;  %vm2898_vm15 = vweird.f32 %v2892_v49 }
 0x9ab   :  { %v2886_v35 = vor.u32 1.1754944e-38, %v2885_v39  ;;  %vm2884_vm2 = vcmp.eq.f32.partialorder %v2883_v25, 8.507059e+37 }
 0x9ac   :  { %v2905_v57 = vor.u32 1.1754944e-38, %v2904_v36  ;;  %vm2903_vm3 = vcmp.eq.f32.partialorder %v2902_v12, 8.507059e+37 }
 0x9ad   :  { %v3573_v34 = vpop.eup %3572 }
 0x9ae   :  { %v2912_v48 = vadd.f32 1.0, %v3573_v34 }
 0x9af   :  { %v3575_v52 = vpop.eup %3574 }
 0x9b0   :  { %v3577_v27 = vpop.eup %3576  ;;  %v2875_v2 = vmul.f32 %v3575_v52, %v2873_v41  ;;  %3578 = vrcp.f32 %v2912_v48  ;;  %vm2880_vm12 = vweird.f32 %v3575_v52  ;;  %v2924_v30 = vand.u32 2147483648, %v2912_v48 }
 0x9b1   :  { %v2894_v56 = vmul.f32 %v3577_v27, %v2892_v49  ;;  %3580 = vtanh.f32 %v2868_v61  ;;  %vm2899_vm13 = vweird.f32 %v3577_v27  ;;  %vm2881_vm0 = vmor %vm2879_vm14, %vm2880_vm12  ;;  %vm2918_vm5 = vweird.f32 %v2912_v48 }
 0x9b2   :  { %v2876_v53 = vsub.f32 1.0, %v2875_v2  ;;  %vm2900_vm1 = vmor %vm2898_vm15, %vm2899_vm13  ;;  %v2922_v43 = vand.u32 2147483647, %v2912_v48  ;;  %v2925_v19 = vor.u32 1.1754944e-38, %v2924_v30 }
 0x9b3   :  { %v2895_v54 = vsub.f32 1.0, %v2894_v56 }
 0x9b4   :  { %v2877_v9 = vmul.f32 %v3575_v52, %v2876_v53  ;;  %vm2923_vm7 = vcmp.eq.f32.partialorder %v2922_v43, 8.507059e+37 }
 0x9b5   :  { %v2896_v11 = vmul.f32 %v3577_v27, %v2895_v54 }
 0x9b6   :  { %v3579_v0 = vpop.eup %3578  ;;  %v2878_v6 = vadd.f32 %v3575_v52, %v2877_v9 }
 0x9b7   :  { %v2897_v32 = vadd.f32 %v3577_v27, %v2896_v11  ;;  %v2914_v44 = vmul.f32 %v3579_v0, %v2912_v48  ;;  %v3581_v5 = vpop.eup %3580  ;;  %vm2919_vm4 = vweird.f32 %v3579_v0  ;;  %v1885_v48 = vadd.f32 %v6732_v33, %v6727_v46 }
 0x9b8   :  { %v2882_v51 = vsel %vm2881_vm0, %v3575_v52, %v2878_v6  ;;  %vm2920_vm6 = vmor %vm2918_vm5, %vm2919_vm4 }
 0x9b9   :  { %v2887_v13 = vsel %vm2884_vm2, %v2886_v35, %v2882_v51  ;;  %v2901_v26 = vsel %vm2900_vm1, %v3577_v27, %v2897_v32  ;;  %v2915_v59 = vsub.f32 1.0, %v2914_v44 }
 0x9ba   :  { %v2906_v7 = vsel %vm2903_vm3, %v2905_v57, %v2901_v26  ;;  %v2929_v14 = vmul.f32 %v3581_v5, %v2887_v13 }
 0x9bb   :  { %v2928_v15 = vmul.f32 %v2906_v7, %v5824_v17  ;;  %v2916_v55 = vmul.f32 %v3579_v0, %v2915_v59  ;;  %v6729_v17 = vld [vmem:[#allocation75_spill] sm:$0xff] }
 0x9bc   :  { %v1803_v23 = vadd.f32 %v6729_v17, %v6721_v28 }
 0x9bd   :  { %v5900_v37 = vadd.f32 %v2929_v14, %v2928_v15  ;;  %v2917_v60 = vadd.f32 %v3579_v0, %v2916_v55 }
 0x9bf   :  { %3582 = vtanh.f32 %v5900_v37  ;;  %v2921_v10 = vsel %vm2920_vm6, %v3579_v0, %v2917_v60 }
 0x9c0   :  { %v2926_v38 = vsel %vm2923_vm7, %v2925_v19, %v2921_v10 }
 0x9c5   :  { %v3583_v21 = vpop.eup %3582 }
 0x9c6   :  { %v2932_v4 = vmul.f32 %v3583_v21, %v2926_v38 }
 0x9c8   :  { %2953 = vmatmul.f32.vlgmr.msra.gmra.mxu0 %v2932_v4  ;;  %2973 = vmatmul.f32.vlgmr.msra.gmra.mxu1 %v2932_v4 }
 0x9c9   :  { %2993 = vmatmul.f32.vlgmr.msra.gmra.mxu2 %v2932_v4  ;;  %3013 = vmatmul.f32.vlgmr.msra.gmra.mxu3 %v2932_v4 }
 0xa45   :  { %v2954_v42 = vpop.f32.mrf.mxu0  ;;  %v2974_v22 = vpop.f32.mrf.mxu1 }
 0xa46   :  { %v3017_v18 = vadd.f32 %v2954_v42, %v1803_v23  ;;  %v3018_v8 = vadd.f32 %v2974_v22, %v1844_v24  ;;  %v3248_v24 = vld [vmem:[%s5985_s7 + $0x68] sm:$0xff]  ;;  %v3247_v42 = vld [vmem:[%s5985_s7 + $0x60] sm:$0xff]  ;;  %v3246_v22 = vld [vmem:[%s5985_s7 + $0x58] sm:$0xff] }
 0xa48   :  { %v3345_v29 = vmul.f32 -1.442695, %v3017_v18  ;;  %v3346_v45 = vmul.f32 -1.442695, %v3018_v8  ;;  %v3245_v18 = vld [vmem:[%s5985_s7 + $0x50] sm:$0xff]  ;;  %v3244_v8 = vld [vmem:[%s5985_s7 + $0x48] sm:$0xff] }
 0xa4a   :  { %3584 = vpow2.f32 %v3345_v29  ;;  %v3243_v29 = vld [vmem:[%s5985_s7 + $0x40] sm:$0xff] }
 0xa4b   :  { %3586 = vpow2.f32 %v3346_v45  ;;  %v3242_v45 = vld [vmem:[%s5985_s7 + $0x38] sm:$0xff] }
 0xa4c   :  { %v3014_v20 = vpop.f32.mrf.mxu3  ;;  %v2994_v34 = vpop.f32.mrf.mxu2 }
 0xa4d   :  { %v3020_v63 = vadd.f32 %v3014_v20, %v1926_v40  ;;  %v3019_v27 = vadd.f32 %v2994_v34, %v1885_v48  ;;  %v1806_v40 = vadd.f32 %v6733_v1, %v6721_v28  ;;  %v6734_v20 = vld [vmem:[#allocation67_spill] sm:$0xff]  ;;  %v3240_v34 = vld [vmem:[%s5985_s7 + $0x28] sm:$0xff]  ;;  %v3239_v28 = vld [vmem:[%s5985_s7 + $0x20] sm:$0xff] }
 0xa4e   :  { %v6735_v48 = vld [vmem:[#allocation19_spill] sm:$0xff] }
 0xa4f   :  { %v3347_v31 = vmul.f32 -1.442695, %v3020_v63  ;;  %v1847_v63 = vadd.f32 %v6734_v20, %v6723_v62  ;;  %v3238_v62 = vld [vmem:[%s5985_s7 + $0x18] sm:$0xff] }
 0xa50   :  { %v3585_v47 = vpop.eup %3584 }
 0xa51   :  { %v3587_v41 = vpop.eup %3586  ;;  %v3024_v49 = vadd.f32 1.0, %v3585_v47  ;;  %3588 = vpow2.f32 %v3347_v31 }
 0xa52   :  { %v3043_v16 = vadd.f32 1.0, %v3587_v41  ;;  %v3241_v41 = vld [vmem:[%s5985_s7 + $0x30] sm:$0xff] }
 0xa53   :  { %3590 = vrcp.f32 %v3024_v49  ;;  %v3036_v36 = vand.u32 2147483648, %v3024_v49  ;;  %v3034_v11 = vand.u32 2147483647, %v3024_v49  ;;  %vm3030_vm10 = vweird.f32 %v3024_v49 }
 0xa54   :  { %3592 = vrcp.f32 %v3043_v16  ;;  %v3055_v9 = vand.u32 2147483648, %v3043_v16  ;;  %v3053_v0 = vand.u32 2147483647, %v3043_v16  ;;  %vm3049_vm11 = vweird.f32 %v3043_v16 }
 0xa55   :  { %v3037_v32 = vor.u32 1.1754944e-38, %v3036_v36  ;;  %vm3035_vm14 = vcmp.eq.f32.partialorder %v3034_v11, 8.507059e+37 }
 0xa56   :  { %v3056_v51 = vor.u32 1.1754944e-38, %v3055_v9  ;;  %vm3054_vm15 = vcmp.eq.f32.partialorder %v3053_v0, 8.507059e+37 }
 0xa57   :  { %v3589_v58 = vpop.eup %3588 }
 0xa58   :  { %v3063_v52 = vadd.f32 1.0, %v3589_v58 }
 0xa59   :  { %v3591_v61 = vpop.eup %3590 }
 0xa5a   :  { %v3593_v2 = vpop.eup %3592  ;;  %v3026_v56 = vmul.f32 %v3591_v61, %v3024_v49  ;;  %3594 = vrcp.f32 %v3063_v52  ;;  %vm3031_vm8 = vweird.f32 %v3591_v61  ;;  %v3075_v10 = vand.u32 2147483648, %v3063_v52 }
 0xa5b   :  { %v3045_v53 = vmul.f32 %v3593_v2, %v3043_v16  ;;  %3596 = vtanh.f32 %v3019_v27  ;;  %vm3050_vm9 = vweird.f32 %v3593_v2  ;;  %vm3032_vm12 = vmor %vm3030_vm10, %vm3031_vm8  ;;  %vm3069_vm1 = vweird.f32 %v3063_v52 }
 0xa5c   :  { %v3027_v54 = vsub.f32 1.0, %v3026_v56  ;;  %vm3051_vm13 = vmor %vm3049_vm11, %vm3050_vm9  ;;  %v3073_v19 = vand.u32 2147483647, %v3063_v52  ;;  %v3076_v38 = vor.u32 1.1754944e-38, %v3075_v10  ;;  %v3236_v56 = vld [vmem:[%s5985_s7 + $0x8] sm:$0xff] }
 0xa5d   :  { %v3046_v39 = vsub.f32 1.0, %v3045_v53 }
 0xa5e   :  { %v3028_v25 = vmul.f32 %v3591_v61, %v3027_v54  ;;  %vm3074_vm3 = vcmp.eq.f32.partialorder %v3073_v19, 8.507059e+37  ;;  %v3235_v54 = vld [vmem:[%s5985_s7] sm:$0xff] }
 0xa5f   :  { %v3047_v12 = vmul.f32 %v3593_v2, %v3046_v39 }
 0xa60   :  { %v3595_v6 = vpop.eup %3594  ;;  %v3029_v35 = vadd.f32 %v3591_v61, %v3028_v25 }
 0xa61   :  { %v3048_v44 = vadd.f32 %v3593_v2, %v3047_v12  ;;  %v3065_v57 = vmul.f32 %v3595_v6, %v3063_v52  ;;  %v3597_v13 = vpop.eup %3596  ;;  %vm3070_vm0 = vweird.f32 %v3595_v6  ;;  %v1929_v52 = vadd.f32 %v6735_v48, %v6725_v50  ;;  %v6736_v12 = vld [vmem:[#allocation20_spill] sm:$0xff] }
 0xa62   :  { %v3033_v5 = vsel %vm3032_vm12, %v3591_v61, %v3029_v35  ;;  %vm3071_vm2 = vmor %vm3069_vm1, %vm3070_vm0  ;;  %v3237_v61 = vld [vmem:[%s5985_s7 + $0x10] sm:$0xff]  ;;  %v1888_v0 = vadd.f32 %v6736_v12, %v6727_v46  ;;  %vm3275_vm0 = vcmask 74752  }
 0xa63   :  { %v3038_v26 = vsel %vm3035_vm14, %v3037_v32, %v3033_v5  ;;  %v3052_v59 = vsel %vm3051_vm13, %v3593_v2, %v3048_v44  ;;  %v3066_v7 = vsub.f32 1.0, %v3065_v57 }
 0xa64   :  { %v3057_v14 = vsel %vm3054_vm15, %v3056_v51, %v3052_v59  ;;  %v3080_v15 = vmul.f32 %v3597_v13, %v3038_v26 }
 0xa65   :  { %v3079_v55 = vmul.f32 %v3057_v14, %v5900_v37  ;;  %v3067_v60 = vmul.f32 %v3595_v6, %v3066_v7  ;;  %v3250_v37 = vld [vmem:[%s5985_s7 + $0x78] sm:$0xff] }
 0xa66   :  { %3255 = vmatpush.msra.mxu0 %v3250_v37 }
 0xa67   :  { %v5912_v30 = vadd.f32 %v3080_v15, %v3079_v55  ;;  %v3068_v43 = vadd.f32 %v3595_v6, %v3067_v60 }
 0xa68   :  { %3256 = vmatpush.msra.mxu0 %v3249_v3 }
 0xa69   :  { %3598 = vtanh.f32 %v5912_v30  ;;  %v3072_v21 = vsel %vm3071_vm2, %v3595_v6, %v3068_v43 }
 0xa6a   :  { %v3077_v17 = vsel %vm3074_vm3, %v3076_v38, %v3072_v21  ;;  %3257 = vmatpush.msra.mxu0 %v3248_v24 }
 0xa6c   :  { %3258 = vmatpush.msra.mxu0 %v3247_v42 }
 0xa6e   :  { %3259 = vmatpush.msra.mxu0 %v3246_v22 }
 0xa6f   :  { %v3599_v4 = vpop.eup %3598 }
 0xa70   :  { %v3083_v23 = vmul.f32 %v3599_v4, %v3077_v17  ;;  %3260 = vmatpush.msra.mxu0 %v3245_v18 }
 0xa72   :  { %3104 = vmatmul.f32.vlgmr.msrb.gmra.mxu0 %v3083_v23  ;;  %3124 = vmatmul.f32.vlgmr.msrb.gmra.mxu1 %v3083_v23 }
 0xa73   :  { %3144 = vmatmul.f32.vlgmr.msrb.gmra.mxu2 %v3083_v23  ;;  %3164 = vmatmul.f32.vlgmr.msrb.gmra.mxu3 %v3083_v23 }
 0xa74   :  { %3261 = vmatpush.msra.mxu0 %v3244_v8 }
 0xa76   :  { %3262 = vmatpush.msra.mxu0 %v3243_v29 }
 0xa78   :  { %3263 = vmatpush.msra.mxu0 %v3242_v45 }
 0xa7a   :  { %3264 = vmatpush.msra.mxu0 %v3241_v41 }
 0xa7c   :  { %3265 = vmatpush.msra.mxu0 %v3240_v34 }
 0xa7e   :  { %3266 = vmatpush.msra.mxu0 %v3239_v28 }
 0xa80   :  { %3267 = vmatpush.msra.mxu0 %v3238_v62 }
 0xa82   :  { %3268 = vmatpush.msra.mxu0 %v3237_v61 }
 0xa84   :  { %3269 = vmatpush.msra.mxu0 %v3236_v56 }
 0xa86   :  { %3270 = vmatpush.msra.mxu0 %v3235_v54 }
 0xaef   :  { %v3105_v31 = vpop.f32.mrf.mxu0  ;;  %v3125_v47 = vpop.f32.mrf.mxu1 }
 0xaf0   :  { %v3168_v49 = vadd.f32 %v3105_v31, %v1806_v40  ;;  %v3169_v16 = vadd.f32 %v3125_v47, %v1847_v63 }
 0xaf2   :  { %v3348_v58 = vmul.f32 -1.442695, %v3168_v49  ;;  %v3349_v33 = vmul.f32 -1.442695, %v3169_v16 }
 0xaf4   :  { %3600 = vpow2.f32 %v3348_v58 }
 0xaf5   :  { %3602 = vpow2.f32 %v3349_v33 }
 0xaf6   :  { %v3165_v27 = vpop.f32.mrf.mxu3  ;;  %v3145_v25 = vpop.f32.mrf.mxu2 }
 0xaf7   :  { %v3171_v2 = vadd.f32 %v3165_v27, %v1929_v52  ;;  %v3170_v32 = vadd.f32 %v3145_v25, %v1888_v0 }
 0xaf9   :  { %v3350_v53 = vmul.f32 -1.442695, %v3171_v2 }
 0xafa   :  { %v3601_v39 = vpop.eup %3600 }
 0xafb   :  { %v3603_v50 = vpop.eup %3602  ;;  %v3175_v36 = vadd.f32 1.0, %v3601_v39  ;;  %3604 = vpow2.f32 %v3350_v53 }
 0xafc   :  { %v3194_v9 = vadd.f32 1.0, %v3603_v50 }
 0xafd   :  { %3606 = vrcp.f32 %v3175_v36  ;;  %v3187_v26 = vand.u32 2147483648, %v3175_v36  ;;  %v3185_v14 = vand.u32 2147483647, %v3175_v36  ;;  %vm3181_vm6 = vweird.f32 %v3175_v36 }
 0xafe   :  { %3608 = vrcp.f32 %v3194_v9  ;;  %v3206_v59 = vand.u32 2147483648, %v3194_v9  ;;  %v3204_v55 = vand.u32 2147483647, %v3194_v9  ;;  %vm3200_vm7 = vweird.f32 %v3194_v9 }
 0xaff   :  { %v3188_v43 = vor.u32 1.1754944e-38, %v3187_v26  ;;  %vm3186_vm10 = vcmp.eq.f32.partialorder %v3185_v14, 8.507059e+37 }
 0xb00   :  { %v3207_v21 = vor.u32 1.1754944e-38, %v3206_v59  ;;  %vm3205_vm11 = vcmp.eq.f32.partialorder %v3204_v55, 8.507059e+37 }
 0xb01   :  { %v3605_v11 = vpop.eup %3604 }
 0xb02   :  { %v3214_v6 = vadd.f32 1.0, %v3605_v11 }
 0xb03   :  { %v3607_v35 = vpop.eup %3606 }
 0xb04   :  { %v3609_v44 = vpop.eup %3608  ;;  %v3177_v57 = vmul.f32 %v3607_v35, %v3175_v36  ;;  %3610 = vrcp.f32 %v3214_v6  ;;  %vm3182_vm4 = vweird.f32 %v3607_v35  ;;  %v3226_v29 = vand.u32 2147483648, %v3214_v6 }
 0xb05   :  { %v3196_v51 = vmul.f32 %v3609_v44, %v3194_v9  ;;  %3612 = vtanh.f32 %v3170_v32  ;;  %vm3201_vm5 = vweird.f32 %v3609_v44  ;;  %vm3183_vm8 = vmor %vm3181_vm6, %vm3182_vm4  ;;  %vm3220_vm13 = vweird.f32 %v3214_v6 }
 0xb06   :  { %v3178_v5 = vsub.f32 1.0, %v3177_v57  ;;  %vm3202_vm9 = vmor %vm3200_vm7, %vm3201_vm5  ;;  %v3224_v45 = vand.u32 2147483647, %v3214_v6  ;;  %v3227_v40 = vor.u32 1.1754944e-38, %v3226_v29 }
 0xb07   :  { %v3197_v13 = vsub.f32 1.0, %v3196_v51 }
 0xb08   :  { %v3179_v7 = vmul.f32 %v3607_v35, %v3178_v5  ;;  %vm3225_vm15 = vcmp.eq.f32.partialorder %v3224_v45, 8.507059e+37 }
 0xb09   :  { %v3198_v15 = vmul.f32 %v3609_v44, %v3197_v13 }
 0xb0a   :  { %v3611_v60 = vpop.eup %3610  ;;  %v3180_v46 = vadd.f32 %v3607_v35, %v3179_v7 }
 0xb0b   :  { %v3199_v10 = vadd.f32 %v3609_v44, %v3198_v15  ;;  %v3216_v19 = vmul.f32 %v3611_v60, %v3214_v6  ;;  %v3613_v4 = vpop.eup %3612  ;;  %vm3221_vm12 = vweird.f32 %v3611_v60 }
 0xb0c   :  { %v3184_v38 = vsel %vm3183_vm8, %v3607_v35, %v3180_v46  ;;  %vm3222_vm14 = vmor %vm3220_vm13, %vm3221_vm12 }
 0xb0d   :  { %v3189_v17 = vsel %vm3186_vm10, %v3188_v43, %v3184_v38  ;;  %v3203_v23 = vsel %vm3202_vm9, %v3609_v44, %v3199_v10  ;;  %v3217_v37 = vsub.f32 1.0, %v3216_v19 }
 0xb0e   :  { %v3208_v3 = vsel %vm3205_vm11, %v3207_v21, %v3203_v23  ;;  %v3231_v24 = vmul.f32 %v3613_v4, %v3189_v17 }
 0xb0f   :  { %v3230_v42 = vmul.f32 %v3208_v3, %v5912_v30  ;;  %v3218_v22 = vmul.f32 %v3611_v60, %v3217_v37  ;;  %v3359_v30 = vld [vmem:[%s5986_s8] ss:$0 sm:$0xff] }
 0xb11   :  { %v3232_v18 = vadd.f32 %v3231_v24, %v3230_v42  ;;  %v3219_v8 = vadd.f32 %v3611_v60, %v3218_v22 }
 0xb13   :  { %3614 = vtanh.f32 %v3232_v18  ;;  %v3223_v1 = vsel %vm3222_vm14, %v3611_v60, %v3219_v8 }
 0xb14   :  { %v3228_v63 = vsel %vm3225_vm15, %v3227_v40, %v3223_v1 }
 0xb19   :  { %v3615_v20 = vpop.eup %3614 }
 0xb1a   :  { %v3234_v31 = vmul.f32 %v3615_v20, %v3228_v63 }
 0xb1c   :  { %3271 = vmatmul.f32.vlgmr.msra.gmra.mxu0 %v3234_v31 }
 0xb99   :  { %v3272_v47 = vpop.f32.mrf.mxu0 }
 0xb9a   :  { %v3273_v41 = vadd.f32 %v3359_v30, %v3272_v47 }
 0xb9c   :  { %3276 = vst.msk [vmem:[#allocation12] sm:$0x3] %vm3275_vm0, %v3273_v41 }
 0xb9d   :  { %3287 = dma.vmem_to_hbm [thread:$0]  %s3283_s1, 32, %s3285_s5, [#allocation6]  }
 0xb9e   :  { %3870 = dma.done.wait [#allocation6], 32  }
 0xb9f   :  { %3871 = vsyncadd [#allocation6], 4294967264 }
 0xba0   :  { %3292 = vsyncpa [#allocation5], 1 }
 0xba1   :  { %3293 = vsyncpa [#allocation8], 1 }
 0xba2   :  { %3294 = vsyncpa [#allocation11], 1 }
 0xba3   :  { %3295 = vsyncpa [#allocation6], 1 }

</bundles_post_ra>
